<compile_context>
chip_gen: v7x
topology: tpu7x:2x2x1
jax: 0.10.0
libtpu: 0.0.40
codegen_flags: <defaults>
</compile_context>

<pallas_src>
import functools
import math

import numpy as np

import jax
import jax.numpy as jnp
from jax.experimental import pallas as pl
from jax.experimental.pallas import tpu as pltpu

LN_EPS = 1e-5                 # PyTorch TransformerEncoderLayer default layer_norm_eps
MM_DTYPE = jnp.bfloat16       # MXU-native operand dtype (f32 accumulation kept)


# ----------------------------- fused Pallas kernel --------------------------

def fused_forward_kernel(*refs, num_layers, num_heads, scale):
    """One grid step == one batch element.  refs layout:
       [x, emb_w, emb_b, pos, (12 refs per layer) * num_layers, fc_w, fc_b, out]"""
    x_ref, emb_w_ref, emb_b_ref, pos_ref = refs[:4]
    layer_refs = refs[4:4 + 12 * num_layers]
    fc_w_ref, fc_b_ref, o_ref = refs[4 + 12 * num_layers:]

    x = x_ref[0]                                                    # (S, F) f32

    # ---- embedding + positional encoding -----------------------------------
    h = (jnp.dot(x.astype(MM_DTYPE), emb_w_ref[...],
                 preferred_element_type=jnp.float32)
         + emb_b_ref[...] + pos_ref[...])                           # (S, D) f32
    S, D = h.shape
    hd = D // num_heads

    def layer_norm(y, g, b):
        mu = jnp.mean(y, axis=-1, keepdims=True)
        var = jnp.mean((y - mu) ** 2, axis=-1, keepdims=True)       # biased var
        return (y - mu) * jax.lax.rsqrt(var + LN_EPS) * g + b

    for li in range(num_layers):
        (wi, bi, wo, bo, g1, b1, w1, bb1, w2, bb2, g2, b2) = \
            layer_refs[12 * li:12 * (li + 1)]

        # ---- multi-head self-attention (all heads in this one grid step) ----
        qkv = (jnp.dot(h.astype(MM_DTYPE), wi[...],
                       preferred_element_type=jnp.float32) + bi[...])   # (S, 3D)
        q = (qkv[:, :D] * scale).astype(MM_DTYPE)   # scale folded into q
        k = qkv[:, D:2 * D].astype(MM_DTYPE)
        v = qkv[:, 2 * D:].astype(MM_DTYPE)

        heads = []
        for hh in range(num_heads):
            qh = q[:, hh * hd:(hh + 1) * hd]
            kh = k[:, hh * hd:(hh + 1) * hd]
            vh = v[:, hh * hd:(hh + 1) * hd]
            # contract last dims: no explicit k.T relayout
            s = jax.lax.dot_general(qh, kh, (((1,), (1,)), ((), ())),
                                    preferred_element_type=jnp.float32)  # (S, S)
            s = s - jnp.max(s, axis=-1, keepdims=True)
            p = jnp.exp(s)
            p = p * pl.reciprocal(jnp.sum(p, axis=-1, keepdims=True), approx=True)
            heads.append(jnp.dot(p.astype(MM_DTYPE), vh,
                                 preferred_element_type=jnp.float32))    # (S, hd)
        attn = jnp.concatenate(heads, axis=-1)                           # (S, D)
        attn = (jnp.dot(attn.astype(MM_DTYPE), wo[...],
                        preferred_element_type=jnp.float32) + bo[...])

        # ---- residual + LayerNorm 1 (post-norm) ------------------------------
        h1 = layer_norm(h + attn, g1[...], b1[...])

        # ---- feed-forward: Linear -> ReLU -> Linear --------------------------
        ff = (jnp.dot(h1.astype(MM_DTYPE), w1[...],
                      preferred_element_type=jnp.float32) + bb1[...])
        ff = jnp.maximum(ff, 0.0)
        ff = (jnp.dot(ff.astype(MM_DTYPE), w2[...],
                      preferred_element_type=jnp.float32) + bb2[...])

        # ---- residual + LayerNorm 2 ------------------------------------------
        h = layer_norm(h1 + ff, g2[...], b2[...])

    # ---- mean-pool over sequence + classifier head ---------------------------
    pooled = jnp.mean(h, axis=0, keepdims=True)                          # (1, D)
    logits = (jnp.dot(pooled.astype(MM_DTYPE), fc_w_ref[...],
                      preferred_element_type=jnp.float32) + fc_b_ref[...])
    o_ref[0] = logits                                                    # (1, O)


# ------------------------------- wrapper ------------------------------------

def transformer_classifier_forward(x, params):
    # mirror the PyTorch shape handling: (N,1,S,F) -> (N,S,F); (N,F,S) -> (N,S,F)
    if x.ndim == 4 and x.shape[1] == 1:
        x = x[:, 0]
    if x.shape[-1] != params["emb_w"].shape[0]:
        x = jnp.swapaxes(x, 1, 2)
    B, S, F = x.shape
    D = params["emb_w"].shape[1]
    H = params["num_heads"]
    L = len(params["layers"])
    O = params["fc_w"].shape[1]
    hd = D // H

    def w(a):  # matmul-operand weights shipped as bf16 (half DMA, MXU-native)
        return a.astype(MM_DTYPE)

    pos = params["pos"][0, :S, :]                                     # (S, D) f32
    inputs = [x, w(params["emb_w"]), params["emb_b"], pos]
    for lp in params["layers"]:
        inputs += [w(lp["in_proj_w"]), lp["in_proj_b"],
                   w(lp["out_proj_w"]), lp["out_proj_b"],
                   lp["ln1_g"], lp["ln1_b"],
                   w(lp["ffn_w1"]), lp["ffn_b1"],
                   w(lp["ffn_w2"]), lp["ffn_b2"],
                   lp["ln2_g"], lp["ln2_b"]]
    inputs += [w(params["fc_w"]), params["fc_b"]]

    def resident(a):  # whole array in VMEM; same block every grid step (no re-DMA)
        return pl.BlockSpec(a.shape, lambda b, _n=a.ndim: (0,) * _n)

    in_specs = ([pl.BlockSpec((1, S, F), lambda b: (b, 0, 0))]
                + [resident(a) for a in inputs[1:]])

    out = pl.pallas_call(
        functools.partial(fused_forward_kernel, num_layers=L, num_heads=H,
                          scale=1.0 / math.sqrt(hd)),
        out_shape=jax.ShapeDtypeStruct((B, 1, O), jnp.float32),
        grid=(B,),  # one batch element per step -> shards over 2 TCs on v7x
        in_specs=in_specs,
        out_specs=pl.BlockSpec((1, 1, O), lambda b: (b, 0, 0)),
        compiler_params=pltpu.CompilerParams(dimension_semantics=("parallel",)),
    )(*inputs)
    return out[:, 0, :]


# ------------------------- pure-JAX reference (f32) --------------------------

def _reference_forward(x, params):
    if x.ndim == 4 and x.shape[1] == 1:
        x = x[:, 0]
    if x.shape[-1] != params["emb_w"].shape[0]:
        x = jnp.swapaxes(x, 1, 2)
    B, S, F = x.shape
    D = params["emb_w"].shape[1]
    H = params["num_heads"]
    hd = D // H

    def ln(y, g, b):
        mu = jnp.mean(y, axis=-1, keepdims=True)
        var = jnp.mean((y - mu) ** 2, axis=-1, keepdims=True)
        return (y - mu) * jax.lax.rsqrt(var + LN_EPS) * g + b

    h = x @ params["emb_w"] + params["emb_b"] + params["pos"][:, :S, :]
    for lp in params["layers"]:
        qkv = h @ lp["in_proj_w"] + lp["in_proj_b"]
        q, k, v = jnp.split(qkv, 3, axis=-1)
        def heads(t):
            return t.reshape(B, S, H, hd).transpose(0, 2, 1, 3)
        qh, kh, vh = heads(q), heads(k), heads(v)
        s = jnp.einsum("bhqd,bhkd->bhqk", qh, kh) / math.sqrt(hd)
        p = jax.nn.softmax(s, axis=-1)
        o = jnp.einsum("bhqk,bhkd->bhqd", p, vh).transpose(0, 2, 1, 3).reshape(B, S, D)
        attn = o @ lp["out_proj_w"] + lp["out_proj_b"]
        h1 = ln(h + attn, lp["ln1_g"], lp["ln1_b"])
        ff = jnp.maximum(h1 @ lp["ffn_w1"] + lp["ffn_b1"], 0.0) @ lp["ffn_w2"] + lp["ffn_b2"]
        h = ln(h1 + ff, lp["ln2_g"], lp["ln2_b"])
    pooled = jnp.mean(h, axis=1)
    return pooled @ params["fc_w"] + params["fc_b"]


# --------------------------- parameter creation ------------------------------

def init_params(key, input_size, num_heads, num_layers, hidden_size, output_size,
                dim_feedforward=512, max_pos=100):
    # NOTE: weights here are stored as (in_features, out_features); real PyTorch
    # checkpoints store (out, in) and must be transposed when loading.
    def normal(k, shape, scale=0.02):
        return scale * jax.random.normal(k, shape, dtype=jnp.float32)

    keys = jax.random.split(key, 4 + num_layers)
    params = {
        "num_heads": num_heads,
        "emb_w": normal(keys[0], (input_size, hidden_size)),
        "emb_b": jnp.zeros((1, hidden_size), jnp.float32),
        "pos": jax.random.normal(keys[1], (1, max_pos, hidden_size), dtype=jnp.float32),
        "fc_w": normal(keys[2], (hidden_size, output_size)),
        "fc_b": jnp.zeros((1, output_size), jnp.float32),
        "layers": [],
    }
    for li in range(num_layers):
        lk = jax.random.split(keys[4 + li], 4)
        params["layers"].append({
            "in_proj_w": normal(lk[0], (hidden_size, 3 * hidden_size)),
            "in_proj_b": jnp.zeros((1, 3 * hidden_size), jnp.float32),
            "out_proj_w": normal(lk[1], (hidden_size, hidden_size)),
            "out_proj_b": jnp.zeros((1, hidden_size), jnp.float32),
            "ffn_w1": normal(lk[2], (hidden_size, dim_feedforward)),
            "ffn_b1": jnp.zeros((1, dim_feedforward), jnp.float32),
            "ffn_w2": normal(lk[3], (dim_feedforward, hidden_size)),
            "ffn_b2": jnp.zeros((1, hidden_size), jnp.float32),
            "ln1_g": jnp.ones((1, hidden_size), jnp.float32),
            "ln1_b": jnp.zeros((1, hidden_size), jnp.float32),
            "ln2_g": jnp.ones((1, hidden_size), jnp.float32),
            "ln2_b": jnp.zeros((1, hidden_size), jnp.float32),
        })
    return params


# ------------------------------------ main -----------------------------------

if __name__ == "__main__":
    B, S, F = 2, 27, 16            # (N, 1, 27, input_size) as in the docstring
    H, L, D, O = 4, 2, 32, 5       # num_heads, num_layers, hidden_size, output_size

    pkey, xkey = jax.random.split(jax.random.PRNGKey(0))
    params = init_params(pkey, F, H, L, D, O)
    x = jax.random.normal(xkey, (B, 1, S, F), dtype=jnp.float32)

    fwd = jax.jit(lambda xx: transformer_classifier_forward(xx, params))
    out = jax.block_until_ready(fwd(x))

    assert out.shape == (B, O), out.shape
    assert jnp.all(jnp.isfinite(out))

    # loose tolerance: kernel runs MXU matmuls with bf16 operands (f32 accumulation)
    ref = _reference_forward(x, params)
    np.testing.assert_allclose(np.asarray(out), np.asarray(ref), rtol=0.1, atol=0.05)

    print("KERNEL_OK")
</pallas_src>

<mosaic_0001>
module attributes {stable_mosaic.version = 11 : i64} {
  func.func @fused_forward_kernel(%arg0: i32, %arg1: memref<1x27x16xf32, #tpu.memory_space<vmem>>, %arg2: memref<16x32xbf16, #tpu.memory_space<vmem>>, %arg3: memref<1x32xf32, #tpu.memory_space<vmem>>, %arg4: memref<27x32xf32, #tpu.memory_space<vmem>>, %arg5: memref<32x96xbf16, #tpu.memory_space<vmem>>, %arg6: memref<1x96xf32, #tpu.memory_space<vmem>>, %arg7: memref<32x32xbf16, #tpu.memory_space<vmem>>, %arg8: memref<1x32xf32, #tpu.memory_space<vmem>>, %arg9: memref<1x32xf32, #tpu.memory_space<vmem>>, %arg10: memref<1x32xf32, #tpu.memory_space<vmem>>, %arg11: memref<32x512xbf16, #tpu.memory_space<vmem>>, %arg12: memref<1x512xf32, #tpu.memory_space<vmem>>, %arg13: memref<512x32xbf16, #tpu.memory_space<vmem>>, %arg14: memref<1x32xf32, #tpu.memory_space<vmem>>, %arg15: memref<1x32xf32, #tpu.memory_space<vmem>>, %arg16: memref<1x32xf32, #tpu.memory_space<vmem>>, %arg17: memref<32x96xbf16, #tpu.memory_space<vmem>>, %arg18: memref<1x96xf32, #tpu.memory_space<vmem>>, %arg19: memref<32x32xbf16, #tpu.memory_space<vmem>>, %arg20: memref<1x32xf32, #tpu.memory_space<vmem>>, %arg21: memref<1x32xf32, #tpu.memory_space<vmem>>, %arg22: memref<1x32xf32, #tpu.memory_space<vmem>>, %arg23: memref<32x512xbf16, #tpu.memory_space<vmem>>, %arg24: memref<1x512xf32, #tpu.memory_space<vmem>>, %arg25: memref<512x32xbf16, #tpu.memory_space<vmem>>, %arg26: memref<1x32xf32, #tpu.memory_space<vmem>>, %arg27: memref<1x32xf32, #tpu.memory_space<vmem>>, %arg28: memref<1x32xf32, #tpu.memory_space<vmem>>, %arg29: memref<32x5xbf16, #tpu.memory_space<vmem>>, %arg30: memref<1x5xf32, #tpu.memory_space<vmem>>, %arg31: memref<1x1x5xf32, #tpu.memory_space<vmem>>) attributes {dimension_semantics = [#tpu.dimension_semantics<parallel>], iteration_bounds = array<i64: 2>, scalar_prefetch = 0 : i64, scratch_operands = 0 : i64, tpu.core_type = #tpu.core_type<tc>, window_params = [{transform_indices = @transform_0, window_bounds = array<i64: 1, 27, 16>}, {pipeline_mode = #tpu.pipeline_mode<synchronous>, transform_indices = @transform_1, window_bounds = array<i64: 16, 32>}, {pipeline_mode = #tpu.pipeline_mode<synchronous>, transform_indices = @transform_2, window_bounds = array<i64: 1, 32>}, {pipeline_mode = #tpu.pipeline_mode<synchronous>, transform_indices = @transform_3, window_bounds = array<i64: 27, 32>}, {pipeline_mode = #tpu.pipeline_mode<synchronous>, transform_indices = @transform_4, window_bounds = array<i64: 32, 96>}, {pipeline_mode = #tpu.pipeline_mode<synchronous>, transform_indices = @transform_5, window_bounds = array<i64: 1, 96>}, {pipeline_mode = #tpu.pipeline_mode<synchronous>, transform_indices = @transform_6, window_bounds = array<i64: 32, 32>}, {pipeline_mode = #tpu.pipeline_mode<synchronous>, transform_indices = @transform_7, window_bounds = array<i64: 1, 32>}, {pipeline_mode = #tpu.pipeline_mode<synchronous>, transform_indices = @transform_8, window_bounds = array<i64: 1, 32>}, {pipeline_mode = #tpu.pipeline_mode<synchronous>, transform_indices = @transform_9, window_bounds = array<i64: 1, 32>}, {pipeline_mode = #tpu.pipeline_mode<synchronous>, transform_indices = @transform_10, window_bounds = array<i64: 32, 512>}, {pipeline_mode = #tpu.pipeline_mode<synchronous>, transform_indices = @transform_11, window_bounds = array<i64: 1, 512>}, {pipeline_mode = #tpu.pipeline_mode<synchronous>, transform_indices = @transform_12, window_bounds = array<i64: 512, 32>}, {pipeline_mode = #tpu.pipeline_mode<synchronous>, transform_indices = @transform_13, window_bounds = array<i64: 1, 32>}, {pipeline_mode = #tpu.pipeline_mode<synchronous>, transform_indices = @transform_14, window_bounds = array<i64: 1, 32>}, {pipeline_mode = #tpu.pipeline_mode<synchronous>, transform_indices = @transform_15, window_bounds = array<i64: 1, 32>}, {pipeline_mode = #tpu.pipeline_mode<synchronous>, transform_indices = @transform_16, window_bounds = array<i64: 32, 96>}, {pipeline_mode = #tpu.pipeline_mode<synchronous>, transform_indices = @transform_17, window_bounds = array<i64: 1, 96>}, {pipeline_mode = #tpu.pipeline_mode<synchronous>, transform_indices = @transform_18, window_bounds = array<i64: 32, 32>}, {pipeline_mode = #tpu.pipeline_mode<synchronous>, transform_indices = @transform_19, window_bounds = array<i64: 1, 32>}, {pipeline_mode = #tpu.pipeline_mode<synchronous>, transform_indices = @transform_20, window_bounds = array<i64: 1, 32>}, {pipeline_mode = #tpu.pipeline_mode<synchronous>, transform_indices = @transform_21, window_bounds = array<i64: 1, 32>}, {pipeline_mode = #tpu.pipeline_mode<synchronous>, transform_indices = @transform_22, window_bounds = array<i64: 32, 512>}, {pipeline_mode = #tpu.pipeline_mode<synchronous>, transform_indices = @transform_23, window_bounds = array<i64: 1, 512>}, {pipeline_mode = #tpu.pipeline_mode<synchronous>, transform_indices = @transform_24, window_bounds = array<i64: 512, 32>}, {pipeline_mode = #tpu.pipeline_mode<synchronous>, transform_indices = @transform_25, window_bounds = array<i64: 1, 32>}, {pipeline_mode = #tpu.pipeline_mode<synchronous>, transform_indices = @transform_26, window_bounds = array<i64: 1, 32>}, {pipeline_mode = #tpu.pipeline_mode<synchronous>, transform_indices = @transform_27, window_bounds = array<i64: 1, 32>}, {pipeline_mode = #tpu.pipeline_mode<synchronous>, transform_indices = @transform_28, window_bounds = array<i64: 32, 5>}, {pipeline_mode = #tpu.pipeline_mode<synchronous>, transform_indices = @transform_29, window_bounds = array<i64: 1, 5>}, {transform_indices = @transform_30, window_bounds = array<i64: 1, 1, 5>}]} {
    %c0 = arith.constant 0 : index
    %c0_0 = arith.constant 0 : index
    %c0_1 = arith.constant 0 : index
    %0 = vector.load %arg1[%c0, %c0_0, %c0_1] : memref<1x27x16xf32, #tpu.memory_space<vmem>>, vector<1x27x16xf32>
    %1 = vector.shape_cast %0 : vector<1x27x16xf32> to vector<27x16xf32>
    %2 = arith.truncf %1 : vector<27x16xf32> to vector<27x16xbf16>
    %c0_2 = arith.constant 0 : index
    %c0_3 = arith.constant 0 : index
    %3 = vector.load %arg2[%c0_2, %c0_3] : memref<16x32xbf16, #tpu.memory_space<vmem>>, vector<16x32xbf16>
    %cst = arith.constant dense<0.000000e+00> : vector<27x32xf32>
    %4 = tpu.matmul %2, %3, %cst {dimension_numbers = #tpu.dot_dimension_numbers<[1], [0], [0], [1], [0, 0, 1, 1], [], []>} : vector<27x16xbf16>, vector<16x32xbf16>, vector<27x32xf32> -> vector<27x32xf32>
    %c0_4 = arith.constant 0 : index
    %c0_5 = arith.constant 0 : index
    %5 = vector.load %arg3[%c0_4, %c0_5] : memref<1x32xf32, #tpu.memory_space<vmem>>, vector<1x32xf32>
    %6 = vector.broadcast %5 : vector<1x32xf32> to vector<27x32xf32>
    %7 = arith.addf %4, %6 : vector<27x32xf32>
    %c0_6 = arith.constant 0 : index
    %c0_7 = arith.constant 0 : index
    %8 = vector.load %arg4[%c0_6, %c0_7] : memref<27x32xf32, #tpu.memory_space<vmem>>, vector<27x32xf32>
    %9 = arith.addf %7, %8 : vector<27x32xf32>
    %10 = arith.truncf %9 : vector<27x32xf32> to vector<27x32xbf16>
    %c0_8 = arith.constant 0 : index
    %c0_9 = arith.constant 0 : index
    %11 = vector.load %arg5[%c0_8, %c0_9] : memref<32x96xbf16, #tpu.memory_space<vmem>>, vector<32x96xbf16>
    %cst_10 = arith.constant dense<0.000000e+00> : vector<27x96xf32>
    %12 = tpu.matmul %10, %11, %cst_10 {dimension_numbers = #tpu.dot_dimension_numbers<[1], [0], [0], [1], [0, 0, 1, 1], [], []>} : vector<27x32xbf16>, vector<32x96xbf16>, vector<27x96xf32> -> vector<27x96xf32>
    %c0_11 = arith.constant 0 : index
    %c0_12 = arith.constant 0 : index
    %13 = vector.load %arg6[%c0_11, %c0_12] : memref<1x96xf32, #tpu.memory_space<vmem>>, vector<1x96xf32>
    %14 = vector.broadcast %13 : vector<1x96xf32> to vector<27x96xf32>
    %15 = arith.addf %12, %14 : vector<27x96xf32>
    %16 = vector.extract_strided_slice %15 {offsets = [0, 0], sizes = [27, 32], strides = [1, 1]} : vector<27x96xf32> to vector<27x32xf32>
    %cst_13 = arith.constant 0.353553385 : f32
    %17 = vector.broadcast %cst_13 : f32 to vector<27x32xf32>
    %18 = arith.mulf %16, %17 : vector<27x32xf32>
    %19 = arith.truncf %18 : vector<27x32xf32> to vector<27x32xbf16>
    %20 = vector.extract_strided_slice %15 {offsets = [0, 32], sizes = [27, 32], strides = [1, 1]} : vector<27x96xf32> to vector<27x32xf32>
    %21 = arith.truncf %20 : vector<27x32xf32> to vector<27x32xbf16>
    %22 = vector.extract_strided_slice %15 {offsets = [0, 64], sizes = [27, 32], strides = [1, 1]} : vector<27x96xf32> to vector<27x32xf32>
    %23 = arith.truncf %22 : vector<27x32xf32> to vector<27x32xbf16>
    %24 = vector.extract_strided_slice %19 {offsets = [0, 0], sizes = [27, 8], strides = [1, 1]} : vector<27x32xbf16> to vector<27x8xbf16>
    %25 = vector.extract_strided_slice %21 {offsets = [0, 0], sizes = [27, 8], strides = [1, 1]} : vector<27x32xbf16> to vector<27x8xbf16>
    %26 = vector.extract_strided_slice %23 {offsets = [0, 0], sizes = [27, 8], strides = [1, 1]} : vector<27x32xbf16> to vector<27x8xbf16>
    %cst_14 = arith.constant dense<0.000000e+00> : vector<27x27xf32>
    %27 = tpu.matmul %24, %25, %cst_14 {dimension_numbers = #tpu.dot_dimension_numbers<[1], [1], [0], [0], [0, 0, 1, 0], [], []>} : vector<27x8xbf16>, vector<27x8xbf16>, vector<27x27xf32> -> vector<27x27xf32>
    %cst_15 = arith.constant dense<0xFF800000> : vector<27xf32>
    %28 = vector.multi_reduction <maximumf>, %27, %cst_15 [1] : vector<27x27xf32> to vector<27xf32>
    %29 = vector.shape_cast %28 : vector<27xf32> to vector<27x1xf32>
    %30 = vector.broadcast %29 : vector<27x1xf32> to vector<27x27xf32>
    %31 = arith.subf %27, %30 : vector<27x27xf32>
    %32 = math.exp %31 : vector<27x27xf32>
    %cst_16 = arith.constant dense<0.000000e+00> : vector<27xf32>
    %33 = vector.multi_reduction <add>, %32, %cst_16 [1] : vector<27x27xf32> to vector<27xf32>
    %34 = vector.shape_cast %33 : vector<27xf32> to vector<27x1xf32>
    %35 = tpu.reciprocal %34 {approx = true} : vector<27x1xf32> -> vector<27x1xf32>
    %36 = vector.broadcast %35 : vector<27x1xf32> to vector<27x27xf32>
    %37 = arith.mulf %32, %36 : vector<27x27xf32>
    %38 = arith.truncf %37 : vector<27x27xf32> to vector<27x27xbf16>
    %cst_17 = arith.constant dense<0.000000e+00> : vector<27x8xf32>
    %39 = tpu.matmul %38, %26, %cst_17 {dimension_numbers = #tpu.dot_dimension_numbers<[1], [0], [0], [1], [0, 0, 1, 1], [], []>} : vector<27x27xbf16>, vector<27x8xbf16>, vector<27x8xf32> -> vector<27x8xf32>
    %40 = vector.extract_strided_slice %19 {offsets = [0, 8], sizes = [27, 8], strides = [1, 1]} : vector<27x32xbf16> to vector<27x8xbf16>
    %41 = vector.extract_strided_slice %21 {offsets = [0, 8], sizes = [27, 8], strides = [1, 1]} : vector<27x32xbf16> to vector<27x8xbf16>
    %42 = vector.extract_strided_slice %23 {offsets = [0, 8], sizes = [27, 8], strides = [1, 1]} : vector<27x32xbf16> to vector<27x8xbf16>
    %cst_18 = arith.constant dense<0.000000e+00> : vector<27x27xf32>
    %43 = tpu.matmul %40, %41, %cst_18 {dimension_numbers = #tpu.dot_dimension_numbers<[1], [1], [0], [0], [0, 0, 1, 0], [], []>} : vector<27x8xbf16>, vector<27x8xbf16>, vector<27x27xf32> -> vector<27x27xf32>
    %cst_19 = arith.constant dense<0xFF800000> : vector<27xf32>
    %44 = vector.multi_reduction <maximumf>, %43, %cst_19 [1] : vector<27x27xf32> to vector<27xf32>
    %45 = vector.shape_cast %44 : vector<27xf32> to vector<27x1xf32>
    %46 = vector.broadcast %45 : vector<27x1xf32> to vector<27x27xf32>
    %47 = arith.subf %43, %46 : vector<27x27xf32>
    %48 = math.exp %47 : vector<27x27xf32>
    %cst_20 = arith.constant dense<0.000000e+00> : vector<27xf32>
    %49 = vector.multi_reduction <add>, %48, %cst_20 [1] : vector<27x27xf32> to vector<27xf32>
    %50 = vector.shape_cast %49 : vector<27xf32> to vector<27x1xf32>
    %51 = tpu.reciprocal %50 {approx = true} : vector<27x1xf32> -> vector<27x1xf32>
    %52 = vector.broadcast %51 : vector<27x1xf32> to vector<27x27xf32>
    %53 = arith.mulf %48, %52 : vector<27x27xf32>
    %54 = arith.truncf %53 : vector<27x27xf32> to vector<27x27xbf16>
    %cst_21 = arith.constant dense<0.000000e+00> : vector<27x8xf32>
    %55 = tpu.matmul %54, %42, %cst_21 {dimension_numbers = #tpu.dot_dimension_numbers<[1], [0], [0], [1], [0, 0, 1, 1], [], []>} : vector<27x27xbf16>, vector<27x8xbf16>, vector<27x8xf32> -> vector<27x8xf32>
    %56 = vector.extract_strided_slice %19 {offsets = [0, 16], sizes = [27, 8], strides = [1, 1]} : vector<27x32xbf16> to vector<27x8xbf16>
    %57 = vector.extract_strided_slice %21 {offsets = [0, 16], sizes = [27, 8], strides = [1, 1]} : vector<27x32xbf16> to vector<27x8xbf16>
    %58 = vector.extract_strided_slice %23 {offsets = [0, 16], sizes = [27, 8], strides = [1, 1]} : vector<27x32xbf16> to vector<27x8xbf16>
    %cst_22 = arith.constant dense<0.000000e+00> : vector<27x27xf32>
    %59 = tpu.matmul %56, %57, %cst_22 {dimension_numbers = #tpu.dot_dimension_numbers<[1], [1], [0], [0], [0, 0, 1, 0], [], []>} : vector<27x8xbf16>, vector<27x8xbf16>, vector<27x27xf32> -> vector<27x27xf32>
    %cst_23 = arith.constant dense<0xFF800000> : vector<27xf32>
    %60 = vector.multi_reduction <maximumf>, %59, %cst_23 [1] : vector<27x27xf32> to vector<27xf32>
    %61 = vector.shape_cast %60 : vector<27xf32> to vector<27x1xf32>
    %62 = vector.broadcast %61 : vector<27x1xf32> to vector<27x27xf32>
    %63 = arith.subf %59, %62 : vector<27x27xf32>
    %64 = math.exp %63 : vector<27x27xf32>
    %cst_24 = arith.constant dense<0.000000e+00> : vector<27xf32>
    %65 = vector.multi_reduction <add>, %64, %cst_24 [1] : vector<27x27xf32> to vector<27xf32>
    %66 = vector.shape_cast %65 : vector<27xf32> to vector<27x1xf32>
    %67 = tpu.reciprocal %66 {approx = true} : vector<27x1xf32> -> vector<27x1xf32>
    %68 = vector.broadcast %67 : vector<27x1xf32> to vector<27x27xf32>
    %69 = arith.mulf %64, %68 : vector<27x27xf32>
    %70 = arith.truncf %69 : vector<27x27xf32> to vector<27x27xbf16>
    %cst_25 = arith.constant dense<0.000000e+00> : vector<27x8xf32>
    %71 = tpu.matmul %70, %58, %cst_25 {dimension_numbers = #tpu.dot_dimension_numbers<[1], [0], [0], [1], [0, 0, 1, 1], [], []>} : vector<27x27xbf16>, vector<27x8xbf16>, vector<27x8xf32> -> vector<27x8xf32>
    %72 = vector.extract_strided_slice %19 {offsets = [0, 24], sizes = [27, 8], strides = [1, 1]} : vector<27x32xbf16> to vector<27x8xbf16>
    %73 = vector.extract_strided_slice %21 {offsets = [0, 24], sizes = [27, 8], strides = [1, 1]} : vector<27x32xbf16> to vector<27x8xbf16>
    %74 = vector.extract_strided_slice %23 {offsets = [0, 24], sizes = [27, 8], strides = [1, 1]} : vector<27x32xbf16> to vector<27x8xbf16>
    %cst_26 = arith.constant dense<0.000000e+00> : vector<27x27xf32>
    %75 = tpu.matmul %72, %73, %cst_26 {dimension_numbers = #tpu.dot_dimension_numbers<[1], [1], [0], [0], [0, 0, 1, 0], [], []>} : vector<27x8xbf16>, vector<27x8xbf16>, vector<27x27xf32> -> vector<27x27xf32>
    %cst_27 = arith.constant dense<0xFF800000> : vector<27xf32>
    %76 = vector.multi_reduction <maximumf>, %75, %cst_27 [1] : vector<27x27xf32> to vector<27xf32>
    %77 = vector.shape_cast %76 : vector<27xf32> to vector<27x1xf32>
    %78 = vector.broadcast %77 : vector<27x1xf32> to vector<27x27xf32>
    %79 = arith.subf %75, %78 : vector<27x27xf32>
    %80 = math.exp %79 : vector<27x27xf32>
    %cst_28 = arith.constant dense<0.000000e+00> : vector<27xf32>
    %81 = vector.multi_reduction <add>, %80, %cst_28 [1] : vector<27x27xf32> to vector<27xf32>
    %82 = vector.shape_cast %81 : vector<27xf32> to vector<27x1xf32>
    %83 = tpu.reciprocal %82 {approx = true} : vector<27x1xf32> -> vector<27x1xf32>
    %84 = vector.broadcast %83 : vector<27x1xf32> to vector<27x27xf32>
    %85 = arith.mulf %80, %84 : vector<27x27xf32>
    %86 = arith.truncf %85 : vector<27x27xf32> to vector<27x27xbf16>
    %cst_29 = arith.constant dense<0.000000e+00> : vector<27x8xf32>
    %87 = tpu.matmul %86, %74, %cst_29 {dimension_numbers = #tpu.dot_dimension_numbers<[1], [0], [0], [1], [0, 0, 1, 1], [], []>} : vector<27x27xbf16>, vector<27x8xbf16>, vector<27x8xf32> -> vector<27x8xf32>
    %88 = tpu.concatenate %39, %55, %71, %87 in 1 : vector<27x8xf32>, vector<27x8xf32>, vector<27x8xf32>, vector<27x8xf32> -> vector<27x32xf32>
    %89 = arith.truncf %88 : vector<27x32xf32> to vector<27x32xbf16>
    %c0_30 = arith.constant 0 : index
    %c0_31 = arith.constant 0 : index
    %90 = vector.load %arg7[%c0_30, %c0_31] : memref<32x32xbf16, #tpu.memory_space<vmem>>, vector<32x32xbf16>
    %cst_32 = arith.constant dense<0.000000e+00> : vector<27x32xf32>
    %91 = tpu.matmul %89, %90, %cst_32 {dimension_numbers = #tpu.dot_dimension_numbers<[1], [0], [0], [1], [0, 0, 1, 1], [], []>} : vector<27x32xbf16>, vector<32x32xbf16>, vector<27x32xf32> -> vector<27x32xf32>
    %c0_33 = arith.constant 0 : index
    %c0_34 = arith.constant 0 : index
    %92 = vector.load %arg8[%c0_33, %c0_34] : memref<1x32xf32, #tpu.memory_space<vmem>>, vector<1x32xf32>
    %93 = vector.broadcast %92 : vector<1x32xf32> to vector<27x32xf32>
    %94 = arith.addf %91, %93 : vector<27x32xf32>
    %95 = arith.addf %9, %94 : vector<27x32xf32>
    %c0_35 = arith.constant 0 : index
    %c0_36 = arith.constant 0 : index
    %96 = vector.load %arg9[%c0_35, %c0_36] : memref<1x32xf32, #tpu.memory_space<vmem>>, vector<1x32xf32>
    %c0_37 = arith.constant 0 : index
    %c0_38 = arith.constant 0 : index
    %97 = vector.load %arg10[%c0_37, %c0_38] : memref<1x32xf32, #tpu.memory_space<vmem>>, vector<1x32xf32>
    %cst_39 = arith.constant dense<0.000000e+00> : vector<27xf32>
    %98 = vector.multi_reduction <add>, %95, %cst_39 [1] : vector<27x32xf32> to vector<27xf32>
    %99 = vector.shape_cast %98 : vector<27xf32> to vector<27x1xf32>
    %cst_40 = arith.constant 3.200000e+01 : f32
    %100 = vector.broadcast %cst_40 : f32 to vector<27x1xf32>
    %101 = arith.divf %99, %100 : vector<27x1xf32>
    %102 = vector.broadcast %101 : vector<27x1xf32> to vector<27x32xf32>
    %103 = arith.subf %95, %102 : vector<27x32xf32>
    %104 = arith.mulf %103, %103 : vector<27x32xf32>
    %cst_41 = arith.constant dense<0.000000e+00> : vector<27xf32>
    %105 = vector.multi_reduction <add>, %104, %cst_41 [1] : vector<27x32xf32> to vector<27xf32>
    %106 = vector.shape_cast %105 : vector<27xf32> to vector<27x1xf32>
    %cst_42 = arith.constant 3.200000e+01 : f32
    %107 = vector.broadcast %cst_42 : f32 to vector<27x1xf32>
    %108 = arith.divf %106, %107 : vector<27x1xf32>
    %109 = vector.broadcast %101 : vector<27x1xf32> to vector<27x32xf32>
    %110 = arith.subf %95, %109 : vector<27x32xf32>
    %cst_43 = arith.constant 9.99999974E-6 : f32
    %111 = vector.broadcast %cst_43 : f32 to vector<27x1xf32>
    %112 = arith.addf %108, %111 : vector<27x1xf32>
    %113 = math.rsqrt %112 : vector<27x1xf32>
    %114 = vector.broadcast %113 : vector<27x1xf32> to vector<27x32xf32>
    %115 = arith.mulf %110, %114 : vector<27x32xf32>
    %116 = vector.broadcast %96 : vector<1x32xf32> to vector<27x32xf32>
    %117 = arith.mulf %115, %116 : vector<27x32xf32>
    %118 = vector.broadcast %97 : vector<1x32xf32> to vector<27x32xf32>
    %119 = arith.addf %117, %118 : vector<27x32xf32>
    %120 = arith.truncf %119 : vector<27x32xf32> to vector<27x32xbf16>
    %c0_44 = arith.constant 0 : index
    %c0_45 = arith.constant 0 : index
    %121 = vector.load %arg11[%c0_44, %c0_45] : memref<32x512xbf16, #tpu.memory_space<vmem>>, vector<32x512xbf16>
    %cst_46 = arith.constant dense<0.000000e+00> : vector<27x512xf32>
    %122 = tpu.matmul %120, %121, %cst_46 {dimension_numbers = #tpu.dot_dimension_numbers<[1], [0], [0], [1], [0, 0, 1, 1], [], []>} : vector<27x32xbf16>, vector<32x512xbf16>, vector<27x512xf32> -> vector<27x512xf32>
    %c0_47 = arith.constant 0 : index
    %c0_48 = arith.constant 0 : index
    %123 = vector.load %arg12[%c0_47, %c0_48] : memref<1x512xf32, #tpu.memory_space<vmem>>, vector<1x512xf32>
    %124 = vector.broadcast %123 : vector<1x512xf32> to vector<27x512xf32>
    %125 = arith.addf %122, %124 : vector<27x512xf32>
    %cst_49 = arith.constant 0.000000e+00 : f32
    %126 = vector.broadcast %cst_49 : f32 to vector<27x512xf32>
    %127 = arith.maximumf %125, %126 : vector<27x512xf32>
    %128 = arith.truncf %127 : vector<27x512xf32> to vector<27x512xbf16>
    %c0_50 = arith.constant 0 : index
    %c0_51 = arith.constant 0 : index
    %129 = vector.load %arg13[%c0_50, %c0_51] : memref<512x32xbf16, #tpu.memory_space<vmem>>, vector<512x32xbf16>
    %cst_52 = arith.constant dense<0.000000e+00> : vector<27x32xf32>
    %130 = tpu.matmul %128, %129, %cst_52 {dimension_numbers = #tpu.dot_dimension_numbers<[1], [0], [0], [1], [0, 0, 1, 1], [], []>} : vector<27x512xbf16>, vector<512x32xbf16>, vector<27x32xf32> -> vector<27x32xf32>
    %c0_53 = arith.constant 0 : index
    %c0_54 = arith.constant 0 : index
    %131 = vector.load %arg14[%c0_53, %c0_54] : memref<1x32xf32, #tpu.memory_space<vmem>>, vector<1x32xf32>
    %132 = vector.broadcast %131 : vector<1x32xf32> to vector<27x32xf32>
    %133 = arith.addf %130, %132 : vector<27x32xf32>
    %134 = arith.addf %119, %133 : vector<27x32xf32>
    %c0_55 = arith.constant 0 : index
    %c0_56 = arith.constant 0 : index
    %135 = vector.load %arg15[%c0_55, %c0_56] : memref<1x32xf32, #tpu.memory_space<vmem>>, vector<1x32xf32>
    %c0_57 = arith.constant 0 : index
    %c0_58 = arith.constant 0 : index
    %136 = vector.load %arg16[%c0_57, %c0_58] : memref<1x32xf32, #tpu.memory_space<vmem>>, vector<1x32xf32>
    %cst_59 = arith.constant dense<0.000000e+00> : vector<27xf32>
    %137 = vector.multi_reduction <add>, %134, %cst_59 [1] : vector<27x32xf32> to vector<27xf32>
    %138 = vector.shape_cast %137 : vector<27xf32> to vector<27x1xf32>
    %cst_60 = arith.constant 3.200000e+01 : f32
    %139 = vector.broadcast %cst_60 : f32 to vector<27x1xf32>
    %140 = arith.divf %138, %139 : vector<27x1xf32>
    %141 = vector.broadcast %140 : vector<27x1xf32> to vector<27x32xf32>
    %142 = arith.subf %134, %141 : vector<27x32xf32>
    %143 = arith.mulf %142, %142 : vector<27x32xf32>
    %cst_61 = arith.constant dense<0.000000e+00> : vector<27xf32>
    %144 = vector.multi_reduction <add>, %143, %cst_61 [1] : vector<27x32xf32> to vector<27xf32>
    %145 = vector.shape_cast %144 : vector<27xf32> to vector<27x1xf32>
    %cst_62 = arith.constant 3.200000e+01 : f32
    %146 = vector.broadcast %cst_62 : f32 to vector<27x1xf32>
    %147 = arith.divf %145, %146 : vector<27x1xf32>
    %148 = vector.broadcast %140 : vector<27x1xf32> to vector<27x32xf32>
    %149 = arith.subf %134, %148 : vector<27x32xf32>
    %cst_63 = arith.constant 9.99999974E-6 : f32
    %150 = vector.broadcast %cst_63 : f32 to vector<27x1xf32>
    %151 = arith.addf %147, %150 : vector<27x1xf32>
    %152 = math.rsqrt %151 : vector<27x1xf32>
    %153 = vector.broadcast %152 : vector<27x1xf32> to vector<27x32xf32>
    %154 = arith.mulf %149, %153 : vector<27x32xf32>
    %155 = vector.broadcast %135 : vector<1x32xf32> to vector<27x32xf32>
    %156 = arith.mulf %154, %155 : vector<27x32xf32>
    %157 = vector.broadcast %136 : vector<1x32xf32> to vector<27x32xf32>
    %158 = arith.addf %156, %157 : vector<27x32xf32>
    %159 = arith.truncf %158 : vector<27x32xf32> to vector<27x32xbf16>
    %c0_64 = arith.constant 0 : index
    %c0_65 = arith.constant 0 : index
    %160 = vector.load %arg17[%c0_64, %c0_65] : memref<32x96xbf16, #tpu.memory_space<vmem>>, vector<32x96xbf16>
    %cst_66 = arith.constant dense<0.000000e+00> : vector<27x96xf32>
    %161 = tpu.matmul %159, %160, %cst_66 {dimension_numbers = #tpu.dot_dimension_numbers<[1], [0], [0], [1], [0, 0, 1, 1], [], []>} : vector<27x32xbf16>, vector<32x96xbf16>, vector<27x96xf32> -> vector<27x96xf32>
    %c0_67 = arith.constant 0 : index
    %c0_68 = arith.constant 0 : index
    %162 = vector.load %arg18[%c0_67, %c0_68] : memref<1x96xf32, #tpu.memory_space<vmem>>, vector<1x96xf32>
    %163 = vector.broadcast %162 : vector<1x96xf32> to vector<27x96xf32>
    %164 = arith.addf %161, %163 : vector<27x96xf32>
    %165 = vector.extract_strided_slice %164 {offsets = [0, 0], sizes = [27, 32], strides = [1, 1]} : vector<27x96xf32> to vector<27x32xf32>
    %cst_69 = arith.constant 0.353553385 : f32
    %166 = vector.broadcast %cst_69 : f32 to vector<27x32xf32>
    %167 = arith.mulf %165, %166 : vector<27x32xf32>
    %168 = arith.truncf %167 : vector<27x32xf32> to vector<27x32xbf16>
    %169 = vector.extract_strided_slice %164 {offsets = [0, 32], sizes = [27, 32], strides = [1, 1]} : vector<27x96xf32> to vector<27x32xf32>
    %170 = arith.truncf %169 : vector<27x32xf32> to vector<27x32xbf16>
    %171 = vector.extract_strided_slice %164 {offsets = [0, 64], sizes = [27, 32], strides = [1, 1]} : vector<27x96xf32> to vector<27x32xf32>
    %172 = arith.truncf %171 : vector<27x32xf32> to vector<27x32xbf16>
    %173 = vector.extract_strided_slice %168 {offsets = [0, 0], sizes = [27, 8], strides = [1, 1]} : vector<27x32xbf16> to vector<27x8xbf16>
    %174 = vector.extract_strided_slice %170 {offsets = [0, 0], sizes = [27, 8], strides = [1, 1]} : vector<27x32xbf16> to vector<27x8xbf16>
    %175 = vector.extract_strided_slice %172 {offsets = [0, 0], sizes = [27, 8], strides = [1, 1]} : vector<27x32xbf16> to vector<27x8xbf16>
    %cst_70 = arith.constant dense<0.000000e+00> : vector<27x27xf32>
    %176 = tpu.matmul %173, %174, %cst_70 {dimension_numbers = #tpu.dot_dimension_numbers<[1], [1], [0], [0], [0, 0, 1, 0], [], []>} : vector<27x8xbf16>, vector<27x8xbf16>, vector<27x27xf32> -> vector<27x27xf32>
    %cst_71 = arith.constant dense<0xFF800000> : vector<27xf32>
    %177 = vector.multi_reduction <maximumf>, %176, %cst_71 [1] : vector<27x27xf32> to vector<27xf32>
    %178 = vector.shape_cast %177 : vector<27xf32> to vector<27x1xf32>
    %179 = vector.broadcast %178 : vector<27x1xf32> to vector<27x27xf32>
    %180 = arith.subf %176, %179 : vector<27x27xf32>
    %181 = math.exp %180 : vector<27x27xf32>
    %cst_72 = arith.constant dense<0.000000e+00> : vector<27xf32>
    %182 = vector.multi_reduction <add>, %181, %cst_72 [1] : vector<27x27xf32> to vector<27xf32>
    %183 = vector.shape_cast %182 : vector<27xf32> to vector<27x1xf32>
    %184 = tpu.reciprocal %183 {approx = true} : vector<27x1xf32> -> vector<27x1xf32>
    %185 = vector.broadcast %184 : vector<27x1xf32> to vector<27x27xf32>
    %186 = arith.mulf %181, %185 : vector<27x27xf32>
    %187 = arith.truncf %186 : vector<27x27xf32> to vector<27x27xbf16>
    %cst_73 = arith.constant dense<0.000000e+00> : vector<27x8xf32>
    %188 = tpu.matmul %187, %175, %cst_73 {dimension_numbers = #tpu.dot_dimension_numbers<[1], [0], [0], [1], [0, 0, 1, 1], [], []>} : vector<27x27xbf16>, vector<27x8xbf16>, vector<27x8xf32> -> vector<27x8xf32>
    %189 = vector.extract_strided_slice %168 {offsets = [0, 8], sizes = [27, 8], strides = [1, 1]} : vector<27x32xbf16> to vector<27x8xbf16>
    %190 = vector.extract_strided_slice %170 {offsets = [0, 8], sizes = [27, 8], strides = [1, 1]} : vector<27x32xbf16> to vector<27x8xbf16>
    %191 = vector.extract_strided_slice %172 {offsets = [0, 8], sizes = [27, 8], strides = [1, 1]} : vector<27x32xbf16> to vector<27x8xbf16>
    %cst_74 = arith.constant dense<0.000000e+00> : vector<27x27xf32>
    %192 = tpu.matmul %189, %190, %cst_74 {dimension_numbers = #tpu.dot_dimension_numbers<[1], [1], [0], [0], [0, 0, 1, 0], [], []>} : vector<27x8xbf16>, vector<27x8xbf16>, vector<27x27xf32> -> vector<27x27xf32>
    %cst_75 = arith.constant dense<0xFF800000> : vector<27xf32>
    %193 = vector.multi_reduction <maximumf>, %192, %cst_75 [1] : vector<27x27xf32> to vector<27xf32>
    %194 = vector.shape_cast %193 : vector<27xf32> to vector<27x1xf32>
    %195 = vector.broadcast %194 : vector<27x1xf32> to vector<27x27xf32>
    %196 = arith.subf %192, %195 : vector<27x27xf32>
    %197 = math.exp %196 : vector<27x27xf32>
    %cst_76 = arith.constant dense<0.000000e+00> : vector<27xf32>
    %198 = vector.multi_reduction <add>, %197, %cst_76 [1] : vector<27x27xf32> to vector<27xf32>
    %199 = vector.shape_cast %198 : vector<27xf32> to vector<27x1xf32>
    %200 = tpu.reciprocal %199 {approx = true} : vector<27x1xf32> -> vector<27x1xf32>
    %201 = vector.broadcast %200 : vector<27x1xf32> to vector<27x27xf32>
    %202 = arith.mulf %197, %201 : vector<27x27xf32>
    %203 = arith.truncf %202 : vector<27x27xf32> to vector<27x27xbf16>
    %cst_77 = arith.constant dense<0.000000e+00> : vector<27x8xf32>
    %204 = tpu.matmul %203, %191, %cst_77 {dimension_numbers = #tpu.dot_dimension_numbers<[1], [0], [0], [1], [0, 0, 1, 1], [], []>} : vector<27x27xbf16>, vector<27x8xbf16>, vector<27x8xf32> -> vector<27x8xf32>
    %205 = vector.extract_strided_slice %168 {offsets = [0, 16], sizes = [27, 8], strides = [1, 1]} : vector<27x32xbf16> to vector<27x8xbf16>
    %206 = vector.extract_strided_slice %170 {offsets = [0, 16], sizes = [27, 8], strides = [1, 1]} : vector<27x32xbf16> to vector<27x8xbf16>
    %207 = vector.extract_strided_slice %172 {offsets = [0, 16], sizes = [27, 8], strides = [1, 1]} : vector<27x32xbf16> to vector<27x8xbf16>
    %cst_78 = arith.constant dense<0.000000e+00> : vector<27x27xf32>
    %208 = tpu.matmul %205, %206, %cst_78 {dimension_numbers = #tpu.dot_dimension_numbers<[1], [1], [0], [0], [0, 0, 1, 0], [], []>} : vector<27x8xbf16>, vector<27x8xbf16>, vector<27x27xf32> -> vector<27x27xf32>
    %cst_79 = arith.constant dense<0xFF800000> : vector<27xf32>
    %209 = vector.multi_reduction <maximumf>, %208, %cst_79 [1] : vector<27x27xf32> to vector<27xf32>
    %210 = vector.shape_cast %209 : vector<27xf32> to vector<27x1xf32>
    %211 = vector.broadcast %210 : vector<27x1xf32> to vector<27x27xf32>
    %212 = arith.subf %208, %211 : vector<27x27xf32>
    %213 = math.exp %212 : vector<27x27xf32>
    %cst_80 = arith.constant dense<0.000000e+00> : vector<27xf32>
    %214 = vector.multi_reduction <add>, %213, %cst_80 [1] : vector<27x27xf32> to vector<27xf32>
    %215 = vector.shape_cast %214 : vector<27xf32> to vector<27x1xf32>
    %216 = tpu.reciprocal %215 {approx = true} : vector<27x1xf32> -> vector<27x1xf32>
    %217 = vector.broadcast %216 : vector<27x1xf32> to vector<27x27xf32>
    %218 = arith.mulf %213, %217 : vector<27x27xf32>
    %219 = arith.truncf %218 : vector<27x27xf32> to vector<27x27xbf16>
    %cst_81 = arith.constant dense<0.000000e+00> : vector<27x8xf32>
    %220 = tpu.matmul %219, %207, %cst_81 {dimension_numbers = #tpu.dot_dimension_numbers<[1], [0], [0], [1], [0, 0, 1, 1], [], []>} : vector<27x27xbf16>, vector<27x8xbf16>, vector<27x8xf32> -> vector<27x8xf32>
    %221 = vector.extract_strided_slice %168 {offsets = [0, 24], sizes = [27, 8], strides = [1, 1]} : vector<27x32xbf16> to vector<27x8xbf16>
    %222 = vector.extract_strided_slice %170 {offsets = [0, 24], sizes = [27, 8], strides = [1, 1]} : vector<27x32xbf16> to vector<27x8xbf16>
    %223 = vector.extract_strided_slice %172 {offsets = [0, 24], sizes = [27, 8], strides = [1, 1]} : vector<27x32xbf16> to vector<27x8xbf16>
    %cst_82 = arith.constant dense<0.000000e+00> : vector<27x27xf32>
    %224 = tpu.matmul %221, %222, %cst_82 {dimension_numbers = #tpu.dot_dimension_numbers<[1], [1], [0], [0], [0, 0, 1, 0], [], []>} : vector<27x8xbf16>, vector<27x8xbf16>, vector<27x27xf32> -> vector<27x27xf32>
    %cst_83 = arith.constant dense<0xFF800000> : vector<27xf32>
    %225 = vector.multi_reduction <maximumf>, %224, %cst_83 [1] : vector<27x27xf32> to vector<27xf32>
    %226 = vector.shape_cast %225 : vector<27xf32> to vector<27x1xf32>
    %227 = vector.broadcast %226 : vector<27x1xf32> to vector<27x27xf32>
    %228 = arith.subf %224, %227 : vector<27x27xf32>
    %229 = math.exp %228 : vector<27x27xf32>
    %cst_84 = arith.constant dense<0.000000e+00> : vector<27xf32>
    %230 = vector.multi_reduction <add>, %229, %cst_84 [1] : vector<27x27xf32> to vector<27xf32>
    %231 = vector.shape_cast %230 : vector<27xf32> to vector<27x1xf32>
    %232 = tpu.reciprocal %231 {approx = true} : vector<27x1xf32> -> vector<27x1xf32>
    %233 = vector.broadcast %232 : vector<27x1xf32> to vector<27x27xf32>
    %234 = arith.mulf %229, %233 : vector<27x27xf32>
    %235 = arith.truncf %234 : vector<27x27xf32> to vector<27x27xbf16>
    %cst_85 = arith.constant dense<0.000000e+00> : vector<27x8xf32>
    %236 = tpu.matmul %235, %223, %cst_85 {dimension_numbers = #tpu.dot_dimension_numbers<[1], [0], [0], [1], [0, 0, 1, 1], [], []>} : vector<27x27xbf16>, vector<27x8xbf16>, vector<27x8xf32> -> vector<27x8xf32>
    %237 = tpu.concatenate %188, %204, %220, %236 in 1 : vector<27x8xf32>, vector<27x8xf32>, vector<27x8xf32>, vector<27x8xf32> -> vector<27x32xf32>
    %238 = arith.truncf %237 : vector<27x32xf32> to vector<27x32xbf16>
    %c0_86 = arith.constant 0 : index
    %c0_87 = arith.constant 0 : index
    %239 = vector.load %arg19[%c0_86, %c0_87] : memref<32x32xbf16, #tpu.memory_space<vmem>>, vector<32x32xbf16>
    %cst_88 = arith.constant dense<0.000000e+00> : vector<27x32xf32>
    %240 = tpu.matmul %238, %239, %cst_88 {dimension_numbers = #tpu.dot_dimension_numbers<[1], [0], [0], [1], [0, 0, 1, 1], [], []>} : vector<27x32xbf16>, vector<32x32xbf16>, vector<27x32xf32> -> vector<27x32xf32>
    %c0_89 = arith.constant 0 : index
    %c0_90 = arith.constant 0 : index
    %241 = vector.load %arg20[%c0_89, %c0_90] : memref<1x32xf32, #tpu.memory_space<vmem>>, vector<1x32xf32>
    %242 = vector.broadcast %241 : vector<1x32xf32> to vector<27x32xf32>
    %243 = arith.addf %240, %242 : vector<27x32xf32>
    %244 = arith.addf %158, %243 : vector<27x32xf32>
    %c0_91 = arith.constant 0 : index
    %c0_92 = arith.constant 0 : index
    %245 = vector.load %arg21[%c0_91, %c0_92] : memref<1x32xf32, #tpu.memory_space<vmem>>, vector<1x32xf32>
    %c0_93 = arith.constant 0 : index
    %c0_94 = arith.constant 0 : index
    %246 = vector.load %arg22[%c0_93, %c0_94] : memref<1x32xf32, #tpu.memory_space<vmem>>, vector<1x32xf32>
    %cst_95 = arith.constant dense<0.000000e+00> : vector<27xf32>
    %247 = vector.multi_reduction <add>, %244, %cst_95 [1] : vector<27x32xf32> to vector<27xf32>
    %248 = vector.shape_cast %247 : vector<27xf32> to vector<27x1xf32>
    %cst_96 = arith.constant 3.200000e+01 : f32
    %249 = vector.broadcast %cst_96 : f32 to vector<27x1xf32>
    %250 = arith.divf %248, %249 : vector<27x1xf32>
    %251 = vector.broadcast %250 : vector<27x1xf32> to vector<27x32xf32>
    %252 = arith.subf %244, %251 : vector<27x32xf32>
    %253 = arith.mulf %252, %252 : vector<27x32xf32>
    %cst_97 = arith.constant dense<0.000000e+00> : vector<27xf32>
    %254 = vector.multi_reduction <add>, %253, %cst_97 [1] : vector<27x32xf32> to vector<27xf32>
    %255 = vector.shape_cast %254 : vector<27xf32> to vector<27x1xf32>
    %cst_98 = arith.constant 3.200000e+01 : f32
    %256 = vector.broadcast %cst_98 : f32 to vector<27x1xf32>
    %257 = arith.divf %255, %256 : vector<27x1xf32>
    %258 = vector.broadcast %250 : vector<27x1xf32> to vector<27x32xf32>
    %259 = arith.subf %244, %258 : vector<27x32xf32>
    %cst_99 = arith.constant 9.99999974E-6 : f32
    %260 = vector.broadcast %cst_99 : f32 to vector<27x1xf32>
    %261 = arith.addf %257, %260 : vector<27x1xf32>
    %262 = math.rsqrt %261 : vector<27x1xf32>
    %263 = vector.broadcast %262 : vector<27x1xf32> to vector<27x32xf32>
    %264 = arith.mulf %259, %263 : vector<27x32xf32>
    %265 = vector.broadcast %245 : vector<1x32xf32> to vector<27x32xf32>
    %266 = arith.mulf %264, %265 : vector<27x32xf32>
    %267 = vector.broadcast %246 : vector<1x32xf32> to vector<27x32xf32>
    %268 = arith.addf %266, %267 : vector<27x32xf32>
    %269 = arith.truncf %268 : vector<27x32xf32> to vector<27x32xbf16>
    %c0_100 = arith.constant 0 : index
    %c0_101 = arith.constant 0 : index
    %270 = vector.load %arg23[%c0_100, %c0_101] : memref<32x512xbf16, #tpu.memory_space<vmem>>, vector<32x512xbf16>
    %cst_102 = arith.constant dense<0.000000e+00> : vector<27x512xf32>
    %271 = tpu.matmul %269, %270, %cst_102 {dimension_numbers = #tpu.dot_dimension_numbers<[1], [0], [0], [1], [0, 0, 1, 1], [], []>} : vector<27x32xbf16>, vector<32x512xbf16>, vector<27x512xf32> -> vector<27x512xf32>
    %c0_103 = arith.constant 0 : index
    %c0_104 = arith.constant 0 : index
    %272 = vector.load %arg24[%c0_103, %c0_104] : memref<1x512xf32, #tpu.memory_space<vmem>>, vector<1x512xf32>
    %273 = vector.broadcast %272 : vector<1x512xf32> to vector<27x512xf32>
    %274 = arith.addf %271, %273 : vector<27x512xf32>
    %cst_105 = arith.constant 0.000000e+00 : f32
    %275 = vector.broadcast %cst_105 : f32 to vector<27x512xf32>
    %276 = arith.maximumf %274, %275 : vector<27x512xf32>
    %277 = arith.truncf %276 : vector<27x512xf32> to vector<27x512xbf16>
    %c0_106 = arith.constant 0 : index
    %c0_107 = arith.constant 0 : index
    %278 = vector.load %arg25[%c0_106, %c0_107] : memref<512x32xbf16, #tpu.memory_space<vmem>>, vector<512x32xbf16>
    %cst_108 = arith.constant dense<0.000000e+00> : vector<27x32xf32>
    %279 = tpu.matmul %277, %278, %cst_108 {dimension_numbers = #tpu.dot_dimension_numbers<[1], [0], [0], [1], [0, 0, 1, 1], [], []>} : vector<27x512xbf16>, vector<512x32xbf16>, vector<27x32xf32> -> vector<27x32xf32>
    %c0_109 = arith.constant 0 : index
    %c0_110 = arith.constant 0 : index
    %280 = vector.load %arg26[%c0_109, %c0_110] : memref<1x32xf32, #tpu.memory_space<vmem>>, vector<1x32xf32>
    %281 = vector.broadcast %280 : vector<1x32xf32> to vector<27x32xf32>
    %282 = arith.addf %279, %281 : vector<27x32xf32>
    %283 = arith.addf %268, %282 : vector<27x32xf32>
    %c0_111 = arith.constant 0 : index
    %c0_112 = arith.constant 0 : index
    %284 = vector.load %arg27[%c0_111, %c0_112] : memref<1x32xf32, #tpu.memory_space<vmem>>, vector<1x32xf32>
    %c0_113 = arith.constant 0 : index
    %c0_114 = arith.constant 0 : index
    %285 = vector.load %arg28[%c0_113, %c0_114] : memref<1x32xf32, #tpu.memory_space<vmem>>, vector<1x32xf32>
    %cst_115 = arith.constant dense<0.000000e+00> : vector<27xf32>
    %286 = vector.multi_reduction <add>, %283, %cst_115 [1] : vector<27x32xf32> to vector<27xf32>
    %287 = vector.shape_cast %286 : vector<27xf32> to vector<27x1xf32>
    %cst_116 = arith.constant 3.200000e+01 : f32
    %288 = vector.broadcast %cst_116 : f32 to vector<27x1xf32>
    %289 = arith.divf %287, %288 : vector<27x1xf32>
    %290 = vector.broadcast %289 : vector<27x1xf32> to vector<27x32xf32>
    %291 = arith.subf %283, %290 : vector<27x32xf32>
    %292 = arith.mulf %291, %291 : vector<27x32xf32>
    %cst_117 = arith.constant dense<0.000000e+00> : vector<27xf32>
    %293 = vector.multi_reduction <add>, %292, %cst_117 [1] : vector<27x32xf32> to vector<27xf32>
    %294 = vector.shape_cast %293 : vector<27xf32> to vector<27x1xf32>
    %cst_118 = arith.constant 3.200000e+01 : f32
    %295 = vector.broadcast %cst_118 : f32 to vector<27x1xf32>
    %296 = arith.divf %294, %295 : vector<27x1xf32>
    %297 = vector.broadcast %289 : vector<27x1xf32> to vector<27x32xf32>
    %298 = arith.subf %283, %297 : vector<27x32xf32>
    %cst_119 = arith.constant 9.99999974E-6 : f32
    %299 = vector.broadcast %cst_119 : f32 to vector<27x1xf32>
    %300 = arith.addf %296, %299 : vector<27x1xf32>
    %301 = math.rsqrt %300 : vector<27x1xf32>
    %302 = vector.broadcast %301 : vector<27x1xf32> to vector<27x32xf32>
    %303 = arith.mulf %298, %302 : vector<27x32xf32>
    %304 = vector.broadcast %284 : vector<1x32xf32> to vector<27x32xf32>
    %305 = arith.mulf %303, %304 : vector<27x32xf32>
    %306 = vector.broadcast %285 : vector<1x32xf32> to vector<27x32xf32>
    %307 = arith.addf %305, %306 : vector<27x32xf32>
    %cst_120 = arith.constant dense<0.000000e+00> : vector<32xf32>
    %308 = vector.multi_reduction <add>, %307, %cst_120 [0] : vector<27x32xf32> to vector<32xf32>
    %309 = vector.shape_cast %308 : vector<32xf32> to vector<1x32xf32>
    %cst_121 = arith.constant 2.700000e+01 : f32
    %310 = vector.broadcast %cst_121 : f32 to vector<1x32xf32>
    %311 = arith.divf %309, %310 : vector<1x32xf32>
    %312 = arith.truncf %311 : vector<1x32xf32> to vector<1x32xbf16>
    %c0_122 = arith.constant 0 : index
    %c0_123 = arith.constant 0 : index
    %313 = vector.load %arg29[%c0_122, %c0_123] : memref<32x5xbf16, #tpu.memory_space<vmem>>, vector<32x5xbf16>
    %cst_124 = arith.constant dense<0.000000e+00> : vector<1x5xf32>
    %314 = tpu.matmul %312, %313, %cst_124 {dimension_numbers = #tpu.dot_dimension_numbers<[1], [0], [0], [1], [0, 0, 1, 1], [], []>} : vector<1x32xbf16>, vector<32x5xbf16>, vector<1x5xf32> -> vector<1x5xf32>
    %c0_125 = arith.constant 0 : index
    %c0_126 = arith.constant 0 : index
    %315 = vector.load %arg30[%c0_125, %c0_126] : memref<1x5xf32, #tpu.memory_space<vmem>>, vector<1x5xf32>
    %316 = arith.addf %314, %315 : vector<1x5xf32>
    %c0_127 = arith.constant 0 : index
    %c0_128 = arith.constant 0 : index
    %c0_129 = arith.constant 0 : index
    %317 = vector.load %arg31[%c0_127, %c0_128, %c0_129] : memref<1x1x5xf32, #tpu.memory_space<vmem>>, vector<1x1x5xf32>
    %318 = vector.shape_cast %317 : vector<1x1x5xf32> to vector<1x5xf32>
    %319 = vector.shape_cast %316 : vector<1x5xf32> to vector<1x1x5xf32>
    tpu.vector_store %arg31[%c0_127, %c0_128, %c0_129], %319 {strides = array<i32>} : memref<1x1x5xf32, #tpu.memory_space<vmem>>, vector<1x1x5xf32>,
    return
  }
  func.func @transform_0(%arg0: i32) -> (i32, i32, i32) {
    %c0_i32 = arith.constant 0 : i32
    %c0_i32_0 = arith.constant 0 : i32
    %c0_i32_1 = arith.constant 0 : i32
    return %arg0, %c0_i32, %c0_i32_0 : i32, i32, i32
  }
  func.func @transform_1(%arg0: i32) -> (i32, i32) {
    %c0_i32 = arith.constant 0 : i32
    %c0_i32_0 = arith.constant 0 : i32
    %c0_i32_1 = arith.constant 0 : i32
    return %c0_i32, %c0_i32_0 : i32, i32
  }
  func.func @transform_2(%arg0: i32) -> (i32, i32) {
    %c0_i32 = arith.constant 0 : i32
    %c0_i32_0 = arith.constant 0 : i32
    %c0_i32_1 = arith.constant 0 : i32
    return %c0_i32, %c0_i32_0 : i32, i32
  }
  func.func @transform_3(%arg0: i32) -> (i32, i32) {
    %c0_i32 = arith.constant 0 : i32
    %c0_i32_0 = arith.constant 0 : i32
    %c0_i32_1 = arith.constant 0 : i32
    return %c0_i32, %c0_i32_0 : i32, i32
  }
  func.func @transform_4(%arg0: i32) -> (i32, i32) {
    %c0_i32 = arith.constant 0 : i32
    %c0_i32_0 = arith.constant 0 : i32
    %c0_i32_1 = arith.constant 0 : i32
    return %c0_i32, %c0_i32_0 : i32, i32
  }
  func.func @transform_5(%arg0: i32) -> (i32, i32) {
    %c0_i32 = arith.constant 0 : i32
    %c0_i32_0 = arith.constant 0 : i32
    %c0_i32_1 = arith.constant 0 : i32
    return %c0_i32, %c0_i32_0 : i32, i32
  }
  func.func @transform_6(%arg0: i32) -> (i32, i32) {
    %c0_i32 = arith.constant 0 : i32
    %c0_i32_0 = arith.constant 0 : i32
    %c0_i32_1 = arith.constant 0 : i32
    return %c0_i32, %c0_i32_0 : i32, i32
  }
  func.func @transform_7(%arg0: i32) -> (i32, i32) {
    %c0_i32 = arith.constant 0 : i32
    %c0_i32_0 = arith.constant 0 : i32
    %c0_i32_1 = arith.constant 0 : i32
    return %c0_i32, %c0_i32_0 : i32, i32
  }
  func.func @transform_8(%arg0: i32) -> (i32, i32) {
    %c0_i32 = arith.constant 0 : i32
    %c0_i32_0 = arith.constant 0 : i32
    %c0_i32_1 = arith.constant 0 : i32
    return %c0_i32, %c0_i32_0 : i32, i32
  }
  func.func @transform_9(%arg0: i32) -> (i32, i32) {
    %c0_i32 = arith.constant 0 : i32
    %c0_i32_0 = arith.constant 0 : i32
    %c0_i32_1 = arith.constant 0 : i32
    return %c0_i32, %c0_i32_0 : i32, i32
  }
  func.func @transform_10(%arg0: i32) -> (i32, i32) {
    %c0_i32 = arith.constant 0 : i32
    %c0_i32_0 = arith.constant 0 : i32
    %c0_i32_1 = arith.constant 0 : i32
    return %c0_i32, %c0_i32_0 : i32, i32
  }
  func.func @transform_11(%arg0: i32) -> (i32, i32) {
    %c0_i32 = arith.constant 0 : i32
    %c0_i32_0 = arith.constant 0 : i32
    %c0_i32_1 = arith.constant 0 : i32
    return %c0_i32, %c0_i32_0 : i32, i32
  }
  func.func @transform_12(%arg0: i32) -> (i32, i32) {
    %c0_i32 = arith.constant 0 : i32
    %c0_i32_0 = arith.constant 0 : i32
    %c0_i32_1 = arith.constant 0 : i32
    return %c0_i32, %c0_i32_0 : i32, i32
  }
  func.func @transform_13(%arg0: i32) -> (i32, i32) {
    %c0_i32 = arith.constant 0 : i32
    %c0_i32_0 = arith.constant 0 : i32
    %c0_i32_1 = arith.constant 0 : i32
    return %c0_i32, %c0_i32_0 : i32, i32
  }
  func.func @transform_14(%arg0: i32) -> (i32, i32) {
    %c0_i32 = arith.constant 0 : i32
    %c0_i32_0 = arith.constant 0 : i32
    %c0_i32_1 = arith.constant 0 : i32
    return %c0_i32, %c0_i32_0 : i32, i32
  }
  func.func @transform_15(%arg0: i32) -> (i32, i32) {
    %c0_i32 = arith.constant 0 : i32
    %c0_i32_0 = arith.constant 0 : i32
    %c0_i32_1 = arith.constant 0 : i32
    return %c0_i32, %c0_i32_0 : i32, i32
  }
  func.func @transform_16(%arg0: i32) -> (i32, i32) {
    %c0_i32 = arith.constant 0 : i32
    %c0_i32_0 = arith.constant 0 : i32
    %c0_i32_1 = arith.constant 0 : i32
    return %c0_i32, %c0_i32_0 : i32, i32
  }
  func.func @transform_17(%arg0: i32) -> (i32, i32) {
    %c0_i32 = arith.constant 0 : i32
    %c0_i32_0 = arith.constant 0 : i32
    %c0_i32_1 = arith.constant 0 : i32
    return %c0_i32, %c0_i32_0 : i32, i32
  }
  func.func @transform_18(%arg0: i32) -> (i32, i32) {
    %c0_i32 = arith.constant 0 : i32
    %c0_i32_0 = arith.constant 0 : i32
    %c0_i32_1 = arith.constant 0 : i32
    return %c0_i32, %c0_i32_0 : i32, i32
  }
  func.func @transform_19(%arg0: i32) -> (i32, i32) {
    %c0_i32 = arith.constant 0 : i32
    %c0_i32_0 = arith.constant 0 : i32
    %c0_i32_1 = arith.constant 0 : i32
    return %c0_i32, %c0_i32_0 : i32, i32
  }
  func.func @transform_20(%arg0: i32) -> (i32, i32) {
    %c0_i32 = arith.constant 0 : i32
    %c0_i32_0 = arith.constant 0 : i32
    %c0_i32_1 = arith.constant 0 : i32
    return %c0_i32, %c0_i32_0 : i32, i32
  }
  func.func @transform_21(%arg0: i32) -> (i32, i32) {
    %c0_i32 = arith.constant 0 : i32
    %c0_i32_0 = arith.constant 0 : i32
    %c0_i32_1 = arith.constant 0 : i32
    return %c0_i32, %c0_i32_0 : i32, i32
  }
  func.func @transform_22(%arg0: i32) -> (i32, i32) {
    %c0_i32 = arith.constant 0 : i32
    %c0_i32_0 = arith.constant 0 : i32
    %c0_i32_1 = arith.constant 0 : i32
    return %c0_i32, %c0_i32_0 : i32, i32
  }
  func.func @transform_23(%arg0: i32) -> (i32, i32) {
    %c0_i32 = arith.constant 0 : i32
    %c0_i32_0 = arith.constant 0 : i32
    %c0_i32_1 = arith.constant 0 : i32
    return %c0_i32, %c0_i32_0 : i32, i32
  }
  func.func @transform_24(%arg0: i32) -> (i32, i32) {
    %c0_i32 = arith.constant 0 : i32
    %c0_i32_0 = arith.constant 0 : i32
    %c0_i32_1 = arith.constant 0 : i32
    return %c0_i32, %c0_i32_0 : i32, i32
  }
  func.func @transform_25(%arg0: i32) -> (i32, i32) {
    %c0_i32 = arith.constant 0 : i32
    %c0_i32_0 = arith.constant 0 : i32
    %c0_i32_1 = arith.constant 0 : i32
    return %c0_i32, %c0_i32_0 : i32, i32
  }
  func.func @transform_26(%arg0: i32) -> (i32, i32) {
    %c0_i32 = arith.constant 0 : i32
    %c0_i32_0 = arith.constant 0 : i32
    %c0_i32_1 = arith.constant 0 : i32
    return %c0_i32, %c0_i32_0 : i32, i32
  }
  func.func @transform_27(%arg0: i32) -> (i32, i32) {
    %c0_i32 = arith.constant 0 : i32
    %c0_i32_0 = arith.constant 0 : i32
    %c0_i32_1 = arith.constant 0 : i32
    return %c0_i32, %c0_i32_0 : i32, i32
  }
  func.func @transform_28(%arg0: i32) -> (i32, i32) {
    %c0_i32 = arith.constant 0 : i32
    %c0_i32_0 = arith.constant 0 : i32
    %c0_i32_1 = arith.constant 0 : i32
    return %c0_i32, %c0_i32_0 : i32, i32
  }
  func.func @transform_29(%arg0: i32) -> (i32, i32) {
    %c0_i32 = arith.constant 0 : i32
    %c0_i32_0 = arith.constant 0 : i32
    %c0_i32_1 = arith.constant 0 : i32
    return %c0_i32, %c0_i32_0 : i32, i32
  }
  func.func @transform_30(%arg0: i32) -> (i32, i32, i32) {
    %c0_i32 = arith.constant 0 : i32
    %c0_i32_0 = arith.constant 0 : i32
    %c0_i32_1 = arith.constant 0 : i32
    return %arg0, %c0_i32, %c0_i32_0 : i32, i32, i32
  }
}

</mosaic_0001>

<bundles_post_ra>
// kernel: _lambda_.1
= control target key start
LH: loop header
LB: loop body
LE: loop exit
PB: predicated region body
PF: predicated region fallthrough
CT: control target
= control target key end

     0   :  { %s5630_s6 = smov 1   ;;  %s5631_s10 = smov 2   ;;  %s6550_s0 = inlined_call_operand.smem [shape: u32[31], index: -1, kind: input, shape index: {}] }
   0x1   :  { %s5690_s5 = sld [smem:[%s6550_s0]]   ;;  %s5632_s14 = smov 3  }
   0x2   :  { %s5695_s9 = sld [smem:[%s6550_s0 + %s5630_s6]]   ;;  %s5633_s18 = smov 4  }
   0x3   :  { %s5700_s13 = sld [smem:[%s6550_s0 + %s5631_s10]]   ;;  %s5634_s22 = smov 5  }
   0x4   :  { %s5705_s17 = sld [smem:[%s6550_s0 + %s5632_s14]]   ;;  %s5635_s26 = smov 6  }
   0x5   :  { %s5710_s21 = sld [smem:[%s6550_s0 + %s5633_s18]]   ;;  %s5636_s30 = smov 7  }
   0x6   :  { %s5715_s25 = sld [smem:[%s6550_s0 + %s5634_s22]]   ;;  %s5637_s4 = smov 8  }
   0x7   :  { %6582 = sst [smem:[#allocation8_spill]] %s5690_s5  ;;  %s5638_s10 = smov 9  }
   0x8   :  { %s5720_s29 = sld [smem:[%s6550_s0 + %s5635_s26]]   ;;  %s5639_s15 = smov 10  }
   0x9   :  { %s5725_s3 = sld [smem:[%s6550_s0 + %s5636_s30]]   ;;  %s5640_s20 = smov 11  }
   0xa   :  { %s5730_s8 = sld [smem:[%s6550_s0 + %s5637_s4]]   ;;  %s5641_s26 = smov 12  }
   0xb   :  { %s5735_s14 = sld [smem:[%s6550_s0 + %s5638_s10]]   ;;  %s5642_s1 = smov 13  }
   0xc   :  { %s5740_s19 = sld [smem:[%s6550_s0 + %s5639_s15]]   ;;  %s5643_s7 = smov 14  }
   0xd   :  { %s5745_s24 = sld [smem:[%s6550_s0 + %s5640_s20]]   ;;  %s5644_s15 = smov 15  }
   0xe   :  { %s5750_s30 = sld [smem:[%s6550_s0 + %s5641_s26]]   ;;  %s5645_s22 = smov 16  }
   0xf   :  { %6583 = sst [smem:[#allocation9_spill]] %s5725_s3  ;;  %s5646_s28 = smov 17  }
  0x10   :  { %s5755_s6 = sld [smem:[%s6550_s0 + %s5642_s1]]  }
  0x11   :  { %s5760_s12 = sld [smem:[%s6550_s0 + %s5643_s7]]   ;;  %s5647_s7 = smov 18  }
  0x12   :  { %s5765_s20 = sld [smem:[%s6550_s0 + %s5644_s15]]   ;;  %s5648_s15 = smov 19  }
  0x13   :  { %s5770_s27 = sld [smem:[%s6550_s0 + %s5645_s22]]   ;;  %s5649_s22 = smov 20  }
  0x14   :  { %s5775_s4 = sld [smem:[%s6550_s0 + %s5646_s28]]   ;;  %s5650_s28 = smov 21  }
  0x16   :  { %6584 = sst [smem:[#allocation10_spill]] %s5755_s6 }
  0x17   :  { %6585 = sst [smem:[#allocation11_spill]] %s5760_s12 }
  0x18   :  { %6586 = sst [smem:[#allocation12_spill]] %s5765_s20 }
  0x19   :  { %6587 = sst [smem:[#allocation13_spill]] %s5770_s27 }
  0x1a   :  { %6588 = sst [smem:[#allocation14_spill]] %s5775_s4 }
  0x1b   :  { %s5780_s12 = sld [smem:[%s6550_s0 + %s5647_s7]]   ;;  %s5651_s7 = smov 22  }
  0x1c   :  { %s5785_s20 = sld [smem:[%s6550_s0 + %s5648_s15]]   ;;  %s5652_s15 = smov 23  }
  0x1d   :  { %s5790_s27 = sld [smem:[%s6550_s0 + %s5649_s22]]   ;;  %s5653_s22 = smov 24  }
  0x1e   :  { %s5795_s4 = sld [smem:[%s6550_s0 + %s5650_s28]]   ;;  %s5654_s28 = smov 25  }
  0x21   :  { %6589 = sst [smem:[#allocation15_spill]] %s5780_s12 }
  0x22   :  { %6590 = sst [smem:[#allocation16_spill]] %s5785_s20 }
  0x23   :  { %6591 = sst [smem:[#allocation17_spill]] %s5790_s27 }
  0x24   :  { %6592 = sst [smem:[#allocation18_spill]] %s5795_s4 }
  0x25   :  { %s5800_s12 = sld [smem:[%s6550_s0 + %s5651_s7]]   ;;  %s5655_s7 = smov 26  }
  0x26   :  { %s5805_s20 = sld [smem:[%s6550_s0 + %s5652_s15]]   ;;  %s5656_s15 = smov 27  }
  0x27   :  { %s5810_s27 = sld [smem:[%s6550_s0 + %s5653_s22]]   ;;  %s5657_s22 = smov 28  }
  0x28   :  { %s5815_s4 = sld [smem:[%s6550_s0 + %s5654_s28]]   ;;  %s5658_s28 = smov 29  }
  0x29   :  { %s5830_s6 = sld [smem:[%s6550_s0 + %s5657_s22]]  }
  0x2b   :  { %6593 = sst [smem:[#allocation19_spill]] %s5800_s12 }
  0x2c   :  { %6594 = sst [smem:[#allocation20_spill]] %s5805_s20 }
  0x2d   :  { %s5820_s12 = sld [smem:[%s6550_s0 + %s5655_s7]]   ;;  %s5659_s7 = smov 30  }
  0x2e   :  { %6595 = sst [smem:[#allocation21_spill]] %s5815_s4 }
  0x2f   :  { %s5825_s20 = sld [smem:[%s6550_s0 + %s5656_s15]]  }
  0x30   :  { %s5835_s4 = sld [smem:[%s6550_s0 + %s5658_s28]]  }
  0x33   :  { %6596 = sst [smem:[#allocation22_spill]] %s5820_s12 }
  0x34   :  { %s5840_s12 = sld [smem:[%s6550_s0 + %s5659_s7]]  }
  0x36   :  { %6597 = sst [smem:[#allocation23_spill]] %s5835_s4 }
  0x37   :  { %66 = vsyncpa [#allocation3], 0 }
  0x38   :  { %67 = vsyncpa [#allocation4], 0 }
  0x39   :  { %69 = vsyncpa [#allocation4 + $0x1], 0  ;;  %s5842_s15 = smov 0   ;;  %s5844_s16 = smov 0  }
  0x3a   :  { %s5846_s18 = smov 0   ;;  %s5848_s22 = smov 0  }
  0x3b LB: > { %6598 = sst [smem:[#allocation24_spill]] %s5624_s18  ;;  %s5863_s0 = sadd.s32 4294967295, %s5628_s22   ;;  %s5628_s22 = sphi %s5848_s22, %s6638_s22   ;;  %s5624_s18 = sphi %s5846_s18, %s6640_s18   ;;  %s5620_s16 = sphi %s5844_s16, %s6642_s16   ;;  %s5616_s15 = sphi %s5842_s15, %s6641_s15  }
  0x3c   : > { %s4558_s23 = sadd.s32 4294967294, %s5628_s22   ;;  %s5867_s26 = sadd.s32 1, %s5628_s22  }
  0x3d   : > { %6599 = sst [smem:[#allocation25_spill]] %s5867_s26  ;;  %s717_s28 = sadd.s32 1, %s5624_s18 }
  0x3e   : > { %s714_s1 = ssub.s32 %s5628_s22, %s5867_s26  ;;  %p727_p0 = scmp.ne.s32.totalorder %s5624_s18, %s5620_s16 }
  0x3f   : > { %p715_p1 = scmp.eq.s32.totalorder %s714_s1, 0  ;;  %p728_p2 = scmp.eq.s32.totalorder %s5863_s0, 1 }
  0x40   : > { %p733_p3 = scmp.ne.s32.totalorder %s5620_s16, %s5616_s15  ;;  %p734_p4 = scmp.eq.s32.totalorder %s4558_s23, 1 }
  0x41   : > { %s5878_s2 = scalar_select %p715_p1, %s5624_s18, %s717_s28  }
  0x42   : > { %p5880_p5 = por %p728_p2, %p727_p0  ;;  %p5884_p6 = por %p734_p4, %p733_p3 }
  0x43   : > { %6600 = sst [smem:[#allocation26_spill]] %s5878_s2  ;;  %p4559_p7 = scmp.ge.s32.totalorder %s5628_s22, 1 }
  0x44   : > { %s6601_s7 = scalar_select %p5880_p5, 1, 0 }
  0x45   : > { %s6602_s10 = scalar_select %p5884_p6, 1, 0 }
  0x46   : > { %p741_p8 = scmp.lt.s32.totalorder %s5628_s22, 3  ;;  %p6557_p9 = scmp.eq.s32.totalorder %s5863_s0, 0 }
  0x47   : > { %6603 = sst [smem:[#allocation27_spill]] %s6602_s10  ;;  %s5660_s23 = smov [#allocation2]  }
  0x48   : > { %p5891_p10 = pnand %p4559_p7, %p741_p8  ;;  %s822_s28 = sshll.u32 %s5660_s23, 4  ;;  %s823_s28 = int_to_ptr.vmem [resolvable:$true] %s822_s28 }
  0x49   : > { %s5534_s2 = scalar_lea.hbm %s5810_s27, 4096 }
  0x4a   : > { %s6604_s11 = scalar_select %p5891_p10, 1, 0 }
  0x4b   : > { %p5121_p11 = pneg %p5891_p10  ;;  %p5535_p13 = scmp.ne.s32.totalorder %s5810_s27, %s5534_s2 }
  0x4c   : > { %p5541_p3 = scmp.lt.u32.totalorder %s5534_s2, %s5810_s27 }
  0x4d   : > { %p5899_p12 = pnand %p6557_p9, %p5121_p11 }
  0x4f   : > { %p5536_p0 = pneg %p5899_p12 }
  0x51   : > { %p5537_p1 = pnand %p5536_p0, %p5535_p13 }
  0x53   : > { %p5538_p2 = pneg %p5537_p1 }
  0x55   : > { %p5543_p4 = pnand %p5541_p3, %p5538_p2 }
  0x57   : > { %5546 = shalt.err (!%p5543_p4)
}
  0x58   : > { %s5547_s18 = scalar_lea.vmem %s823_s28, 4096  ;;  %p5555_p5 = scmp.lt.s32.totalorder %s823_s28, %s823_s28 }
  0x59   : > { %p5548_p7 = scmp.ne.s32.totalorder %s823_s28, %s5547_s18  ;;  %p5556_p10 = scmp.lt.s32.totalorder %s5547_s18, %s5547_s18 }
  0x5b   : > { %p5550_p8 = pnand %p5548_p7, %p5536_p0  ;;  %p5557_p11 = por %p5556_p10, %p5555_p5 }
  0x5d   : > { %p5551_p6 = pneg %p5550_p8 }
  0x5f   : > { %p5558_p9 = pnand %p5557_p11, %p5551_p6 }
  0x61   : > { %5561 = shalt.err (!%p5558_p9)
}
  0x62   : > { %s5661_s23 = smov 64   ;;  %s5662_s26 = smov 4  }
  0x63   : > { %5124 = dma.hbm_to_vmem [thread:$0]  (!%p5899_p12), %s5810_s27, 4096, %s823_s28, [#allocation3], %s5661_s23, %s5661_s23, %s5662_s26  }
  0x64   : > { %p6606_p13 = scmp.ne.s32.totalorder %s6604_s11, 0 }
  0x65   : > { %p6607_p1 = scmp.eq.s32.totalorder (!%p6606_p13), %s5863_s0, 0 }
  0x66   : > { %861 = sbr.rel (%p6606_p13) target bundleno = 8498 (0x2132), region = 140 }
  0x6d   : > { %5607 = dma.done.wait (%p6607_p1), [#allocation3], 4096   ;;  %p6608_p0 = pmov %p6607_p1 }
  0x6e   : > { %s6609_s5 = sld [smem:[#allocation8_spill]]  ;;  %p938_p5 = scmp.lt.s32.totalorder %s5863_s0, 1  ;;  %v5275_v0 = vld [vmem:[%s5695_s9] sm:$0xff]   ;;  %vm965_vm0 = vcmask 130048   ;;  %v5277_v8 = vld [vmem:[%s5710_s21 + $0x8] sm:$0xff]   ;;  %v1023_v20 = vld [vmem:[%s5705_s17 + $0x10] sm:$0xff] }
  0x6f   : > { %5609 = vsyncadd (%p6608_p0), [#allocation3], 4294963200  ;;  %4925 = vmatprep.subr.bf16.mxu0 %v5275_v0  ;;  %v5276_v7 = vld [vmem:[%s5710_s21] sm:$0xff]   ;;  %v1024_v14 = vld [vmem:[%s5705_s17 + $0x18] sm:$0x7]  ;;  %vm1054_vm1 = vcmask 261120  }
  0x70   : > { %s939_s18 = scalar_select %p938_p5, %s5863_s0, 1  ;;  %4926 = vmatpush3.bf16.msra.mxu0 %v5275_v0  ;;  %4931 = vmatprep.subr.bf16.mxu1 %v5276_v7  ;;  %v4566_v9 = vld [vmem:[%s5700_s13] ss:$0 sm:$0xff]  ;;  %v1022_v19 = vld [vmem:[%s5705_s17 + $0x8] sm:$0xff]  ;;  %vm1124_vm2 = vcmask 64512   ;;  %vm1186_vm3 = vcmask 220160  }
  0x71   : > { %4932 = vmatpush3.bf16.msra.mxu1 %v5276_v7  ;;  %v1021_v16 = vld [vmem:[%s5705_s17] sm:$0xff]  ;;  %s5663_s26 = smov 96   ;;  %vm1196_vm4 = vcmask 215040   ;;  %vm1245_vm5 = vcmask 1044480   ;;  %vm1246_vm6 = vcmask 1045504   ;;  %v5665_v0 = vmov 65535  }
  0x72   : > { %s4726_s2 = sshll.u32 %s939_s18, 5  ;;  %4933 = vmatprep.subr.bf16.mxu1 %v5277_v8  ;;  %v4570_v28 = vld [vmem:[%s5715_s25] ss:$0 sm:$0xff]  ;;  %s5666_s11 = smov 88   ;;  %vm1893_vm7 = vcmask 195584   ;;  %vm1993_vm8 = vcmask 256000  }
  0x73   : > { %s5667_s28 = smov 120   ;;  %s6579_s1 = smov 56   ;;  %vm5680_vm9 = vmmov 0   ;;  %vm4446_vm10 = vcmask 32768  }
  0x74   : > { %s942_s10 = scalar_lea.vmem %s6609_s5, %s4726_s2  ;;  %s6563_s23 = smov 80  }
  0x75   : > { %v944_v1 = vld [vmem:[%s942_s10] sm:$0xff]  ;;  %v945_v2 = vld [vmem:[%s942_s10 + $0x8] sm:$0xff]  ;;  %v946_v3 = vld [vmem:[%s942_s10 + $0x10] sm:$0xff]  ;;  %4934 = vmatpush3.bf16.msra.mxu1 %v5277_v8  ;;  %s6561_s18 = smov 112   ;;  %s6569_s2 = smov 48  }
  0x76   : > { %v948_v4 = vpack.c.bf16 %v945_v2, %v944_v1  ;;  %v947_v5 = vld [vmem:[%s942_s10 + $0x18] sm:$0x7]  ;;  %s5664_s10 = smov 64   ;;  %v1247_v1 = vsel %vm1245_vm5, 4294967295, %v5665_v0  ;;  %s6610_s3 = sld [smem:[#allocation9_spill]] }
  0x77   : > { %v949_v6 = vpack.c.bf16 %v947_v5, %v946_v3  ;;  %v5973_v5 = vsel %vm1246_vm6, %v1247_v1, 0  ;;  %s6634_s4 = sld [smem:[#allocation23_spill]]  ;;  %p6635_p9 = scmp.ne.s32.totalorder %s6601_s7, 0 }
  0x78   : > { %4927 = vmatprep.mubr.msk.bf16.mxu0 %vm965_vm0, %v948_v4 }
  0x79   : > { %4928 = vmatmul.mubr.msk.bf16.vlgmr.msra.gmra.mrb[0].mxu0 %vm965_vm0, %v949_v6 }
 0x14c   : > { %v4929_v10 = vpop.f32.mrb[0].mxu0 }
 0x14d   : > { %v1006_v11 = vpop.f32.mrb[1].mxu0  ;;  %v1015_v15 = vadd.f32 %v4929_v10, %v4566_v9 }
 0x14e   : > { %v1007_v12 = vadd.f32 %v4566_v9, %v1006_v11  ;;  %v4930_v13 = vpop.f32.mrb[2].mxu0 }
 0x14f   : > { %v1018_v17 = vadd.f32 %v4930_v13, %v4566_v9  ;;  %v1009_v18 = vpop.f32.mrb[3].mxu0  ;;  %v5936_v25 = vadd.f32 %v1023_v20, %v1015_v15 }
 0x150   : > { %v1010_v21 = vadd.f32 %v4566_v9, %v1009_v18  ;;  %v5932_v23 = vadd.f32 %v1021_v16, %v1007_v12 }
 0x151   : > { %v5930_v22 = vadd.f32 %v1024_v14, %v1018_v17 }
 0x152   : > { %v5934_v24 = vadd.f32 %v1022_v19, %v1010_v21 }
 0x153   : > { %v1030_v27 = vpack.c.bf16 %v5930_v22, %v5936_v25 }
 0x154   : > { %v1029_v26 = vpack.c.bf16 %v5934_v24, %v5932_v23 }
 0x156   : > { %4935 = vmatprep.mubr.msk.bf16.mxu1 %vm1054_vm1, %v1029_v26 }
 0x157   : > { %4936 = vmatmul.mubr.msk.bf16.vlgmr.msra.gmra.mrb[0].mxu1 %vm1054_vm1, %v1030_v27 }
 0x22a   : > { %v4937_v29 = vpop.f32.mrb[0].mxu1 }
 0x22b   : > { %v1104_v30 = vadd.f32 %v4937_v29, %v4570_v28  ;;  %v1095_v31 = vpop.f32.mrb[1].mxu1 }
 0x22c   : > { %v1096_v32 = vadd.f32 %v4570_v28, %v1095_v31  ;;  %v4938_v33 = vpop.f32.mrb[2].mxu1 }
 0x22d   : > { %v1107_v34 = vadd.f32 %v4938_v33, %v4570_v28  ;;  %v1098_v35 = vpop.f32.mrb[3].mxu1  ;;  %v1112_v37 = vmul.f32 0.35355338, %v1104_v30 }
 0x22e   : > { %v1099_v36 = vadd.f32 %v4570_v28, %v1098_v35  ;;  %v1110_v40 = vmul.f32 0.35355338, %v1096_v32 }
 0x22f   : > { %v1113_v38 = vmul.f32 0.35355338, %v1107_v34  ;;  %v5945_v39 = vpack.c.bf16 %v1107_v34, %v1104_v30 }
 0x230   : > { %v1111_v41 = vmul.f32 0.35355338, %v1099_v36  ;;  %v5947_v42 = vpack.c.bf16 %v1099_v36, %v1096_v32 }
 0x231   : > { %v5949_v43 = vpack.c.bf16 %v1113_v38, %v1112_v37 }
 0x232   : > { %v5951_v44 = vpack.c.bf16 %v1111_v41, %v1110_v40  ;;  %1120 = vrot.lane.b32.xlu0 %v5947_v42, %s5663_s26 }
 0x234   : > { %4943 = vmatprep.mubr.msk.bf16.mxu0 %vm1124_vm2, %v5951_v44 }
 0x236   : > { %1122 = vrot.lane.b32.xlu0 %v5945_v39, %s5663_s26 }
 0x2a4   : > { %v1121_v45 = vpop.permute.xlu0 %1120 }
 0x2a5   : > { %5099 = vmatprep.subr.msk.bf16.mxu0 %vm1124_vm2, %v1121_v45  ;;  %v1132_v46 = vsel %vm1124_vm2, %v1121_v45, 0 }
 0x2a6   : > { %4940 = vmatpush3.bf16.xpose.msra.mxu0 %v1132_v46 }
 0x2a8   : > { %v1123_v47 = vpop.permute.xlu0 %1122 }
 0x2a9   : > { %5100 = vmatprep.subr.msk.bf16.mxu0 %vm1124_vm2, %v1123_v47  ;;  %v1135_v48 = vsel %vm1124_vm2, %v1123_v47, 0 }
 0x2ae   : > { %4942 = vmatpush3.bf16.xpose.msra.mxu0 %v1135_v48 }
 0x2b5   : > { %4944 = vmatmul.mubr.msk.bf16.vlgmr.msra.gmra.mrb[4].mxu0 %vm1124_vm2, %v5949_v43 }
 0x388   : > { %v4945_v49 = vpop.f32.mrb[4].mxu0 }
 0x389   : > { %v1171_v50 = vpop.f32.mrb[5].mxu0  ;;  %v1193_v51 = vsel %vm1186_vm3, %v4945_v49, -inf }
 0x38a   : > { %1194 = vmax.xlane.f32.xlu0 %v1193_v51  ;;  %v4946_v52 = vpop.f32.mrb[6].mxu0  ;;  %v1187_v53 = vsel %vm1186_vm3, %v1171_v50, -inf }
 0x38b   : > { %1188 = vmax.xlane.f32.xlu1 %v1187_v53  ;;  %v1174_v54 = vpop.f32.mrb[7].mxu0  ;;  %v1197_v56 = vsel %vm1196_vm4, %v4946_v52, -inf }
 0x38c   : > { %v1190_v55 = vsel %vm1186_vm3, %v1174_v54, -inf }
 0x38f   : > { %1191 = vmax.xlane.f32.xlu1 %v1190_v55 }
 0x393   : > { %1198 = vmax.xlane.f32.xlu1 %v1197_v56 }
 0x3a0   : > { %1236 = vrot.lane.b32.xlu0 %v5945_v39, %s5664_s10 }
 0x3a4   : > { %1234 = vrot.lane.b32.xlu1 %v5947_v42, %s5664_s10 }
 0x417   : > { %v1195_v57 = vpop.xlane.xlu0 %1194 }
 0x418   : > { %v1202_v58 = vsub.f32 %v4945_v49, %v1195_v57  ;;  %v1189_v59 = vpop.xlane.xlu1 %1188 }
 0x419   : > { %v1200_v60 = vsub.f32 %v1171_v50, %v1189_v59 }
 0x41a   : > { %v1208_v61 = vmul.f32 1.442695, %v1202_v58 }
 0x41b   : > { %v1204_v62 = vmul.f32 1.442695, %v1200_v60  ;;  %v1237_v6 = vpop.permute.xlu0 %1236 }
 0x41c   : > { %5374 = vpow2.f32 %v1208_v61  ;;  %v1192_v63 = vpop.xlane.xlu1 %1191  ;;  %v1250_v10 = vand.u32 %v5973_v5, %v1237_v6 }
 0x41d   : > { %5376 = vpow2.f32 %v1204_v62  ;;  %v1201_v2 = vsub.f32 %v1174_v54, %v1192_v63 }
 0x41f   : > { %v1206_v7 = vmul.f32 1.442695, %v1201_v2 }
 0x420   : > { %v1199_v3 = vpop.xlane.xlu1 %1198 }
 0x421   : > { %v1203_v4 = vsub.f32 %v4946_v52, %v1199_v3 }
 0x423   : > { %v1210_v8 = vmul.f32 1.442695, %v1203_v4 }
 0x424   : > { %v1235_v9 = vpop.permute.xlu1 %1234 }
 0x425   : > { %5378 = vpow2.f32 %v1210_v8  ;;  %4947 = vmatprep.subr.bf16.mxu1 %v1235_v9 }
 0x426   : > { %v5375_v11 = vpop.eup %5374  ;;  %4948 = vmatpush3.bf16.msra.mxu1 %v1235_v9  ;;  %5380 = vpow2.f32 %v1206_v7 }
 0x427   : > { %4949 = vmatprep.subr.bf16.mxu1 %v1250_v10  ;;  %v1218_v12 = vsel %vm1186_vm3, %v5375_v11, 0.0  ;;  %v5377_v13 = vpop.eup %5376 }
 0x428   : > { %1219 = vadd.xlane.f32.xlu1 %v1218_v12  ;;  %v1212_v14 = vsel %vm1186_vm3, %v5377_v13, 0.0 }
 0x42a   : > { %4950 = vmatpush3.bf16.msra.mxu1 %v1250_v10 }
 0x42c   : > { %1213 = vadd.xlane.f32.xlu1 %v1212_v14 }
 0x42f   : > { %v5379_v15 = vpop.eup %5378 }
 0x430   : > { %v1221_v16 = vsel %vm1196_vm4, %v5379_v15, 0.0  ;;  %v5381_v17 = vpop.eup %5380 }
 0x431   : > { %1222 = vadd.xlane.f32.xlu1 %v1221_v16  ;;  %v1215_v18 = vsel %vm1186_vm3, %v5381_v17, 0.0 }
 0x435   : > { %1216 = vadd.xlane.f32.xlu1 %v1215_v18 }
 0x446   : > { %1307 = vrot.lane.b32.xlu1 %v5947_v42, %s5666_s11 }
 0x44a   : > { %1309 = vrot.lane.b32.xlu1 %v5945_v39, %s5666_s11 }
 0x44e   : > { %1303 = vrot.lane.b32.xlu1 %v5951_v44, %s5667_s28 }
 0x452   : > { %1305 = vrot.lane.b32.xlu1 %v5949_v43, %s5667_s28 }
 0x4b5   : > { %v1220_v19 = vpop.xlane.xlu1 %1219 }
 0x4b9   : > { %v1214_v20 = vpop.xlane.xlu1 %1213 }
 0x4be   : > { %v1223_v21 = vpop.xlane.xlu1 %1222 }
 0x4bf   : > { %5382 = vrcp.f32 %v1223_v21 }
 0x4c0   : > { %5384 = vrcp.f32 %v1214_v20 }
 0x4c1   : > { %5386 = vrcp.f32 %v1220_v19 }
 0x4c2   : > { %v1217_v26 = vpop.xlane.xlu1 %1216 }
 0x4c3   : > { %5388 = vrcp.f32 %v1217_v26 }
 0x4c6   : > { %v1308_v27 = vpop.permute.xlu1 %1307 }
 0x4c7   : > { %5101 = vmatprep.subr.msk.bf16.mxu1 %vm1124_vm2, %v1308_v27  ;;  %v1318_v41 = vsel %vm1124_vm2, %v1308_v27, 0 }
 0x4c9   : > { %v5383_v28 = vpop.eup %5382 }
 0x4ca   : > { %v5385_v29 = vpop.eup %5384  ;;  %v1231_v32 = vmul.f32 %v5383_v28, %v5379_v15  ;;  %v1310_v33 = vpop.permute.xlu1 %1309 }
 0x4cb   : > { %v5387_v30 = vpop.eup %5386  ;;  %v1228_v34 = vmul.f32 %v5385_v29, %v5377_v13  ;;  %v1321_v45 = vsel %vm1124_vm2, %v1310_v33, 0 }
 0x4cc   : > { %v1230_v36 = vmul.f32 %v5387_v30, %v5375_v11 }
 0x4cd   : > { %v5389_v31 = vpop.eup %5388 }
 0x4ce   : > { %v1229_v35 = vmul.f32 %v5389_v31, %v5381_v17  ;;  %v1233_v38 = vpack.c.bf16 %v1231_v32, %v1230_v36  ;;  %v1304_v40 = vpop.permute.xlu1 %1303 }
 0x4d0   : > { %v1232_v37 = vpack.c.bf16 %v1229_v35, %v1228_v34 }
 0x4d2   : > { %4951 = vmatprep.mubr.msk.bf16.mxu1 %vm1186_vm3, %v1232_v37  ;;  %v1306_v46 = vpop.permute.xlu1 %1305 }
 0x4d3   : > { %4952 = vmatmul.mubr.msk.bf16.vlgmr.msra.gmra.mrb[4].mxu1 %vm1186_vm3, %v1233_v38 }
 0x4d4   : > { %4956 = vmatpush3.bf16.xpose.msra.mxu1 %v1318_v41  ;;  %4959 = vmatprep.mubr.msk.bf16.mxu1 %vm1124_vm2, %v1304_v40 }
 0x4d5   : > { %5102 = vmatprep.subr.msk.bf16.mxu1 %vm1124_vm2, %v1310_v33 }
 0x4dc   : > { %4958 = vmatpush3.bf16.xpose.msra.mxu1 %v1321_v45 }
 0x4e3   : > { %4960 = vmatmul.mubr.msk.bf16.vlgmr.msra.gmra.mrb[8].mxu1 %vm1124_vm2, %v1306_v46 }
 0x5a6   : > { %v5996_v47 = vpop.f32.mrb[4].mxu1 }
 0x5a7   : > { %v5998_v48 = vpop.f32.mrb[5].mxu1 }
 0x5a8   : > { %v6000_v49 = vpop.f32.mrb[6].mxu1 }
 0x5a9   : > { %v6002_v50 = vpop.f32.mrb[7].mxu1 }
 0x5b6   : > { %v4961_v51 = vpop.f32.mrb[8].mxu1 }
 0x5b7   : > { %v1357_v52 = vpop.f32.mrb[9].mxu1  ;;  %v1378_v57 = vsel %vm1186_vm3, %v4961_v51, -inf }
 0x5b8   : > { %v4962_v53 = vpop.f32.mrb[10].mxu1  ;;  %v1372_v54 = vsel %vm1186_vm3, %v1357_v52, -inf }
 0x5b9   : > { %1373 = vmax.xlane.f32.xlu0 %v1372_v54  ;;  %v1360_v55 = vpop.f32.mrb[11].mxu1  ;;  %v1381_v58 = vsel %vm1196_vm4, %v4962_v53, -inf }
 0x5ba   : > { %v1375_v56 = vsel %vm1186_vm3, %v1360_v55, -inf }
 0x5bb   : > { %1376 = vmax.xlane.f32.xlu1 %v1375_v56 }
 0x5bd   : > { %1379 = vmax.xlane.f32.xlu0 %v1378_v57 }
 0x5c1   : > { %1382 = vmax.xlane.f32.xlu0 %v1381_v58 }
 0x5cc   : > { %1418 = vrot.lane.b32.xlu1 %v5947_v42, %s6579_s1 }
 0x646   : > { %v1374_v59 = vpop.xlane.xlu0 %1373 }
 0x647   : > { %v1384_v61 = vsub.f32 %v1357_v52, %v1374_v59 }
 0x648   : > { %v1377_v60 = vpop.xlane.xlu1 %1376 }
 0x649   : > { %v1388_v1 = vmul.f32 1.442695, %v1384_v61  ;;  %v1385_v2 = vsub.f32 %v1360_v55, %v1377_v60 }
 0x64a   : > { %v1380_v62 = vpop.xlane.xlu0 %1379 }
 0x64b   : > { %v1386_v63 = vsub.f32 %v4961_v51, %v1380_v62  ;;  %v1390_v7 = vmul.f32 1.442695, %v1385_v2 }
 0x64c   : > { %v1419_v0 = vpop.permute.xlu1 %1418 }
 0x64d   : > { %v1392_v3 = vmul.f32 1.442695, %v1386_v63  ;;  %4963 = vmatprep.subr.bf16.mxu0 %v1419_v0 }
 0x64e   : > { %v1383_v4 = vpop.xlane.xlu0 %1382  ;;  %4964 = vmatpush3.bf16.msra.mxu0 %v1419_v0 }
 0x64f   : > { %5390 = vpow2.f32 %v1392_v3  ;;  %v1387_v6 = vsub.f32 %v4962_v53, %v1383_v4 }
 0x650   : > { %5392 = vpow2.f32 %v1388_v1 }
 0x651   : > { %v1394_v8 = vmul.f32 1.442695, %v1387_v6 }
 0x653   : > { %5394 = vpow2.f32 %v1394_v8 }
 0x654   : > { %5396 = vpow2.f32 %v1390_v7 }
 0x659   : > { %v5391_v9 = vpop.eup %5390 }
 0x65a   : > { %v1402_v10 = vsel %vm1186_vm3, %v5391_v9, 0.0  ;;  %v5393_v11 = vpop.eup %5392 }
 0x65b   : > { %1403 = vadd.xlane.f32.xlu1 %v1402_v10  ;;  %v1396_v14 = vsel %vm1186_vm3, %v5393_v11, 0.0 }
 0x65d   : > { %v5395_v12 = vpop.eup %5394 }
 0x65e   : > { %v1405_v13 = vsel %vm1196_vm4, %v5395_v12, 0.0  ;;  %v5397_v15 = vpop.eup %5396 }
 0x65f   : > { %1406 = vadd.xlane.f32.xlu0 %v1405_v13  ;;  %1397 = vadd.xlane.f32.xlu1 %v1396_v14  ;;  %v1399_v16 = vsel %vm1186_vm3, %v5397_v15, 0.0 }
 0x663   : > { %1400 = vadd.xlane.f32.xlu0 %v1399_v16 }
 0x670   : > { %1485 = vrot.lane.b32.xlu1 %v5947_v42, %s6563_s23 }
 0x674   : > { %1487 = vrot.lane.b32.xlu1 %v5945_v39, %s6563_s23  ;;  %s6565_s23 = smov 104  }
 0x678   : > { %1483 = vrot.lane.b32.xlu1 %v5949_v43, %s6561_s18 }
 0x679   : > { %1420 = vrot.lane.b32.xlu0 %v5945_v39, %s6579_s1  ;;  %s6615_s1 = sld [smem:[#allocation14_spill]] }
 0x67d   : > { %1481 = vrot.lane.b32.xlu0 %v5951_v44, %s6561_s18  ;;  %s6567_s18 = smov 72  }
 0x6e8   : > { %v1404_v17 = vpop.xlane.xlu1 %1403 }
 0x6ec   : > { %v1407_v18 = vpop.xlane.xlu0 %1406  ;;  %v1398_v19 = vpop.xlane.xlu1 %1397 }
 0x6ed   : > { %5398 = vrcp.f32 %v1407_v18 }
 0x6ee   : > { %5400 = vrcp.f32 %v1398_v19 }
 0x6ef   : > { %5402 = vrcp.f32 %v1404_v17 }
 0x6f0   : > { %v1401_v20 = vpop.xlane.xlu0 %1400  ;;  %v1486_v28 = vpop.permute.xlu1 %1485 }
 0x6f1   : > { %5404 = vrcp.f32 %v1401_v20  ;;  %v1496_v40 = vsel %vm1124_vm2, %v1486_v28, 0 }
 0x6f4   : > { %v1421_v21 = vpop.permute.xlu0 %1420  ;;  %v1488_v41 = vpop.permute.xlu1 %1487 }
 0x6f5   : > { %v1430_v26 = vand.u32 %v1421_v21, %v5973_v5  ;;  %v1499_v45 = vsel %vm1124_vm2, %v1488_v41, 0 }
 0x6f7   : > { %4965 = vmatprep.subr.bf16.mxu0 %v1430_v26  ;;  %v5399_v27 = vpop.eup %5398 }
 0x6f8   : > { %4966 = vmatpush3.bf16.msra.mxu0 %v1430_v26  ;;  %v5401_v29 = vpop.eup %5400  ;;  %v1415_v32 = vmul.f32 %v5399_v27, %v5395_v12  ;;  %v1482_v38 = vpop.permute.xlu0 %1481 }
 0x6f9   : > { %5103 = vmatprep.subr.msk.bf16.mxu0 %vm1124_vm2, %v1486_v28  ;;  %v5403_v30 = vpop.eup %5402  ;;  %v1412_v33 = vmul.f32 %v5401_v29, %v5393_v11  ;;  %v1484_v46 = vpop.permute.xlu1 %1483 }
 0x6fa   : > { %v1414_v35 = vmul.f32 %v5403_v30, %v5391_v9 }
 0x6fb   : > { %v5405_v31 = vpop.eup %5404 }
 0x6fc   : > { %v1413_v34 = vmul.f32 %v5405_v31, %v5397_v15  ;;  %v1417_v37 = vpack.c.bf16 %v1415_v32, %v1414_v35 }
 0x6fe   : > { %v1416_v36 = vpack.c.bf16 %v1413_v34, %v1412_v33 }
 0x700   : > { %4967 = vmatprep.mubr.msk.bf16.mxu0 %vm1186_vm3, %v1416_v36 }
 0x701   : > { %4968 = vmatmul.mubr.msk.bf16.vlgmr.msra.gmra.mrb[8].mxu0 %vm1186_vm3, %v1417_v37 }
 0x702   : > { %4972 = vmatpush3.bf16.xpose.msra.mxu0 %v1496_v40  ;;  %4975 = vmatprep.mubr.msk.bf16.mxu0 %vm1124_vm2, %v1482_v38 }
 0x703   : > { %5104 = vmatprep.subr.msk.bf16.mxu0 %vm1124_vm2, %v1488_v41 }
 0x70a   : > { %4974 = vmatpush3.bf16.xpose.msra.mxu0 %v1499_v45 }
 0x711   : > { %4976 = vmatmul.mubr.msk.bf16.vlgmr.msra.gmra.mrb[12].mxu0 %vm1124_vm2, %v1484_v46 }
 0x7d4   : > { %v6033_v51 = vpop.f32.mrb[8].mxu0 }
 0x7d5   : > { %v6035_v52 = vpop.f32.mrb[9].mxu0 }
 0x7d6   : > { %v6037_v53 = vpop.f32.mrb[10].mxu0 }
 0x7d7   : > { %v5220_v54 = vpack.i.bf16 %v6037_v53, %v6033_v51  ;;  %v6041_v55 = vpop.f32.mrb[11].mxu0 }
 0x7d8   : > { %v5215_v56 = vpack.i.bf16 %v6041_v55, %v6035_v52 }
 0x7e4   : > { %v4977_v57 = vpop.f32.mrb[12].mxu0 }
 0x7e5   : > { %v1535_v58 = vpop.f32.mrb[13].mxu0  ;;  %v1556_v63 = vsel %vm1186_vm3, %v4977_v57, -inf }
 0x7e6   : > { %v4978_v59 = vpop.f32.mrb[14].mxu0  ;;  %v1550_v60 = vsel %vm1186_vm3, %v1535_v58, -inf }
 0x7e7   : > { %1551 = vmax.xlane.f32.xlu0 %v1550_v60  ;;  %v1538_v61 = vpop.f32.mrb[15].mxu0  ;;  %v1559_v0 = vsel %vm1196_vm4, %v4978_v59, -inf }
 0x7e8   : > { %v1553_v62 = vsel %vm1186_vm3, %v1538_v61, -inf }
 0x7e9   : > { %1554 = vmax.xlane.f32.xlu1 %v1553_v62 }
 0x7eb   : > { %1557 = vmax.xlane.f32.xlu0 %v1556_v63 }
 0x7ef   : > { %1560 = vmax.xlane.f32.xlu0 %v1559_v0 }
 0x7fa   : > { %1596 = vrot.lane.b32.xlu1 %v5947_v42, %s6569_s2 }
 0x874   : > { %v1552_v1 = vpop.xlane.xlu0 %1551 }
 0x875   : > { %v1562_v3 = vsub.f32 %v1535_v58, %v1552_v1 }
 0x876   : > { %v1555_v2 = vpop.xlane.xlu1 %1554 }
 0x877   : > { %v1566_v8 = vmul.f32 1.442695, %v1562_v3  ;;  %v1563_v9 = vsub.f32 %v1538_v61, %v1555_v2 }
 0x878   : > { %v1558_v4 = vpop.xlane.xlu0 %1557 }
 0x879   : > { %v1564_v6 = vsub.f32 %v4977_v57, %v1558_v4  ;;  %v1568_v13 = vmul.f32 1.442695, %v1563_v9 }
 0x87a   : > { %v1597_v7 = vpop.permute.xlu1 %1596 }
 0x87b   : > { %v1570_v10 = vmul.f32 1.442695, %v1564_v6  ;;  %4979 = vmatprep.subr.bf16.mxu1 %v1597_v7 }
 0x87c   : > { %v1561_v11 = vpop.xlane.xlu0 %1560  ;;  %4980 = vmatpush3.bf16.msra.mxu1 %v1597_v7 }
 0x87d   : > { %5406 = vpow2.f32 %v1570_v10  ;;  %v1565_v12 = vsub.f32 %v4978_v59, %v1561_v11 }
 0x87e   : > { %5408 = vpow2.f32 %v1566_v8 }
 0x87f   : > { %v1572_v14 = vmul.f32 1.442695, %v1565_v12 }
 0x881   : > { %5410 = vpow2.f32 %v1572_v14 }
 0x882   : > { %5412 = vpow2.f32 %v1568_v13 }
 0x887   : > { %v5407_v15 = vpop.eup %5406 }
 0x888   : > { %v1580_v16 = vsel %vm1186_vm3, %v5407_v15, 0.0  ;;  %v5409_v17 = vpop.eup %5408 }
 0x889   : > { %1581 = vadd.xlane.f32.xlu1 %v1580_v16  ;;  %v1574_v20 = vsel %vm1186_vm3, %v5409_v17, 0.0 }
 0x88b   : > { %v5411_v18 = vpop.eup %5410 }
 0x88c   : > { %v1583_v19 = vsel %vm1196_vm4, %v5411_v18, 0.0  ;;  %v5413_v21 = vpop.eup %5412 }
 0x88d   : > { %1584 = vadd.xlane.f32.xlu0 %v1583_v19  ;;  %1575 = vadd.xlane.f32.xlu1 %v1574_v20  ;;  %v1577_v26 = vsel %vm1186_vm3, %v5413_v21, 0.0 }
 0x891   : > { %1578 = vadd.xlane.f32.xlu0 %v1577_v26 }
 0x89e   : > { %1663 = vrot.lane.b32.xlu1 %v5947_v42, %s6567_s18 }
 0x8a2   : > { %1665 = vrot.lane.b32.xlu1 %v5945_v39, %s6567_s18  ;;  %s6575_s18 = smov 8  }
 0x8a6   : > { %1661 = vrot.lane.b32.xlu1 %v5949_v43, %s6565_s23 }
 0x8a7   : > { %1598 = vrot.lane.b32.xlu0 %v5945_v39, %s6569_s2  ;;  %s6571_s2 = smov 16  }
 0x8ab   : > { %1659 = vrot.lane.b32.xlu0 %v5951_v44, %s6565_s23  ;;  %s6577_s23 = smov 40  }
 0x916   : > { %v1582_v27 = vpop.xlane.xlu1 %1581 }
 0x91a   : > { %v1585_v28 = vpop.xlane.xlu0 %1584  ;;  %v1576_v29 = vpop.xlane.xlu1 %1575 }
 0x91b   : > { %5414 = vrcp.f32 %v1585_v28 }
 0x91c   : > { %5416 = vrcp.f32 %v1576_v29 }
 0x91d   : > { %5418 = vrcp.f32 %v1582_v27 }
 0x91e   : > { %v1579_v30 = vpop.xlane.xlu0 %1578  ;;  %v1664_v43 = vpop.permute.xlu1 %1663 }
 0x91f   : > { %5420 = vrcp.f32 %v1579_v30  ;;  %v1674_v57 = vsel %vm1124_vm2, %v1664_v43, 0 }
 0x922   : > { %v1599_v31 = vpop.permute.xlu0 %1598  ;;  %v1666_v58 = vpop.permute.xlu1 %1665 }
 0x923   : > { %v1608_v32 = vand.u32 %v1599_v31, %v5973_v5  ;;  %v1677_v59 = vsel %vm1124_vm2, %v1666_v58, 0 }
 0x925   : > { %4981 = vmatprep.subr.bf16.mxu1 %v1608_v32  ;;  %v5415_v33 = vpop.eup %5414 }
 0x926   : > { %4982 = vmatpush3.bf16.msra.mxu1 %v1608_v32  ;;  %v5417_v34 = vpop.eup %5416  ;;  %v1593_v36 = vmul.f32 %v5415_v33, %v5411_v18  ;;  %v1660_v46 = vpop.permute.xlu0 %1659 }
 0x927   : > { %5105 = vmatprep.subr.msk.bf16.mxu1 %vm1124_vm2, %v1664_v43  ;;  %v5419_v35 = vpop.eup %5418  ;;  %v1590_v37 = vmul.f32 %v5417_v34, %v5409_v17  ;;  %v1662_v60 = vpop.permute.xlu1 %1661 }
 0x928   : > { %v1592_v40 = vmul.f32 %v5419_v35, %v5407_v15 }
 0x929   : > { %v5421_v44 = vpop.eup %5420 }
 0x92a   : > { %v1591_v38 = vmul.f32 %v5421_v44, %v5413_v21  ;;  %v1595_v45 = vpack.c.bf16 %v1593_v36, %v1592_v40 }
 0x92c   : > { %v1594_v41 = vpack.c.bf16 %v1591_v38, %v1590_v37 }
 0x92e   : > { %4983 = vmatprep.mubr.msk.bf16.mxu1 %vm1186_vm3, %v1594_v41 }
 0x92f   : > { %4984 = vmatmul.mubr.msk.bf16.vlgmr.msra.gmra.mrb[12].mxu1 %vm1186_vm3, %v1595_v45 }
 0x930   : > { %4988 = vmatpush3.bf16.xpose.msra.mxu1 %v1674_v57  ;;  %4991 = vmatprep.mubr.msk.bf16.mxu1 %vm1124_vm2, %v1660_v46  ;;  %v5278_v57 = vld [vmem:[%s5720_s29] sm:$0xff]  }
 0x931   : > { %5106 = vmatprep.subr.msk.bf16.mxu1 %vm1124_vm2, %v1666_v58  ;;  %v5279_v58 = vld [vmem:[%s5720_s29 + $0x8] sm:$0xff]  }
 0x938   : > { %4990 = vmatpush3.bf16.xpose.msra.mxu1 %v1677_v59 }
 0x93f   : > { %4992 = vmatmul.mubr.msk.bf16.vlgmr.msra.gmra.mrb[16].mxu1 %vm1124_vm2, %v1662_v60 }
 0xa02   : > { %v4985_v61 = vpop.f32.mrb[12].mxu1 }
 0xa03   : > { %v1644_v62 = vpop.f32.mrb[13].mxu1 }
 0xa04   : > { %v4986_v63 = vpop.f32.mrb[14].mxu1 }
 0xa05   : > { %v5230_v0 = vpack.i.bf16 %v4986_v63, %v4985_v61  ;;  %v1647_v1 = vpop.f32.mrb[15].mxu1 }
 0xa06   : > { %v5225_v2 = vpack.i.bf16 %v1647_v1, %v1644_v62 }
 0xa12   : > { %v4993_v3 = vpop.f32.mrb[16].mxu1 }
 0xa13   : > { %v1713_v4 = vpop.f32.mrb[17].mxu1  ;;  %v1734_v10 = vsel %vm1186_vm3, %v4993_v3, -inf }
 0xa14   : > { %v4994_v6 = vpop.f32.mrb[18].mxu1  ;;  %v1728_v7 = vsel %vm1186_vm3, %v1713_v4, -inf }
 0xa15   : > { %1729 = vmax.xlane.f32.xlu0 %v1728_v7  ;;  %v1716_v8 = vpop.f32.mrb[19].mxu1  ;;  %v1737_v11 = vsel %vm1196_vm4, %v4994_v6, -inf }
 0xa16   : > { %v1731_v9 = vsel %vm1186_vm3, %v1716_v8, -inf }
 0xa17   : > { %1732 = vmax.xlane.f32.xlu1 %v1731_v9 }
 0xa19   : > { %1735 = vmax.xlane.f32.xlu0 %v1734_v10 }
 0xa1d   : > { %1738 = vmax.xlane.f32.xlu0 %v1737_v11 }
 0xaa2   : > { %v1730_v12 = vpop.xlane.xlu0 %1729 }
 0xaa3   : > { %v1740_v13 = vsub.f32 %v1713_v4, %v1730_v12 }
 0xaa4   : > { %v1733_v14 = vpop.xlane.xlu1 %1732 }
 0xaa5   : > { %v1744_v17 = vmul.f32 1.442695, %v1740_v13  ;;  %v1741_v18 = vsub.f32 %v1716_v8, %v1733_v14 }
 0xaa6   : > { %v1736_v15 = vpop.xlane.xlu0 %1735 }
 0xaa7   : > { %v1742_v16 = vsub.f32 %v4993_v3, %v1736_v15  ;;  %v1746_v26 = vmul.f32 1.442695, %v1741_v18 }
 0xaa9   : > { %v1748_v19 = vmul.f32 1.442695, %v1742_v16 }
 0xaaa   : > { %v1739_v20 = vpop.xlane.xlu0 %1738 }
 0xaab   : > { %5422 = vpow2.f32 %v1748_v19  ;;  %v1743_v21 = vsub.f32 %v4994_v6, %v1739_v20 }
 0xaac   : > { %5424 = vpow2.f32 %v1744_v17 }
 0xaad   : > { %v1750_v27 = vmul.f32 1.442695, %v1743_v21 }
 0xaaf   : > { %5426 = vpow2.f32 %v1750_v27 }
 0xab0   : > { %5428 = vpow2.f32 %v1746_v26 }
 0xab5   : > { %v5423_v28 = vpop.eup %5422 }
 0xab6   : > { %v1758_v29 = vsel %vm1186_vm3, %v5423_v28, 0.0  ;;  %v5425_v30 = vpop.eup %5424 }
 0xab7   : > { %1759 = vadd.xlane.f32.xlu1 %v1758_v29  ;;  %v1752_v33 = vsel %vm1186_vm3, %v5425_v30, 0.0 }
 0xab9   : > { %v5427_v31 = vpop.eup %5426 }
 0xaba   : > { %v1761_v32 = vsel %vm1196_vm4, %v5427_v31, 0.0  ;;  %v5429_v43 = vpop.eup %5428 }
 0xabb   : > { %1762 = vadd.xlane.f32.xlu0 %v1761_v32  ;;  %1753 = vadd.xlane.f32.xlu1 %v1752_v33  ;;  %v1755_v34 = vsel %vm1186_vm3, %v5429_v43, 0.0 }
 0xabf   : > { %1756 = vadd.xlane.f32.xlu0 %v1755_v34 }
 0xacc   : > { %1774 = vrot.lane.b32.xlu1 %v5947_v42, %s6577_s23 }
 0xad0   : > { %5216 = vrot.lane.b32.xlu1 %v5215_v56, %s6575_s18 }
 0xad4   : > { %5221 = vrot.lane.b32.xlu1 %v5220_v54, %s6575_s18  ;;  %s6613_s18 = sld [smem:[#allocation11_spill]] }
 0xad5   : > { %1776 = vrot.lane.b32.xlu0 %v5945_v39, %s6577_s23  ;;  %s6614_s23 = sld [smem:[#allocation12_spill]] }
 0xad8   : > { %5231 = vrot.lane.b32.xlu1 %v5230_v0, %s6571_s2 }
 0xad9   : > { %5226 = vrot.lane.b32.xlu0 %v5225_v2, %s6571_s2  ;;  %s6573_s2 = smov 24  }
 0xb44   : > { %v1760_v42 = vpop.xlane.xlu1 %1759 }
 0xb48   : > { %v1763_v35 = vpop.xlane.xlu0 %1762  ;;  %v1754_v44 = vpop.xlane.xlu1 %1753 }
 0xb49   : > { %5430 = vrcp.f32 %v1763_v35 }
 0xb4a   : > { %5432 = vrcp.f32 %v1754_v44 }
 0xb4b   : > { %5434 = vrcp.f32 %v1760_v42 }
 0xb4c   : > { %v1757_v52 = vpop.xlane.xlu0 %1756  ;;  %v1775_v55 = vpop.permute.xlu1 %1774 }
 0xb4d   : > { %5436 = vrcp.f32 %v1757_v52  ;;  %4995 = vmatprep.subr.bf16.mxu0 %v1775_v55 }
 0xb4e   : > { %4996 = vmatpush3.bf16.msra.mxu0 %v1775_v55 }
 0xb50   : > { %v1777_v51 = vpop.permute.xlu0 %1776  ;;  %v5217_v1 = vpop.permute.xlu1 %5216 }
 0xb51   : > { %v1786_v39 = vand.u32 %v1777_v51, %v5973_v5  ;;  %v5219_v4 = vunpack.i.h.bf16 %v5217_v1  ;;  %v5218_v6 = vunpack.i.l.bf16 %v5217_v1 }
 0xb53   : > { %4997 = vmatprep.subr.bf16.mxu0 %v1786_v39  ;;  %v5431_v53 = vpop.eup %5430  ;;  %v1886_v14 = vsel %vm1124_vm2, %v6002_v50, %v5219_v4  ;;  %v1885_v15 = vsel %vm1124_vm2, %v5998_v48, %v5218_v6 }
 0xb54   : > { %4998 = vmatpush3.bf16.msra.mxu0 %v1786_v39  ;;  %v5433_v54 = vpop.eup %5432  ;;  %v1771_v37 = vmul.f32 %v5431_v53, %v5427_v31  ;;  %v5222_v2 = vpop.permute.xlu1 %5221 }
 0xb55   : > { %v5435_v56 = vpop.eup %5434  ;;  %v1768_v38 = vmul.f32 %v5433_v54, %v5425_v30  ;;  %5003 = vmatprep.subr.bf16.mxu0 %v5278_v57  ;;  %v5227_v7 = vpop.permute.xlu0 %5226  ;;  %v5224_v8 = vunpack.i.h.bf16 %v5222_v2  ;;  %v5223_v9 = vunpack.i.l.bf16 %v5222_v2 }
 0xb56   : > { %v1770_v41 = vmul.f32 %v5435_v56, %v5423_v28  ;;  %v5229_v12 = vunpack.i.h.bf16 %v5227_v7  ;;  %v5228_v13 = vunpack.i.l.bf16 %v5227_v7 }
 0xb57   : > { %v5437_v36 = vpop.eup %5436  ;;  %v1888_v17 = vsel %vm1124_vm2, %v6000_v49, %v5224_v8  ;;  %v1887_v18 = vsel %vm1124_vm2, %v5996_v47, %v5223_v9  ;;  %v5282_v8 = vld [vmem:[%s5740_s19 + $0x4] ss:$16 sps:$4 sm:$0xff]   ;;  %v5285_v9 = vld [vmem:[%s5740_s19 + $0xc] ss:$16 sps:$4 sm:$0xff]  }
 0xb58   : > { %v1769_v40 = vmul.f32 %v5437_v36, %v5429_v43  ;;  %v1773_v46 = vpack.c.bf16 %v1771_v37, %v1770_v41  ;;  %v5232_v3 = vpop.permute.xlu1 %5231  ;;  %v1889_v48 = vsel %vm965_vm0, %v1885_v15, %v5228_v13  ;;  %v1890_v29 = vsel %vm965_vm0, %v1886_v14, %v5229_v12  ;;  %v4591_v43 = vld [vmem:[%s6610_s3] ss:$0 sm:$0xff]  ;;  %2136 = vmatprep.subr.bf16.mxu1 %v5282_v8  ;;  %v5288_v12 = vld [vmem:[%s5740_s19 + $0x24] ss:$16 sps:$4 sm:$0xff]   ;;  %v5291_v13 = vld [vmem:[%s5740_s19 + $0x2c] ss:$16 sps:$4 sm:$0xff]  }
 0xb59   : > { %v5234_v10 = vunpack.i.h.bf16 %v5232_v3  ;;  %v5233_v11 = vunpack.i.l.bf16 %v5232_v3  ;;  %v5286_v14 = vld [vmem:[%s5740_s19 + $0x20] ss:$16 sps:$4 sm:$0xff]   ;;  %v5289_v15 = vld [vmem:[%s5740_s19 + $0x28] ss:$16 sps:$4 sm:$0xff]  }
 0xb5a   : > { %v1772_v45 = vpack.c.bf16 %v1769_v40, %v1768_v38  ;;  %v5314_v8 = vld [vmem:[%s5750_s30 + $0x28] sm:$0xff]  }
 0xb5b   : > { %v1891_v26 = vsel %vm965_vm0, %v1887_v18, %v5233_v11  ;;  %v1892_v27 = vsel %vm965_vm0, %v1888_v17, %v5234_v10  ;;  %v5280_v10 = vld [vmem:[%s5740_s19] ss:$16 sps:$4 sm:$0xff]   ;;  %v5283_v11 = vld [vmem:[%s5740_s19 + $0x8] ss:$16 sps:$4 sm:$0xff]  }
 0xb5c   : > { %4999 = vmatprep.mubr.msk.bf16.mxu0 %vm1186_vm3, %v1772_v45  ;;  %2137 = vmatpush1.bf16.msra.mxu1 %v5280_v10  ;;  %v5292_v17 = vld [vmem:[%s5750_s30 + $0x40] sm:$0xff]   ;;  %v5316_v10 = vld [vmem:[%s5750_s30 + $0x70] sm:$0xff]  }
 0xb5d   : > { %5000 = vmatmul.mubr.msk.bf16.vlgmr.msra.gmra.mrb[16].mxu0 %vm1186_vm3, %v1773_v46  ;;  %2138 = vmatprep.subr.bf16.mxu1 %v5288_v12  ;;  %v5293_v18 = vld [vmem:[%s5750_s30 + $0xc0] sm:$0xff]   ;;  %v5318_v12 = vld [vmem:[%s5750_s30 + $0x30] sm:$0xff]  }
 0xb5e   : > { %5004 = vmatpush3.bf16.msra.mxu0 %v5278_v57 }
 0xb5f   : > { %5005 = vmatprep.subr.bf16.mxu0 %v5279_v58 }
 0xb60   : > { %2139 = vmatpush1.bf16.msra.mxu1 %v5286_v14  ;;  %v5320_v14 = vld [vmem:[%s5750_s30 + $0x78] sm:$0xff]  }
 0xb61   : > { %4770 = vmatprep.subr.bf16.mxu1 %v5292_v17  ;;  %v5322_v17 = vld [vmem:[%s5750_s30 + $0x38] sm:$0xff]  }
 0xb62   : > { %5006 = vmatpush3.bf16.msra.mxu0 %v5279_v58 }
 0xb63   : > { %2189 = vmatprep.subr.bf16.mxu0 %v5285_v9  ;;  %v5315_v9 = vld [vmem:[%s5750_s30 + $0xa8] sm:$0xff]  }
 0xc30   : > { %v5001_v59 = vpop.f32.mrb[16].mxu0 }
 0xc31   : > { %v1822_v60 = vpop.f32.mrb[17].mxu0 }
 0xc32   : > { %v5002_v61 = vpop.f32.mrb[18].mxu0 }
 0xc33   : > { %v5240_v62 = vpack.i.bf16 %v5002_v61, %v5001_v59  ;;  %v1825_v63 = vpop.f32.mrb[19].mxu0 }
 0xc34   : > { %v5235_v0 = vpack.i.bf16 %v1825_v63, %v1822_v60 }
 0xc35   : > { %5241 = vrot.lane.b32.xlu1 %v5240_v62, %s6573_s2 }
 0xc36   : > { %5236 = vrot.lane.b32.xlu0 %v5235_v0, %s6573_s2  ;;  %s6611_s2 = sld [smem:[#allocation10_spill]] }
 0xca7   : > { %v5242_v16 = vpop.permute.xlu1 %5241 }
 0xca8   : > { %v5244_v19 = vunpack.i.h.bf16 %v5242_v16  ;;  %v5243_v20 = vunpack.i.l.bf16 %v5242_v16  ;;  %v5237_v21 = vpop.permute.xlu0 %5236  ;;  %v5678_v16 = vmov 0  }
 0xca9   : > { %v5239_v50 = vunpack.i.h.bf16 %v5237_v21  ;;  %v5238_v28 = vunpack.i.l.bf16 %v5237_v21  ;;  %2168 = vmatprep.mubr.bf16.mxu1 %v5678_v16 }
 0xcaa   : > { %v1896_v30 = vsel %vm1893_vm7, %v1891_v26, %v5243_v20  ;;  %v1897_v49 = vsel %vm1893_vm7, %v1892_v27, %v5244_v19 }
 0xcab   : > { %v1899_v31 = vpack.c.bf16 %v1897_v49, %v1896_v30  ;;  %v1894_v47 = vsel %vm1893_vm7, %v1889_v48, %v5238_v28  ;;  %v1895_v32 = vsel %vm1893_vm7, %v1890_v29, %v5239_v50 }
 0xcac   : > { %v1898_v33 = vpack.c.bf16 %v1895_v32, %v1894_v47  ;;  %v4596_v32 = vld [vmem:[%s5730_s8] ss:$0 sm:$0xff] }
 0xcae   : > { %5007 = vmatprep.mubr.msk.bf16.mxu0 %vm1054_vm1, %v1898_v33 }
 0xcaf   : > { %5008 = vmatmul.mubr.msk.bf16.vlgmr.msra.gmra.mrb[20].mxu0 %vm1054_vm1, %v1899_v31 }
 0xcb0   : > { %2190 = vmatpush1.bf16.msra.mxu0 %v5283_v11  ;;  %2221 = vmatprep.mubr.bf16.mxu0 %v5678_v16  ;;  %v5317_v11 = vld [vmem:[%s5750_s30 + $0xf0] sm:$0xff]  }
 0xcb1   : > { %2191 = vmatprep.subr.bf16.mxu0 %v5291_v13  ;;  %v5319_v13 = vld [vmem:[%s5750_s30 + $0xb0] sm:$0xff]  }
 0xcb4   : > { %2192 = vmatpush1.bf16.msra.mxu0 %v5289_v15  ;;  %v5321_v15 = vld [vmem:[%s5750_s30 + $0xf8] sm:$0xff]  }
 0xcb5   : > { %4798 = vmatprep.subr.bf16.mxu0 %v5293_v18  ;;  %v5323_v18 = vld [vmem:[%s5750_s30 + $0xb8] sm:$0xff]  }
 0xd82   : > { %v5009_v34 = vpop.f32.mrb[20].mxu0 }
 0xd83   : > { %v1963_v42 = vpop.f32.mrb[21].mxu0  ;;  %v1972_v35 = vadd.f32 %v5009_v34, %v4591_v43 }
 0xd84   : > { %v1964_v44 = vadd.f32 %v4591_v43, %v1963_v42  ;;  %v5010_v52 = vpop.f32.mrb[22].mxu0 }
 0xd85   : > { %v1966_v55 = vpop.f32.mrb[23].mxu0  ;;  %v1975_v53 = vadd.f32 %v5010_v52, %v4591_v43  ;;  %v1980_v36 = vadd.f32 %v1972_v35, %v5936_v25 }
 0xd86   : > { %v1967_v51 = vadd.f32 %v4591_v43, %v1966_v55  ;;  %v1978_v39 = vadd.f32 %v1964_v44, %v5932_v23  ;;  %v4597_v44 = vld [vmem:[%s5735_s14] ss:$0 sm:$0xff] }
 0xd87   : > { %v1990_v38 = vsel %vm1054_vm1, %v1980_v36, 0.0  ;;  %v1981_v40 = vadd.f32 %v1975_v53, %v5930_v22 }
 0xd88   : > { %v1984_v54 = vsel %vm1054_vm1, %v1978_v39, 0.0  ;;  %v1979_v56 = vadd.f32 %v1967_v51, %v5934_v24 }
 0xd89   : > { %1985 = vadd.xlane.f32.xlu0 %v1984_v54  ;;  %v1994_v41 = vsel %vm1993_vm8, %v1981_v40, 0.0 }
 0xd8a   : > { %v1987_v37 = vsel %vm1054_vm1, %v1979_v56, 0.0 }
 0xd8b   : > { %1988 = vadd.xlane.f32.xlu1 %v1987_v37  ;;  %v5295_v37 = vld [vmem:[%s5750_s30 + $0x80] sm:$0xff]  }
 0xd8d   : > { %1991 = vadd.xlane.f32.xlu0 %v1990_v38  ;;  %v5296_v38 = vld [vmem:[%s5750_s30 + $0x48] sm:$0xff]  }
 0xd91   : > { %1995 = vadd.xlane.f32.xlu0 %v1994_v41 }
 0xe16   : > { %v1986_v23 = vpop.xlane.xlu0 %1985 }
 0xe17   : > { %v1998_v45 = vmul.f32 0.03125, %v1986_v23 }
 0xe18   : > { %v1989_v46 = vpop.xlane.xlu1 %1988 }
 0xe19   : > { %v2002_v57 = vsub.f32 %v1978_v39, %v1998_v45  ;;  %v1999_v24 = vmul.f32 0.03125, %v1989_v46  ;;  %v5298_v46 = vld [vmem:[%s5750_s30 + $0x8] sm:$0xff]  }
 0xe1a   : > { %v1992_v58 = vpop.xlane.xlu0 %1991 }
 0xe1b   : > { %v2003_v25 = vsub.f32 %v1979_v56, %v1999_v24  ;;  %v2000_v59 = vmul.f32 0.03125, %v1992_v58  ;;  %v2006_v60 = vmul.f32 %v2002_v57, %v2002_v57  ;;  %v5300_v24 = vld [vmem:[%s5750_s30 + $0x50] sm:$0xff]  }
 0xe1c   : > { %v5301_v58 = vld [vmem:[%s5750_s30 + $0xd0] sm:$0xff]  }
 0xe1d   : > { %v6130_v61 = vsub.f32 %v1980_v36, %v2000_v59  ;;  %v2010_v22 = vsel %vm1054_vm1, %v2006_v60, 0.0  ;;  %v2007_v62 = vmul.f32 %v2003_v25, %v2003_v25  ;;  %v5294_v36 = vld [vmem:[%s5750_s30] sm:$0xff]   ;;  %v5302_v60 = vld [vmem:[%s5750_s30 + $0x10] sm:$0xff]  }
 0xe1e   : > { %2011 = vadd.xlane.f32.xlu1 %v2010_v22  ;;  %v1996_v63 = vpop.xlane.xlu0 %1995  ;;  %v5304_v22 = vld [vmem:[%s5750_s30 + $0x58] sm:$0xff]  }
 0xe1f   : > { %v2001_v0 = vmul.f32 0.03125, %v1996_v63  ;;  %v2013_v1 = vsel %vm1054_vm1, %v2007_v62, 0.0  ;;  %v2008_v2 = vmul.f32 %v6130_v61, %v6130_v61  ;;  %v5305_v62 = vld [vmem:[%s5750_s30 + $0xd8] sm:$0xff]  }
 0xe20   : > { %2014 = vadd.xlane.f32.xlu0 %v2013_v1  ;;  %v5306_v63 = vld [vmem:[%s5750_s30 + $0x18] sm:$0xff]   ;;  %v5308_v1 = vld [vmem:[%s5750_s30 + $0x60] sm:$0xff]  }
 0xe21   : > { %v2005_v3 = vsub.f32 %v1981_v40, %v2001_v0  ;;  %v2016_v4 = vsel %vm1054_vm1, %v2008_v2, 0.0  ;;  %v5297_v40 = vld [vmem:[%s5750_s30 + $0xc8] sm:$0xff]   ;;  %v5307_v0 = vld [vmem:[%s5750_s30 + $0x98] sm:$0xff]   ;;  %v5309_v2 = vld [vmem:[%s5750_s30 + $0xe0] sm:$0xff]  }
 0xe22   : > { %2017 = vadd.xlane.f32.xlu1 %v2016_v4  ;;  %v5311_v4 = vld [vmem:[%s5750_s30 + $0xa0] sm:$0xff]  }
 0xe23   : > { %v2009_v6 = vmul.f32 %v2005_v3, %v2005_v3 }
 0xe25   : > { %v2019_v7 = vsel %vm1993_vm8, %v2009_v6, 0.0  ;;  %v5312_v6 = vld [vmem:[%s5750_s30 + $0x68] sm:$0xff]  }
 0xe26   : > { %2020 = vadd.xlane.f32.xlu0 %v2019_v7  ;;  %v5313_v7 = vld [vmem:[%s5750_s30 + $0xe8] sm:$0xff]  }
 0xeab   : > { %v2012_v19 = vpop.xlane.xlu1 %2011 }
 0xeac   : > { %v2022_v20 = vmul.f32 0.03125, %v2012_v19  ;;  %v2070_v19 = vlaneseq }
 0xead   : > { %v2015_v21 = vpop.xlane.xlu0 %2014 }
 0xeae   : > { %v2026_v26 = vadd.f32 1e-05, %v2022_v20  ;;  %v2023_v27 = vmul.f32 0.03125, %v2015_v21  ;;  %v6201_v20 = vshrl.u32 %v2070_v19, 7 }
 0xeaf   : > { %v2018_v50 = vpop.xlane.xlu1 %2017 }
 0xeb0   : > { %5438 = vrsqrt.f32 %v2026_v26  ;;  %v2027_v28 = vadd.f32 1e-05, %v2023_v27  ;;  %v2024_v48 = vmul.f32 0.03125, %v2018_v50  ;;  %v2072_v21 = vsub.s32 0, %v6201_v20  ;;  %v2068_v27 = vld [vmem:[%s5745_s24] sm:$0xf] }
 0xeb1   : > { %v2080_v26 = vsub.s32 2, %v6201_v20  ;;  %v2076_v50 = vsub.s32 1, %v6201_v20 }
 0xeb2   : > { %5440 = vrsqrt.f32 %v2027_v28  ;;  %v2028_v29 = vadd.f32 1e-05, %v2024_v48  ;;  %v2084_v28 = vsub.s32 3, %v6201_v20  ;;  %v2073_v48 = vrot.slane %v2068_v27, %v2072_v21 }
 0xeb3   : > { %v2021_v30 = vpop.xlane.xlu0 %2020 }
 0xeb4   : > { %5442 = vrsqrt.f32 %v2028_v29  ;;  %v2025_v49 = vmul.f32 0.03125, %v2021_v30  ;;  %v2081_v29 = vrot.slane %v2068_v27, %v2080_v26  ;;  %v2077_v30 = vrot.slane %v2068_v27, %v2076_v50 }
 0xeb6   : > { %v2029_v31 = vadd.f32 1e-05, %v2025_v49  ;;  %v2085_v49 = vrot.slane %v2068_v27, %v2084_v28 }
 0xeb8   : > { %5444 = vrsqrt.f32 %v2029_v31 }
 0xeba   : > { %v5439_v47 = vpop.eup %5438 }
 0xebb   : > { %v2034_v33 = vmul.f32 %v5439_v47, %v2002_v57  ;;  %v5299_v57 = vld [vmem:[%s5750_s30 + $0x88] sm:$0xff]  }
 0xebc   : > { %v5441_v43 = vpop.eup %5440 }
 0xebd   : > { %v2044_v34 = vmul.f32 %v4596_v32, %v2034_v33  ;;  %v2035_v42 = vmul.f32 %v5441_v43, %v2003_v25 }
 0xebe   : > { %v5443_v35 = vpop.eup %5442 }
 0xebf   : > { %v2045_v52 = vmul.f32 %v4596_v32, %v2035_v42  ;;  %v2036_v55 = vmul.f32 %v5443_v35, %v6130_v61  ;;  %v6153_v51 = vadd.f32 %v4597_v44, %v2044_v34  ;;  %v5303_v61 = vld [vmem:[%s5750_s30 + $0x90] sm:$0xff]  }
 0xec1   : > { %v6155_v39 = vadd.f32 %v4597_v44, %v2045_v52  ;;  %v2046_v41 = vmul.f32 %v4596_v32, %v2036_v55 }
 0xec2   : > { %v5445_v53 = vpop.eup %5444 }
 0xec3   : > { %v2037_v54 = vmul.f32 %v5445_v53, %v2005_v3  ;;  %v2058_v56 = vpack.c.bf16 %v6155_v39, %v6153_v51  ;;  %v6173_v25 = vadd.f32 %v4597_v44, %v2046_v41  ;;  %v5310_v3 = vld [vmem:[%s5750_s30 + $0x20] sm:$0xff]  }
 0xec5   : > { %4606 = vmatmul.mubr.msk.bf16.vlgmr.msra.gmra.mrb[20].mxu1 %vm1054_vm1, %v2058_v56  ;;  %4608 = vmatmul.mubr.msk.bf16.vlgmr.msra.gmra.mrb[24].mxu0 %vm1054_vm1, %v2058_v56  ;;  %v2047_v23 = vmul.f32 %v4596_v32, %v2037_v54 }
 0xec6   : > { %2178 = vmatprep.mubr.bf16.mxu1 %v5678_v16  ;;  %2231 = vmatprep.mubr.bf16.mxu0 %v5678_v16 }
 0xec7   : > { %v6167_v45 = vadd.f32 %v4597_v44, %v2047_v23  ;;  %4771 = vmatpush3.bf16.msra.mxu1 %v5294_v36  ;;  %4799 = vmatpush3.bf16.msra.mxu0 %v5295_v37 }
 0xec8   : > { %4772 = vmatprep.subr.bf16.mxu1 %v5296_v38  ;;  %4800 = vmatprep.subr.bf16.mxu0 %v5297_v40 }
 0xec9   : > { %v2059_v59 = vpack.c.bf16 %v6167_v45, %v6173_v25 }
 0xecb   : > { %4773 = vmatpush3.bf16.msra.mxu1 %v5298_v46  ;;  %4801 = vmatpush3.bf16.msra.mxu0 %v5299_v57 }
 0xecc   : > { %4774 = vmatprep.subr.bf16.mxu1 %v5300_v24  ;;  %4802 = vmatprep.subr.bf16.mxu0 %v5301_v58 }
 0xecd   : > { %4607 = vmatmul.mubr.msk.bf16.gmra.mrb[24].mxu1 %vm1054_vm1, %v2059_v59  ;;  %4609 = vmatmul.mubr.msk.bf16.gmra.mrb[28].mxu0 %vm1054_vm1, %v2059_v59 }
 0xecf   : > { %4775 = vmatpush3.bf16.msra.mxu1 %v5302_v60  ;;  %4803 = vmatpush3.bf16.msra.mxu0 %v5303_v61 }
 0xed0   : > { %4776 = vmatprep.subr.bf16.mxu1 %v5304_v22  ;;  %4804 = vmatprep.subr.bf16.mxu0 %v5305_v62 }
 0xed3   : > { %4777 = vmatpush3.bf16.msra.mxu1 %v5306_v63  ;;  %4805 = vmatpush3.bf16.msra.mxu0 %v5307_v0 }
 0xed4   : > { %4778 = vmatprep.subr.bf16.mxu1 %v5308_v1  ;;  %4806 = vmatprep.subr.bf16.mxu0 %v5309_v2 }
 0xed7   : > { %4779 = vmatpush3.bf16.msra.mxu1 %v5310_v3  ;;  %4807 = vmatpush3.bf16.msra.mxu0 %v5311_v4 }
 0xed8   : > { %4780 = vmatprep.subr.bf16.mxu1 %v5312_v6  ;;  %4808 = vmatprep.subr.bf16.mxu0 %v5313_v7 }
 0xedb   : > { %4781 = vmatpush3.bf16.msra.mxu1 %v5314_v8  ;;  %4809 = vmatpush3.bf16.msra.mxu0 %v5315_v9 }
 0xedc   : > { %4782 = vmatprep.subr.bf16.mxu1 %v5316_v10  ;;  %4810 = vmatprep.subr.bf16.mxu0 %v5317_v11 }
 0xedf   : > { %4783 = vmatpush3.bf16.msra.mxu1 %v5318_v12  ;;  %4811 = vmatpush3.bf16.msra.mxu0 %v5319_v13 }
 0xee0   : > { %4784 = vmatprep.subr.bf16.mxu1 %v5320_v14  ;;  %4812 = vmatprep.subr.bf16.mxu0 %v5321_v15 }
 0xee3   : > { %4785 = vmatpush3.bf16.msra.mxu1 %v5322_v17  ;;  %4813 = vmatpush3.bf16.msra.mxu0 %v5323_v18 }
 0xf98   : > { %v2170_v31 = vpop.f32.mrb[20].mxu1  ;;  %v2223_v47 = vpop.f32.mrb[24].mxu0 }
 0xf99   : > { %v2171_v32 = vadd.f32 %v2170_v31, %v2073_v48  ;;  %v2224_v33 = vadd.f32 %v2223_v47, %v2081_v29  ;;  %v2172_v43 = vpop.f32.mrb[21].mxu1  ;;  %v2225_v34 = vpop.f32.mrb[25].mxu0 }
 0xf9a   : > { %v2173_v42 = vadd.f32 %v2172_v43, %v2077_v30  ;;  %v2226_v35 = vadd.f32 %v2225_v34, %v2085_v49  ;;  %v2174_v44 = vpop.f32.mrb[22].mxu1  ;;  %v2227_v52 = vpop.f32.mrb[26].mxu0 }
 0xf9b   : > { %v2175_v55 = vadd.f32 %v2174_v44, %v2073_v48  ;;  %v2228_v53 = vadd.f32 %v2227_v52, %v2081_v29  ;;  %v2176_v54 = vpop.f32.mrb[23].mxu1  ;;  %v2229_v56 = vpop.f32.mrb[27].mxu0  ;;  %v2242_v38 = vmax.f32 %v2171_v32, 0.0  ;;  %v2244_v40 = vmax.f32 %v2224_v33, 0.0 }
 0xf9c   : > { %v2177_v36 = vadd.f32 %v2176_v54, %v2077_v30  ;;  %v2230_v37 = vadd.f32 %v2229_v56, %v2085_v49  ;;  %v2243_v46 = vmax.f32 %v2173_v42, 0.0  ;;  %v2245_v57 = vmax.f32 %v2226_v35, 0.0 }
 0xf9d   : > { %v2246_v41 = vmax.f32 %v2175_v55, 0.0  ;;  %v2248_v23 = vmax.f32 %v2228_v53, 0.0 }
 0xf9e   : > { %v2247_v24 = vmax.f32 %v2177_v36, 0.0  ;;  %v2249_v58 = vmax.f32 %v2230_v37, 0.0 }
 0xf9f   : > { %v2258_v59 = vpack.c.bf16 %v2246_v41, %v2242_v38  ;;  %v2260_v60 = vpack.c.bf16 %v2248_v23, %v2244_v40 }
 0xfa0   : > { %v2259_v61 = vpack.c.bf16 %v2247_v24, %v2243_v46  ;;  %v2261_v22 = vpack.c.bf16 %v2249_v58, %v2245_v57  ;;  %v2180_v62 = vpop.f32.mrb[24].mxu1  ;;  %v2233_v63 = vpop.f32.mrb[28].mxu0 }
 0xfa1   : > { %v2181_v0 = vadd.f32 %v2180_v62, %v2073_v48  ;;  %v2234_v1 = vadd.f32 %v2233_v63, %v2081_v29  ;;  %v2182_v2 = vpop.f32.mrb[25].mxu1  ;;  %v2235_v3 = vpop.f32.mrb[29].mxu0 }
 0xfa2   : > { %v2183_v4 = vadd.f32 %v2182_v2, %v2077_v30  ;;  %v2236_v6 = vadd.f32 %v2235_v3, %v2085_v49  ;;  %v2184_v7 = vpop.f32.mrb[26].mxu1  ;;  %v2237_v8 = vpop.f32.mrb[30].mxu0  ;;  %2561 = vmatprep.mubr.bf16.mxu1 %v2259_v61  ;;  %2610 = vmatprep.mubr.bf16.mxu0 %v2261_v22 }
 0xfa3   : > { %v2185_v9 = vadd.f32 %v2184_v7, %v2073_v48  ;;  %v2238_v10 = vadd.f32 %v2237_v8, %v2081_v29  ;;  %v2186_v11 = vpop.f32.mrb[27].mxu1  ;;  %v2239_v12 = vpop.f32.mrb[31].mxu0  ;;  %2562 = vmatmul.mubr.bf16.vlgmr.msra.gmra.mrb[28].mxu1 %v2258_v59  ;;  %2611 = vmatmul.mubr.bf16.vlgmr.msra.gmra.mrb[32].mxu0 %v2260_v60  ;;  %v2250_v15 = vmax.f32 %v2181_v0, 0.0  ;;  %v2252_v17 = vmax.f32 %v2234_v1, 0.0 }
 0xfa4   : > { %v2187_v13 = vadd.f32 %v2186_v11, %v2077_v30  ;;  %v2240_v14 = vadd.f32 %v2239_v12, %v2085_v49  ;;  %v2251_v27 = vmax.f32 %v2183_v4, 0.0  ;;  %v2253_v31 = vmax.f32 %v2236_v6, 0.0  ;;  %v4610_v49 = vld [vmem:[%s6611_s2] ss:$0 sm:$0xff]  ;;  %s6612_s2 = sld [smem:[#allocation13_spill]] }
 0xfa5   : > { %v2254_v18 = vmax.f32 %v2185_v9, 0.0  ;;  %v2256_v19 = vmax.f32 %v2238_v10, 0.0 }
 0xfa6   : > { %v2255_v47 = vmax.f32 %v2187_v13, 0.0  ;;  %v2257_v32 = vmax.f32 %v2240_v14, 0.0 }
 0xfa7   : > { %v2262_v33 = vpack.c.bf16 %v2254_v18, %v2250_v15  ;;  %v2264_v43 = vpack.c.bf16 %v2256_v19, %v2252_v17 }
 0xfa8   : > { %v2263_v34 = vpack.c.bf16 %v2255_v47, %v2251_v27  ;;  %v2265_v48 = vpack.c.bf16 %v2257_v32, %v2253_v31 }
 0xfaa   : > { %2569 = vmatprep.mubr.bf16.mxu1 %v2263_v34  ;;  %2618 = vmatprep.mubr.bf16.mxu0 %v2265_v48 }
 0xfab   : > { %2570 = vmatmul.mubr.bf16.gmra.mrb[32].mxu1 %v2262_v33  ;;  %2619 = vmatmul.mubr.bf16.gmra.mrb[36].mxu0 %v2264_v43 }
0x1076   : > { %v4786_v29 = vpop.f32.mrb[28].mxu1  ;;  %v4814_v30 = vpop.f32.mrb[32].mxu0 }
0x1077   : > { %v4787_v42 = vpop.f32.mrb[29].mxu1  ;;  %v4815_v35 = vpop.f32.mrb[33].mxu0 }
0x1078   : > { %v4788_v44 = vadd.f32 %v4787_v42, %v4786_v29  ;;  %v4816_v52 = vadd.f32 %v4815_v35, %v4814_v30  ;;  %v4789_v55 = vpop.f32.mrb[30].mxu1  ;;  %v4817_v53 = vpop.f32.mrb[34].mxu0  ;;  %v5324_v35 = vld [vmem:[%s6612_s2] sm:$0xff]  }
0x1079   : > { %v4790_v54 = vpop.f32.mrb[31].mxu1  ;;  %v4818_v56 = vpop.f32.mrb[35].mxu0  ;;  %5011 = vmatprep.subr.bf16.mxu1 %v5324_v35 }
0x107a   : > { %v2564_v36 = vadd.f32 %v4788_v44, %v4610_v49  ;;  %v4791_v37 = vadd.f32 %v4790_v54, %v4789_v55  ;;  %v4819_v38 = vadd.f32 %v4818_v56, %v4817_v53  ;;  %v5325_v44 = vld [vmem:[%s6612_s2 + $0x8] sm:$0xff]   ;;  %5012 = vmatpush3.bf16.msra.mxu1 %v5324_v35 }
0x107b   : > { %5013 = vmatprep.subr.bf16.mxu1 %v5325_v44 }
0x107c   : > { %v2613_v40 = vadd.f32 %v4816_v52, %v2564_v36  ;;  %v2567_v41 = vadd.f32 %v4791_v37, %v4610_v49 }
0x107e   : > { %v2616_v23 = vadd.f32 %v4819_v38, %v2567_v41  ;;  %v4792_v46 = vpop.f32.mrb[32].mxu1  ;;  %v4820_v57 = vpop.f32.mrb[36].mxu0  ;;  %v2627_v24 = vadd.f32 %v2613_v40, %v6153_v51  ;;  %5014 = vmatpush3.bf16.msra.mxu1 %v5325_v44 }
0x107f   : > { %v4793_v58 = vpop.f32.mrb[33].mxu1  ;;  %v4821_v59 = vpop.f32.mrb[37].mxu0 }
0x1080   : > { %v4794_v60 = vadd.f32 %v4793_v58, %v4792_v46  ;;  %v4822_v61 = vadd.f32 %v4821_v59, %v4820_v57  ;;  %v4795_v22 = vpop.f32.mrb[34].mxu1  ;;  %v4823_v62 = vpop.f32.mrb[38].mxu0  ;;  %v2633_v63 = vsel %vm1054_vm1, %v2627_v24, 0.0  ;;  %v2628_v0 = vadd.f32 %v2616_v23, %v6155_v39 }
0x1081   : > { %v4824_v1 = vpop.f32.mrb[39].mxu0  ;;  %2634 = vadd.xlane.f32.xlu1 %v2633_v63  ;;  %v4796_v2 = vpop.f32.mrb[35].mxu1 }
0x1082   : > { %v2572_v3 = vadd.f32 %v4794_v60, %v4610_v49  ;;  %v4825_v4 = vadd.f32 %v4824_v1, %v4823_v62  ;;  %v4797_v6 = vadd.f32 %v4796_v2, %v4795_v22  ;;  %v2636_v7 = vsel %vm1054_vm1, %v2628_v0, 0.0  ;;  %v4644_v22 = vld [vmem:[%s6614_s23] ss:$0 sm:$0xff]  ;;  %s6621_s23 = smov 104  }
0x1083   : > { %2637 = vadd.xlane.f32.xlu0 %v2636_v7 }
0x1084   : > { %v2621_v51 = vadd.f32 %v4822_v61, %v2572_v3  ;;  %v2575_v8 = vadd.f32 %v4797_v6, %v4610_v49 }
0x1086   : > { %v2629_v9 = vadd.f32 %v2621_v51, %v6173_v25  ;;  %v2624_v10 = vadd.f32 %v4825_v4, %v2575_v8 }
0x1088   : > { %v2639_v11 = vsel %vm1054_vm1, %v2629_v9, 0.0  ;;  %v2630_v12 = vadd.f32 %v2624_v10, %v6167_v45 }
0x1089   : > { %2640 = vadd.xlane.f32.xlu1 %v2639_v11  ;;  %v4645_v11 = vld [vmem:[%s6615_s1] ss:$0 sm:$0xff]  ;;  %s6620_s1 = smov 72  }
0x108a   : > { %v2642_v39 = vsel %vm1993_vm8, %v2630_v12, 0.0 }
0x108b   : > { %2643 = vadd.xlane.f32.xlu0 %v2642_v39 }
0x110e   : > { %v2635_v13 = vpop.xlane.xlu1 %2634 }
0x110f   : > { %v2645_v14 = vmul.f32 0.03125, %v2635_v13 }
0x1110   : > { %v2638_v15 = vpop.xlane.xlu0 %2637 }
0x1111   : > { %v2649_v17 = vsub.f32 %v2627_v24, %v2645_v14  ;;  %v2646_v18 = vmul.f32 0.03125, %v2638_v15  ;;  %v4643_v24 = vld [vmem:[%s6613_s18] ss:$0 sm:$0xff]  ;;  %s6622_s18 = smov 40  }
0x1113   : > { %v2650_v19 = vsub.f32 %v2628_v0, %v2646_v18  ;;  %v2653_v27 = vmul.f32 %v2649_v17, %v2649_v17 }
0x1115   : > { %v2657_v31 = vsel %vm1054_vm1, %v2653_v27, 0.0  ;;  %v2654_v47 = vmul.f32 %v2650_v19, %v2650_v19 }
0x1116   : > { %2658 = vadd.xlane.f32.xlu1 %v2657_v31  ;;  %v2641_v25 = vpop.xlane.xlu1 %2640 }
0x1117   : > { %v2647_v32 = vmul.f32 0.03125, %v2641_v25  ;;  %v2660_v45 = vsel %vm1054_vm1, %v2654_v47, 0.0 }
0x1118   : > { %2661 = vadd.xlane.f32.xlu0 %v2660_v45  ;;  %v2644_v33 = vpop.xlane.xlu0 %2643 }
0x1119   : > { %v2651_v43 = vsub.f32 %v2629_v9, %v2647_v32  ;;  %v2648_v34 = vmul.f32 0.03125, %v2644_v33 }
0x111b   : > { %v2652_v48 = vsub.f32 %v2630_v12, %v2648_v34  ;;  %v2655_v29 = vmul.f32 %v2651_v43, %v2651_v43 }
0x111d   : > { %v2663_v30 = vsel %vm1054_vm1, %v2655_v29, 0.0  ;;  %v2656_v49 = vmul.f32 %v2652_v48, %v2652_v48 }
0x111e   : > { %2664 = vadd.xlane.f32.xlu1 %v2663_v30 }
0x111f   : > { %v2666_v42 = vsel %vm1993_vm8, %v2656_v49, 0.0 }
0x1120   : > { %2667 = vadd.xlane.f32.xlu0 %v2666_v42 }
0x11a3   : > { %v2659_v52 = vpop.xlane.xlu1 %2658 }
0x11a4   : > { %v2669_v55 = vmul.f32 0.03125, %v2659_v52 }
0x11a5   : > { %v2662_v53 = vpop.xlane.xlu0 %2661 }
0x11a6   : > { %v2673_v54 = vadd.f32 1e-05, %v2669_v55  ;;  %v2670_v56 = vmul.f32 0.03125, %v2662_v53 }
0x11a8   : > { %5446 = vrsqrt.f32 %v2673_v54  ;;  %v2674_v36 = vadd.f32 1e-05, %v2670_v56 }
0x11aa   : > { %5448 = vrsqrt.f32 %v2674_v36 }
0x11ab   : > { %v2665_v37 = vpop.xlane.xlu1 %2664 }
0x11ac   : > { %v2671_v38 = vmul.f32 0.03125, %v2665_v37 }
0x11ad   : > { %v2668_v40 = vpop.xlane.xlu0 %2667 }
0x11ae   : > { %v2675_v41 = vadd.f32 1e-05, %v2671_v38  ;;  %v2672_v23 = vmul.f32 0.03125, %v2668_v40 }
0x11b0   : > { %5450 = vrsqrt.f32 %v2675_v41  ;;  %v2676_v46 = vadd.f32 1e-05, %v2672_v23 }
0x11b2   : > { %v5447_v57 = vpop.eup %5446  ;;  %5452 = vrsqrt.f32 %v2676_v46 }
0x11b3   : > { %v2681_v58 = vmul.f32 %v5447_v57, %v2649_v17 }
0x11b4   : > { %v5449_v59 = vpop.eup %5448 }
0x11b5   : > { %v2682_v60 = vmul.f32 %v5449_v59, %v2650_v19  ;;  %v2691_v61 = vmul.f32 %v4643_v24, %v2681_v58 }
0x11b7   : > { %v2692_v62 = vmul.f32 %v4643_v24, %v2682_v60  ;;  %v6233_v63 = vadd.f32 %v4644_v22, %v2691_v61 }
0x11b9   : > { %v6235_v0 = vadd.f32 %v4644_v22, %v2692_v62 }
0x11ba   : > { %v5451_v1 = vpop.eup %5450 }
0x11bb   : > { %v2683_v2 = vmul.f32 %v5451_v1, %v2651_v43  ;;  %v2705_v3 = vpack.c.bf16 %v6235_v0, %v6233_v63 }
0x11bc   : > { %v5453_v4 = vpop.eup %5452 }
0x11bd   : > { %v2693_v6 = vmul.f32 %v4643_v24, %v2683_v2  ;;  %v2684_v7 = vmul.f32 %v5453_v4, %v2652_v48  ;;  %5015 = vmatprep.mubr.msk.bf16.mxu1 %vm1054_vm1, %v2705_v3 }
0x11bf   : > { %v2694_v51 = vmul.f32 %v4643_v24, %v2684_v7  ;;  %v6240_v8 = vadd.f32 %v4644_v22, %v2693_v6 }
0x11c1   : > { %v6242_v9 = vadd.f32 %v4644_v22, %v2694_v51 }
0x11c3   : > { %v2706_v10 = vpack.c.bf16 %v6242_v9, %v6240_v8 }
0x11c5   : > { %5016 = vmatmul.mubr.msk.bf16.vlgmr.msra.gmra.mrb[36].mxu1 %vm1054_vm1, %v2706_v10 }
0x1298   : > { %v5017_v12 = vpop.f32.mrb[36].mxu1 }
0x1299   : > { %v2779_v39 = vadd.f32 %v5017_v12, %v4645_v11  ;;  %v2770_v13 = vpop.f32.mrb[37].mxu1 }
0x129a   : > { %v2771_v14 = vadd.f32 %v4645_v11, %v2770_v13  ;;  %v5018_v15 = vpop.f32.mrb[38].mxu1 }
0x129b   : > { %v2782_v17 = vadd.f32 %v5018_v15, %v4645_v11  ;;  %v2773_v18 = vpop.f32.mrb[39].mxu1  ;;  %v2787_v27 = vmul.f32 0.35355338, %v2779_v39 }
0x129c   : > { %v2774_v19 = vadd.f32 %v4645_v11, %v2773_v18  ;;  %v2785_v25 = vmul.f32 0.35355338, %v2771_v14 }
0x129d   : > { %v2788_v31 = vmul.f32 0.35355338, %v2782_v17  ;;  %v6248_v47 = vpack.c.bf16 %v2782_v17, %v2779_v39 }
0x129e   : > { %v2786_v32 = vmul.f32 0.35355338, %v2774_v19  ;;  %v6250_v45 = vpack.c.bf16 %v2774_v19, %v2771_v14 }
0x129f   : > { %v6252_v33 = vpack.c.bf16 %v2788_v31, %v2787_v27  ;;  %2797 = vrot.lane.b32.xlu0 %v6248_v47, %s5663_s26 }
0x12a0   : > { %v6256_v43 = vpack.c.bf16 %v2786_v32, %v2785_v25  ;;  %2795 = vrot.lane.b32.xlu1 %v6250_v45, %s5663_s26  ;;  %s6616_s26 = smov 56  }
0x12a2   : > { %5023 = vmatprep.mubr.msk.bf16.mxu0 %vm1124_vm2, %v6256_v43 }
0x12a3   : > { %2971 = vrot.lane.b32.xlu0 %v6256_v43, %s5667_s28 }
0x12a4   : > { %2975 = vrot.lane.b32.xlu1 %v6250_v45, %s5666_s11 }
0x12a8   : > { %2977 = vrot.lane.b32.xlu1 %v6248_v47, %s5666_s11  ;;  %s6618_s11 = smov 112  }
0x12ac   : > { %2973 = vrot.lane.b32.xlu1 %v6252_v33, %s5667_s28  ;;  %s6619_s28 = smov 48  }
0x1311   : > { %v2798_v29 = vpop.permute.xlu0 %2797 }
0x1312   : > { %v2796_v34 = vpop.permute.xlu1 %2795  ;;  %v2809_v30 = vsel %vm1124_vm2, %v2798_v29, 0 }
0x1313   : > { %v2806_v48 = vsel %vm1124_vm2, %v2796_v34, 0  ;;  %5107 = vmatprep.subr.msk.bf16.mxu0 %vm1124_vm2, %v2796_v34 }
0x1314   : > { %5020 = vmatpush3.bf16.xpose.msra.mxu0 %v2806_v48 }
0x1315   : > { %5108 = vmatprep.subr.msk.bf16.mxu0 %vm1124_vm2, %v2798_v29  ;;  %v2972_v42 = vpop.permute.xlu0 %2971 }
0x1316   : > { %v2976_v49 = vpop.permute.xlu1 %2975 }
0x1317   : > { %v2986_v35 = vsel %vm1124_vm2, %v2976_v49, 0 }
0x131a   : > { %v2978_v44 = vpop.permute.xlu1 %2977 }
0x131b   : > { %v2989_v52 = vsel %vm1124_vm2, %v2978_v44, 0 }
0x131c   : > { %5022 = vmatpush3.bf16.xpose.msra.mxu0 %v2809_v30 }
0x131d   : > { %5109 = vmatprep.subr.msk.bf16.mxu0 %vm1124_vm2, %v2976_v49 }
0x131e   : > { %v2974_v55 = vpop.permute.xlu1 %2973 }
0x1323   : > { %5024 = vmatmul.mubr.msk.bf16.vlgmr.msra.gmra.mrb[40].mxu0 %vm1124_vm2, %v6252_v33 }
0x1324   : > { %5036 = vmatpush3.bf16.xpose.msra.mxu0 %v2986_v35  ;;  %5039 = vmatprep.mubr.msk.bf16.mxu0 %vm1124_vm2, %v2972_v42 }
0x1325   : > { %5110 = vmatprep.subr.msk.bf16.mxu0 %vm1124_vm2, %v2978_v44 }
0x132c   : > { %5038 = vmatpush3.bf16.xpose.msra.mxu0 %v2989_v52 }
0x1333   : > { %5040 = vmatmul.mubr.msk.bf16.vlgmr.msra.gmra.mrb[44].mxu0 %vm1124_vm2, %v2974_v55 }
0x13f6   : > { %v5025_v53 = vpop.f32.mrb[40].mxu0 }
0x13f7   : > { %v2845_v54 = vpop.f32.mrb[41].mxu0  ;;  %v2866_v56 = vsel %vm1186_vm3, %v5025_v53, -inf }
0x13f8   : > { %2867 = vmax.xlane.f32.xlu0 %v2866_v56  ;;  %v5026_v36 = vpop.f32.mrb[42].mxu0  ;;  %v2860_v40 = vsel %vm1186_vm3, %v2845_v54, -inf }
0x13f9   : > { %v2848_v37 = vpop.f32.mrb[43].mxu0  ;;  %v2869_v41 = vsel %vm1196_vm4, %v5026_v36, -inf }
0x13fa   : > { %v2863_v38 = vsel %vm1186_vm3, %v2848_v37, -inf }
0x13fb   : > { %2864 = vmax.xlane.f32.xlu1 %v2863_v38 }
0x13fc   : > { %2861 = vmax.xlane.f32.xlu0 %v2860_v40 }
0x1400   : > { %2870 = vmax.xlane.f32.xlu0 %v2869_v41 }
0x1406   : > { %v5041_v23 = vpop.f32.mrb[44].mxu0 }
0x1407   : > { %v3025_v46 = vpop.f32.mrb[45].mxu0  ;;  %v3046_v57 = vsel %vm1186_vm3, %v5041_v23, -inf }
0x1408   : > { %v5042_v24 = vpop.f32.mrb[46].mxu0  ;;  %3047 = vmax.xlane.f32.xlu1 %v3046_v57  ;;  %v3040_v60 = vsel %vm1186_vm3, %v3025_v46, -inf }
0x1409   : > { %v3028_v58 = vpop.f32.mrb[47].mxu0  ;;  %v3049_v61 = vsel %vm1196_vm4, %v5042_v24, -inf }
0x140a   : > { %v3043_v59 = vsel %vm1186_vm3, %v3028_v58, -inf }
0x140b   : > { %3044 = vmax.xlane.f32.xlu0 %v3043_v59 }
0x140c   : > { %3041 = vmax.xlane.f32.xlu1 %v3040_v60 }
0x140f   : > { %3050 = vmax.xlane.f32.xlu0 %v3049_v61 }
0x141d   : > { %2906 = vrot.lane.b32.xlu1 %v6250_v45, %s5664_s10 }
0x1485   : > { %v2868_v22 = vpop.xlane.xlu0 %2867 }
0x1486   : > { %v2874_v62 = vsub.f32 %v5025_v53, %v2868_v22 }
0x1488   : > { %v2880_v1 = vmul.f32 1.442695, %v2874_v62  ;;  %v2865_v2 = vpop.xlane.xlu1 %2864 }
0x1489   : > { %v2862_v3 = vpop.xlane.xlu0 %2861  ;;  %v2873_v6 = vsub.f32 %v2848_v37, %v2865_v2 }
0x148a   : > { %5454 = vpow2.f32 %v2880_v1  ;;  %v2872_v4 = vsub.f32 %v2845_v54, %v2862_v3 }
0x148b   : > { %v2878_v11 = vmul.f32 1.442695, %v2873_v6 }
0x148c   : > { %v2876_v7 = vmul.f32 1.442695, %v2872_v4 }
0x148d   : > { %v2871_v51 = vpop.xlane.xlu0 %2870 }
0x148e   : > { %5456 = vpow2.f32 %v2876_v7  ;;  %v2875_v10 = vsub.f32 %v5026_v36, %v2871_v51 }
0x1490   : > { %v2882_v12 = vmul.f32 1.442695, %v2875_v10 }
0x1492   : > { %5458 = vpow2.f32 %v2882_v12 }
0x1493   : > { %5460 = vpow2.f32 %v2878_v11 }
0x1494   : > { %v6292_v39 = vpop.eup %5454 }
0x1495   : > { %v3048_v13 = vpop.xlane.xlu1 %3047  ;;  %v2890_v14 = vsel %vm1186_vm3, %v6292_v39, 0.0 }
0x1496   : > { %2891 = vadd.xlane.f32.xlu1 %v2890_v14  ;;  %v3054_v48 = vsub.f32 %v5041_v23, %v3048_v13 }
0x1498   : > { %v6296_v15 = vpop.eup %5456  ;;  %v3045_v34 = vpop.xlane.xlu0 %3044  ;;  %v3060_v29 = vmul.f32 1.442695, %v3054_v48 }
0x1499   : > { %v3042_v17 = vpop.xlane.xlu1 %3041  ;;  %v2884_v18 = vsel %vm1186_vm3, %v6296_v15, 0.0  ;;  %v3053_v44 = vsub.f32 %v3028_v58, %v3045_v34 }
0x149a   : > { %2885 = vadd.xlane.f32.xlu1 %v2884_v18  ;;  %v3052_v30 = vsub.f32 %v3025_v46, %v3042_v17  ;;  %5462 = vpow2.f32 %v3060_v29 }
0x149b   : > { %v3058_v55 = vmul.f32 1.442695, %v3053_v44 }
0x149c   : > { %v5459_v19 = vpop.eup %5458  ;;  %v3051_v49 = vpop.xlane.xlu0 %3050  ;;  %v3056_v42 = vmul.f32 1.442695, %v3052_v30 }
0x149d   : > { %v2907_v27 = vpop.permute.xlu1 %2906  ;;  %v2893_v31 = vsel %vm1196_vm4, %v5459_v19, 0.0  ;;  %v5461_v25 = vpop.eup %5460  ;;  %v3055_v35 = vsub.f32 %v5042_v24, %v3051_v49 }
0x149e   : > { %2894 = vadd.xlane.f32.xlu0 %v2893_v31  ;;  %5027 = vmatprep.subr.bf16.mxu1 %v2907_v27  ;;  %v2887_v32 = vsel %vm1186_vm3, %v5461_v25, 0.0  ;;  %5464 = vpow2.f32 %v3056_v42 }
0x149f   : > { %5028 = vmatpush3.bf16.msra.mxu1 %v2907_v27  ;;  %v3062_v52 = vmul.f32 1.442695, %v3055_v35 }
0x14a1   : > { %5466 = vpow2.f32 %v3062_v52 }
0x14a2   : > { %2888 = vadd.xlane.f32.xlu0 %v2887_v32  ;;  %5468 = vpow2.f32 %v3058_v55 }
0x14a4   : > { %v6306_v53 = vpop.eup %5462 }
0x14a5   : > { %v3070_v54 = vsel %vm1186_vm3, %v6306_v53, 0.0 }
0x14a8   : > { %v5465_v56 = vpop.eup %5464 }
0x14a9   : > { %v3064_v36 = vsel %vm1186_vm3, %v5465_v56, 0.0 }
0x14ab   : > { %3086 = vrot.lane.b32.xlu1 %v6250_v45, %s6616_s26  ;;  %v5467_v37 = vpop.eup %5466 }
0x14ac   : > { %v3073_v38 = vsel %vm1196_vm4, %v5467_v37, 0.0  ;;  %v5469_v40 = vpop.eup %5468 }
0x14ad   : > { %v3067_v41 = vsel %vm1186_vm3, %v5469_v40, 0.0 }
0x14b8   : > { %2908 = vrot.lane.b32.xlu0 %v6248_v47, %s5664_s10  ;;  %s6617_s10 = smov 80  }
0x14cf   : > { %3071 = vadd.xlane.f32.xlu1 %v3070_v54 }
0x14d3   : > { %3065 = vadd.xlane.f32.xlu1 %v3064_v36 }
0x14d7   : > { %3074 = vadd.xlane.f32.xlu0 %v3073_v38 }
0x14db   : > { %3068 = vadd.xlane.f32.xlu0 %v3067_v41 }
0x14e4   : > { %3088 = vrot.lane.b32.xlu1 %v6248_v47, %s6616_s26  ;;  %s6623_s26 = smov 8  }
0x14e8   : > { %3155 = vrot.lane.b32.xlu1 %v6248_v47, %s6617_s10 }
0x14ec   : > { %3151 = vrot.lane.b32.xlu1 %v6252_v33, %s6618_s11 }
0x14f1   : > { %3153 = vrot.lane.b32.xlu0 %v6250_v45, %s6617_s10  ;;  %s6624_s10 = smov 16  }
0x14f5   : > { %3149 = vrot.lane.b32.xlu0 %v6256_v43, %s6618_s11  ;;  %s6625_s11 = sld [smem:[#allocation15_spill]] }
0x1523   : > { %v2892_v23 = vpop.xlane.xlu1 %2891 }
0x1527   : > { %v2886_v46 = vpop.xlane.xlu1 %2885 }
0x152b   : > { %v2895_v57 = vpop.xlane.xlu0 %2894  ;;  %v3087_v61 = vpop.permute.xlu1 %3086 }
0x152c   : > { %5470 = vrcp.f32 %v2895_v57 }
0x152d   : > { %5472 = vrcp.f32 %v2886_v46 }
0x152e   : > { %5474 = vrcp.f32 %v2892_v23 }
0x152f   : > { %v2889_v24 = vpop.xlane.xlu0 %2888 }
0x1530   : > { %5476 = vrcp.f32 %v2889_v24 }
0x1533   : > { %v2909_v58 = vpop.permute.xlu0 %2908 }
0x1534   : > { %v2918_v59 = vand.u32 %v2909_v58, %v5973_v5 }
0x1536   : > { %5029 = vmatprep.subr.bf16.mxu1 %v2918_v59  ;;  %v5471_v60 = vpop.eup %5470 }
0x1537   : > { %5030 = vmatpush3.bf16.msra.mxu1 %v2918_v59  ;;  %v5473_v22 = vpop.eup %5472  ;;  %v2903_v2 = vmul.f32 %v5471_v60, %v5459_v19 }
0x1538   : > { %5043 = vmatprep.subr.bf16.mxu1 %v3087_v61  ;;  %v5475_v62 = vpop.eup %5474  ;;  %v2900_v3 = vmul.f32 %v5473_v22, %v6296_v15 }
0x1539   : > { %v2902_v6 = vmul.f32 %v5475_v62, %v6292_v39 }
0x153a   : > { %v5477_v1 = vpop.eup %5476 }
0x153b   : > { %v2901_v4 = vmul.f32 %v5477_v1, %v5461_v25  ;;  %v2905_v51 = vpack.c.bf16 %v2903_v2, %v2902_v6 }
0x153d   : > { %v2904_v7 = vpack.c.bf16 %v2901_v4, %v2900_v3 }
0x153f   : > { %5031 = vmatprep.mubr.msk.bf16.mxu1 %vm1186_vm3, %v2904_v7 }
0x1540   : > { %5032 = vmatmul.mubr.msk.bf16.vlgmr.msra.gmra.mrb[40].mxu1 %vm1186_vm3, %v2905_v51 }
0x1541   : > { %5044 = vmatpush3.bf16.msra.mxu1 %v3087_v61 }
0x155c   : > { %v3072_v10 = vpop.xlane.xlu1 %3071 }
0x1560   : > { %v3066_v11 = vpop.xlane.xlu1 %3065 }
0x1564   : > { %v3075_v12 = vpop.xlane.xlu0 %3074  ;;  %v3089_v13 = vpop.permute.xlu1 %3088 }
0x1565   : > { %v3098_v14 = vand.u32 %v3089_v13, %v5973_v5  ;;  %5478 = vrcp.f32 %v3075_v12 }
0x1566   : > { %5480 = vrcp.f32 %v3066_v11 }
0x1567   : > { %5045 = vmatprep.subr.bf16.mxu1 %v3098_v14  ;;  %5482 = vrcp.f32 %v3072_v10 }
0x1568   : > { %v3069_v15 = vpop.xlane.xlu0 %3068  ;;  %5046 = vmatpush3.bf16.msra.mxu1 %v3098_v14  ;;  %v3156_v42 = vpop.permute.xlu1 %3155 }
0x1569   : > { %5484 = vrcp.f32 %v3069_v15  ;;  %v3167_v35 = vsel %vm1124_vm2, %v3156_v42, 0 }
0x156c   : > { %v3154_v39 = vpop.permute.xlu0 %3153  ;;  %v3152_v44 = vpop.permute.xlu1 %3151 }
0x156d   : > { %5111 = vmatprep.subr.msk.bf16.mxu1 %vm1124_vm2, %v3154_v39  ;;  %v3164_v30 = vsel %vm1124_vm2, %v3154_v39, 0 }
0x156f   : > { %v5479_v17 = vpop.eup %5478 }
0x1570   : > { %v5481_v18 = vpop.eup %5480  ;;  %v3083_v31 = vmul.f32 %v5479_v17, %v5467_v37  ;;  %v3150_v49 = vpop.permute.xlu0 %3149 }
0x1571   : > { %v5483_v19 = vpop.eup %5482  ;;  %v3080_v25 = vmul.f32 %v5481_v18, %v5465_v56 }
0x1572   : > { %v3082_v34 = vmul.f32 %v5483_v19, %v6306_v53 }
0x1573   : > { %v5485_v27 = vpop.eup %5484 }
0x1574   : > { %v3081_v32 = vmul.f32 %v5485_v27, %v5469_v40  ;;  %v3085_v29 = vpack.c.bf16 %v3083_v31, %v3082_v34 }
0x1576   : > { %v3084_v48 = vpack.c.bf16 %v3081_v32, %v3080_v25 }
0x1578   : > { %5047 = vmatprep.mubr.msk.bf16.mxu1 %vm1186_vm3, %v3084_v48 }
0x1579   : > { %5048 = vmatmul.mubr.msk.bf16.vlgmr.msra.gmra.mrb[44].mxu1 %vm1186_vm3, %v3085_v29 }
0x157a   : > { %5052 = vmatpush3.bf16.xpose.msra.mxu1 %v3164_v30  ;;  %5055 = vmatprep.mubr.msk.bf16.mxu1 %vm1124_vm2, %v3150_v49 }
0x157b   : > { %5112 = vmatprep.subr.msk.bf16.mxu1 %vm1124_vm2, %v3156_v42 }
0x1582   : > { %5054 = vmatpush3.bf16.xpose.msra.mxu1 %v3167_v35 }
0x1589   : > { %5056 = vmatmul.mubr.msk.bf16.vlgmr.msra.gmra.mrb[48].mxu1 %vm1124_vm2, %v3152_v44 }
0x1613   : > { %v6338_v52 = vpop.f32.mrb[40].mxu1 }
0x1614   : > { %v6340_v55 = vpop.f32.mrb[41].mxu1 }
0x1615   : > { %v6342_v53 = vpop.f32.mrb[42].mxu1 }
0x1616   : > { %v6344_v54 = vpop.f32.mrb[43].mxu1 }
0x164c   : > { %v6346_v56 = vpop.f32.mrb[44].mxu1 }
0x164d   : > { %v6348_v36 = vpop.f32.mrb[45].mxu1 }
0x164e   : > { %v6350_v37 = vpop.f32.mrb[46].mxu1 }
0x164f   : > { %v5250_v38 = vpack.i.bf16 %v6350_v37, %v6346_v56  ;;  %v6354_v40 = vpop.f32.mrb[47].mxu1 }
0x1650   : > { %v5245_v41 = vpack.i.bf16 %v6354_v40, %v6348_v36 }
0x165c   : > { %v5057_v23 = vpop.f32.mrb[48].mxu1 }
0x165d   : > { %v3203_v46 = vpop.f32.mrb[49].mxu1  ;;  %v3224_v60 = vsel %vm1186_vm3, %v5057_v23, -inf }
0x165e   : > { %v5058_v57 = vpop.f32.mrb[50].mxu1  ;;  %v3218_v24 = vsel %vm1186_vm3, %v3203_v46, -inf }
0x165f   : > { %3219 = vmax.xlane.f32.xlu0 %v3218_v24  ;;  %v3206_v58 = vpop.f32.mrb[51].mxu1  ;;  %v3227_v61 = vsel %vm1196_vm4, %v5058_v57, -inf }
0x1660   : > { %v3221_v59 = vsel %vm1186_vm3, %v3206_v58, -inf }
0x1661   : > { %3222 = vmax.xlane.f32.xlu1 %v3221_v59 }
0x1663   : > { %3225 = vmax.xlane.f32.xlu0 %v3224_v60 }
0x1667   : > { %3228 = vmax.xlane.f32.xlu0 %v3227_v61 }
0x1672   : > { %3264 = vrot.lane.b32.xlu1 %v6250_v45, %s6619_s28 }
0x16ec   : > { %v3220_v22 = vpop.xlane.xlu0 %3219 }
0x16ed   : > { %v3230_v1 = vsub.f32 %v3203_v46, %v3220_v22 }
0x16ee   : > { %v3223_v62 = vpop.xlane.xlu1 %3222 }
0x16ef   : > { %v3234_v6 = vmul.f32 1.442695, %v3230_v1  ;;  %v3231_v7 = vsub.f32 %v3206_v58, %v3223_v62 }
0x16f0   : > { %v3226_v2 = vpop.xlane.xlu0 %3225 }
0x16f1   : > { %v3232_v3 = vsub.f32 %v5057_v23, %v3226_v2  ;;  %v3236_v12 = vmul.f32 1.442695, %v3231_v7 }
0x16f2   : > { %v3265_v4 = vpop.permute.xlu1 %3264 }
0x16f3   : > { %v3238_v51 = vmul.f32 1.442695, %v3232_v3  ;;  %5059 = vmatprep.subr.bf16.mxu0 %v3265_v4 }
0x16f4   : > { %v3229_v10 = vpop.xlane.xlu0 %3228  ;;  %5060 = vmatpush3.bf16.msra.mxu0 %v3265_v4 }
0x16f5   : > { %5486 = vpow2.f32 %v3238_v51  ;;  %v3233_v11 = vsub.f32 %v5058_v57, %v3229_v10 }
0x16f6   : > { %5488 = vpow2.f32 %v3234_v6 }
0x16f7   : > { %v3240_v13 = vmul.f32 1.442695, %v3233_v11 }
0x16f9   : > { %5490 = vpow2.f32 %v3240_v13 }
0x16fa   : > { %5492 = vpow2.f32 %v3236_v12 }
0x16ff   : > { %v5487_v14 = vpop.eup %5486 }
0x1700   : > { %v3248_v15 = vsel %vm1186_vm3, %v5487_v14, 0.0  ;;  %v5489_v39 = vpop.eup %5488 }
0x1701   : > { %3249 = vadd.xlane.f32.xlu1 %v3248_v15  ;;  %v3242_v19 = vsel %vm1186_vm3, %v5489_v39, 0.0 }
0x1703   : > { %v5491_v17 = vpop.eup %5490 }
0x1704   : > { %v3251_v18 = vsel %vm1196_vm4, %v5491_v17, 0.0  ;;  %v5493_v27 = vpop.eup %5492 }
0x1705   : > { %3252 = vadd.xlane.f32.xlu0 %v3251_v18  ;;  %3243 = vadd.xlane.f32.xlu1 %v3242_v19  ;;  %v3245_v31 = vsel %vm1186_vm3, %v5493_v27, 0.0 }
0x1709   : > { %3246 = vadd.xlane.f32.xlu0 %v3245_v31 }
0x1716   : > { %3331 = vrot.lane.b32.xlu1 %v6250_v45, %s6620_s1 }
0x171a   : > { %3333 = vrot.lane.b32.xlu1 %v6248_v47, %s6620_s1  ;;  %s6627_s1 = sld [smem:[#allocation16_spill]] }
0x171e   : > { %3329 = vrot.lane.b32.xlu1 %v6252_v33, %s6621_s23 }
0x171f   : > { %3266 = vrot.lane.b32.xlu0 %v6248_v47, %s6619_s28  ;;  %s6626_s28 = smov 24  }
0x1723   : > { %3327 = vrot.lane.b32.xlu0 %v6256_v43, %s6621_s23  ;;  %s6628_s23 = sld [smem:[#allocation19_spill]] }
0x178e   : > { %v3250_v25 = vpop.xlane.xlu1 %3249 }
0x1792   : > { %v3253_v32 = vpop.xlane.xlu0 %3252  ;;  %v3244_v34 = vpop.xlane.xlu1 %3243 }
0x1793   : > { %5494 = vrcp.f32 %v3253_v32 }
0x1794   : > { %5496 = vrcp.f32 %v3244_v34 }
0x1795   : > { %5498 = vrcp.f32 %v3250_v25 }
0x1796   : > { %v3247_v48 = vpop.xlane.xlu0 %3246  ;;  %v3332_v33 = vpop.permute.xlu1 %3331 }
0x1797   : > { %5500 = vrcp.f32 %v3247_v48  ;;  %v3342_v59 = vsel %vm1124_vm2, %v3332_v33, 0 }
0x179a   : > { %v3267_v29 = vpop.permute.xlu0 %3266  ;;  %v3334_v61 = vpop.permute.xlu1 %3333 }
0x179b   : > { %v3276_v30 = vand.u32 %v3267_v29, %v5973_v5  ;;  %v3345_v22 = vsel %vm1124_vm2, %v3334_v61, 0 }
0x179d   : > { %5061 = vmatprep.subr.bf16.mxu0 %v3276_v30  ;;  %v5495_v49 = vpop.eup %5494 }
0x179e   : > { %5062 = vmatpush3.bf16.msra.mxu0 %v3276_v30  ;;  %v5497_v42 = vpop.eup %5496  ;;  %v3261_v44 = vmul.f32 %v5495_v49, %v5491_v17  ;;  %v3328_v60 = vpop.permute.xlu0 %3327 }
0x179f   : > { %5113 = vmatprep.subr.msk.bf16.mxu0 %vm1124_vm2, %v3332_v33  ;;  %v5499_v35 = vpop.eup %5498  ;;  %v3258_v23 = vmul.f32 %v5497_v42, %v5489_v39  ;;  %v3330_v62 = vpop.permute.xlu1 %3329 }
0x17a0   : > { %v3260_v57 = vmul.f32 %v5499_v35, %v5487_v14 }
0x17a1   : > { %v5501_v43 = vpop.eup %5500 }
0x17a2   : > { %v3259_v46 = vmul.f32 %v5501_v43, %v5493_v27  ;;  %v3263_v58 = vpack.c.bf16 %v3261_v44, %v3260_v57 }
0x17a4   : > { %v3262_v24 = vpack.c.bf16 %v3259_v46, %v3258_v23 }
0x17a6   : > { %5063 = vmatprep.mubr.msk.bf16.mxu0 %vm1186_vm3, %v3262_v24 }
0x17a7   : > { %5064 = vmatmul.mubr.msk.bf16.vlgmr.msra.gmra.mrb[48].mxu0 %vm1186_vm3, %v3263_v58 }
0x17a8   : > { %5068 = vmatpush3.bf16.xpose.msra.mxu0 %v3342_v59  ;;  %5071 = vmatprep.mubr.msk.bf16.mxu0 %vm1124_vm2, %v3328_v60 }
0x17a9   : > { %5114 = vmatprep.subr.msk.bf16.mxu0 %vm1124_vm2, %v3334_v61 }
0x17b0   : > { %5070 = vmatpush3.bf16.xpose.msra.mxu0 %v3345_v22 }
0x17b7   : > { %5072 = vmatmul.mubr.msk.bf16.vlgmr.msra.gmra.mrb[52].mxu0 %vm1124_vm2, %v3330_v62 }
0x17b8   : > { %3833 = vmatprep.mubr.bf16.mxu0 %v5678_v16 }
0x187a   : > { %v5065_v1 = vpop.f32.mrb[48].mxu0 }
0x187b   : > { %v3312_v2 = vpop.f32.mrb[49].mxu0 }
0x187c   : > { %v5066_v3 = vpop.f32.mrb[50].mxu0 }
0x187d   : > { %v5260_v4 = vpack.i.bf16 %v5066_v3, %v5065_v1  ;;  %v3315_v6 = vpop.f32.mrb[51].mxu0  ;;  %v5326_v3 = vld [vmem:[%s6625_s11] sm:$0xff]  }
0x187e   : > { %v5255_v7 = vpack.i.bf16 %v3315_v6, %v3312_v2 }
0x188a   : > { %v5073_v51 = vpop.f32.mrb[52].mxu0 }
0x188b   : > { %v3381_v10 = vpop.f32.mrb[53].mxu0  ;;  %v3402_v15 = vsel %vm1186_vm3, %v5073_v51, -inf }
0x188c   : > { %v5074_v11 = vpop.f32.mrb[54].mxu0  ;;  %v3396_v12 = vsel %vm1186_vm3, %v3381_v10, -inf }
0x188d   : > { %3397 = vmax.xlane.f32.xlu0 %v3396_v12  ;;  %v3384_v13 = vpop.f32.mrb[55].mxu0  ;;  %v3405_v39 = vsel %vm1196_vm4, %v5074_v11, -inf }
0x188e   : > { %v3399_v14 = vsel %vm1186_vm3, %v3384_v13, -inf }
0x188f   : > { %3400 = vmax.xlane.f32.xlu1 %v3399_v14 }
0x1891   : > { %3403 = vmax.xlane.f32.xlu0 %v3402_v15 }
0x1895   : > { %3406 = vmax.xlane.f32.xlu0 %v3405_v39 }
0x191a   : > { %v3398_v17 = vpop.xlane.xlu0 %3397 }
0x191b   : > { %v3408_v18 = vsub.f32 %v3381_v10, %v3398_v17 }
0x191c   : > { %v3401_v19 = vpop.xlane.xlu1 %3400 }
0x191d   : > { %v3412_v25 = vmul.f32 1.442695, %v3408_v18  ;;  %v3409_v32 = vsub.f32 %v3384_v13, %v3401_v19 }
0x191e   : > { %v3404_v27 = vpop.xlane.xlu0 %3403 }
0x191f   : > { %v3410_v31 = vsub.f32 %v5073_v51, %v3404_v27  ;;  %v3414_v30 = vmul.f32 1.442695, %v3409_v32 }
0x1921   : > { %v3416_v34 = vmul.f32 1.442695, %v3410_v31 }
0x1922   : > { %v3407_v48 = vpop.xlane.xlu0 %3406 }
0x1923   : > { %5502 = vpow2.f32 %v3416_v34  ;;  %v3411_v29 = vsub.f32 %v5074_v11, %v3407_v48 }
0x1924   : > { %5504 = vpow2.f32 %v3412_v25 }
0x1925   : > { %v3418_v49 = vmul.f32 1.442695, %v3411_v29 }
0x1927   : > { %5506 = vpow2.f32 %v3418_v49 }
0x1928   : > { %5508 = vpow2.f32 %v3414_v30 }
0x192d   : > { %v5503_v33 = vpop.eup %5502 }
0x192e   : > { %v3426_v42 = vsel %vm1186_vm3, %v5503_v33, 0.0  ;;  %v5505_v35 = vpop.eup %5504 }
0x192f   : > { %3427 = vadd.xlane.f32.xlu1 %v3426_v42  ;;  %v3420_v23 = vsel %vm1186_vm3, %v5505_v35, 0.0 }
0x1931   : > { %v5507_v43 = vpop.eup %5506 }
0x1932   : > { %v3429_v44 = vsel %vm1196_vm4, %v5507_v43, 0.0  ;;  %v5509_v46 = vpop.eup %5508 }
0x1933   : > { %3430 = vadd.xlane.f32.xlu0 %v3429_v44  ;;  %3421 = vadd.xlane.f32.xlu1 %v3420_v23  ;;  %v3423_v57 = vsel %vm1186_vm3, %v5509_v46, 0.0 }
0x1937   : > { %3424 = vadd.xlane.f32.xlu0 %v3423_v57 }
0x1944   : > { %3442 = vrot.lane.b32.xlu1 %v6250_v45, %s6622_s18 }
0x1948   : > { %5246 = vrot.lane.b32.xlu1 %v5245_v41, %s6623_s26 }
0x194c   : > { %5251 = vrot.lane.b32.xlu1 %v5250_v38, %s6623_s26  ;;  %s6630_s26 = sld [smem:[#allocation18_spill]] }
0x194d   : > { %3444 = vrot.lane.b32.xlu0 %v6248_v47, %s6622_s18  ;;  %s6629_s18 = sld [smem:[#allocation17_spill]] }
0x1950   : > { %5261 = vrot.lane.b32.xlu1 %v5260_v4, %s6624_s10 }
0x1951   : > { %5256 = vrot.lane.b32.xlu0 %v5255_v7, %s6624_s10  ;;  %s6631_s10 = sld [smem:[#allocation20_spill]] }
0x19bc   : > { %v3428_v24 = vpop.xlane.xlu1 %3427 }
0x19c0   : > { %v3431_v58 = vpop.xlane.xlu0 %3430  ;;  %v3422_v45 = vpop.xlane.xlu1 %3421 }
0x19c1   : > { %5510 = vrcp.f32 %v3431_v58 }
0x19c2   : > { %5512 = vrcp.f32 %v3422_v45 }
0x19c3   : > { %5514 = vrcp.f32 %v3428_v24 }
0x19c4   : > { %v3425_v36 = vpop.xlane.xlu0 %3424  ;;  %v3443_v40 = vpop.permute.xlu1 %3442 }
0x19c5   : > { %5516 = vrcp.f32 %v3425_v36  ;;  %5075 = vmatprep.subr.bf16.mxu1 %v3443_v40  ;;  %v4666_v36 = vld [vmem:[%s6627_s1] ss:$0 sm:$0xff]  ;;  %s6633_s1 = sld [smem:[#allocation22_spill]] }
0x19c6   : > { %5076 = vmatpush3.bf16.msra.mxu1 %v3443_v40 }
0x19c8   : > { %v3445_v56 = vpop.permute.xlu0 %3444  ;;  %v5247_v12 = vpop.permute.xlu1 %5246 }
0x19c9   : > { %v3454_v37 = vand.u32 %v3445_v56, %v5973_v5  ;;  %v5327_v5 = vld [vmem:[%s6625_s11 + $0x8] sm:$0xff]   ;;  %v5249_v15 = vunpack.i.h.bf16 %v5247_v12  ;;  %v5248_v39 = vunpack.i.l.bf16 %v5247_v12 }
0x19cb   : > { %5077 = vmatprep.subr.bf16.mxu1 %v3454_v37  ;;  %v5511_v47 = vpop.eup %5510  ;;  %v3554_v34 = vsel %vm1124_vm2, %v6344_v54, %v5249_v15  ;;  %v3553_v48 = vsel %vm1124_vm2, %v6340_v55, %v5248_v39 }
0x19cc   : > { %5078 = vmatpush3.bf16.msra.mxu1 %v3454_v37  ;;  %v5513_v38 = vpop.eup %5512  ;;  %v3439_v60 = vmul.f32 %v5511_v47, %v5507_v43  ;;  %v5252_v13 = vpop.permute.xlu1 %5251 }
0x19cd   : > { %v5515_v41 = vpop.eup %5514  ;;  %v3436_v61 = vmul.f32 %v5513_v38, %v5505_v35  ;;  %5083 = vmatprep.subr.bf16.mxu1 %v5326_v3  ;;  %v5257_v17 = vpop.permute.xlu0 %5256  ;;  %v5254_v18 = vunpack.i.h.bf16 %v5252_v13  ;;  %v5253_v19 = vunpack.i.l.bf16 %v5252_v13 }
0x19ce   : > { %v3438_v62 = vmul.f32 %v5515_v41, %v5503_v33  ;;  %v5259_v25 = vunpack.i.h.bf16 %v5257_v17  ;;  %v5258_v32 = vunpack.i.l.bf16 %v5257_v17 }
0x19cf   : > { %v5517_v59 = vpop.eup %5516  ;;  %v3556_v30 = vsel %vm1124_vm2, %v6342_v53, %v5254_v18  ;;  %v3555_v49 = vsel %vm1124_vm2, %v6338_v52, %v5253_v19 }
0x19d0   : > { %v3437_v22 = vmul.f32 %v5517_v59, %v5509_v46  ;;  %v3441_v2 = vpack.c.bf16 %v3439_v60, %v3438_v62  ;;  %v5262_v14 = vpop.permute.xlu1 %5261  ;;  %v3557_v46 = vsel %vm965_vm0, %v3553_v48, %v5258_v32  ;;  %v3558_v55 = vsel %vm965_vm0, %v3554_v34, %v5259_v25  ;;  %v5330_v32 = vld [vmem:[%s6628_s23 + $0x4] ss:$16 sps:$4 sm:$0xff]   ;;  %v5333_v34 = vld [vmem:[%s6628_s23 + $0xc] ss:$16 sps:$4 sm:$0xff]   ;;  %v5328_v48 = vld [vmem:[%s6628_s23] ss:$16 sps:$4 sm:$0xff]  }
0x19d1   : > { %v5264_v27 = vunpack.i.h.bf16 %v5262_v14  ;;  %v5263_v31 = vunpack.i.l.bf16 %v5262_v14  ;;  %3801 = vmatprep.subr.bf16.mxu0 %v5330_v32  ;;  %v5359_v32 = vld [vmem:[#allocation2 + $0xa0] sm:$0xff]  }
0x19d2   : > { %v3440_v1 = vpack.c.bf16 %v3437_v22, %v3436_v61  ;;  %3802 = vmatpush1.bf16.msra.mxu0 %v5328_v48  ;;  %v5361_v48 = vld [vmem:[#allocation2 + $0xe8] sm:$0xff]  }
0x19d3   : > { %v3559_v43 = vsel %vm965_vm0, %v3555_v49, %v5263_v31  ;;  %v3560_v44 = vsel %vm965_vm0, %v3556_v30, %v5264_v27  ;;  %v5336_v30 = vld [vmem:[%s6628_s23 + $0x24] ss:$16 sps:$4 sm:$0xff]   ;;  %v5339_v49 = vld [vmem:[%s6628_s23 + $0x2c] ss:$16 sps:$4 sm:$0xff]  }
0x19d4   : > { %5079 = vmatprep.mubr.msk.bf16.mxu1 %vm1186_vm3, %v3440_v1  ;;  %3803 = vmatprep.subr.bf16.mxu0 %v5336_v30  ;;  %v5363_v30 = vld [vmem:[#allocation2 + $0xa8] sm:$0xff]  }
0x19d5   : > { %5080 = vmatmul.mubr.msk.bf16.vlgmr.msra.gmra.mrb[52].mxu1 %vm1186_vm3, %v3441_v2 }
0x19d6   : > { %5084 = vmatpush3.bf16.msra.mxu1 %v5326_v3 }
0x19d7   : > { %5085 = vmatprep.subr.bf16.mxu1 %v5327_v5 }
0x19da   : > { %5086 = vmatpush3.bf16.msra.mxu1 %v5327_v5 }
0x19db   : > { %3854 = vmatprep.subr.bf16.mxu1 %v5333_v34  ;;  %v5360_v34 = vld [vmem:[#allocation2 + $0x68] sm:$0xff]  }
0x1aa8   : > { %v5081_v4 = vpop.f32.mrb[52].mxu1 }
0x1aa9   : > { %v3490_v6 = vpop.f32.mrb[53].mxu1 }
0x1aaa   : > { %v5082_v7 = vpop.f32.mrb[54].mxu1 }
0x1aab   : > { %v5270_v51 = vpack.i.bf16 %v5082_v7, %v5081_v4  ;;  %v3493_v10 = vpop.f32.mrb[55].mxu1 }
0x1aac   : > { %v5265_v11 = vpack.i.bf16 %v3493_v10, %v3490_v6 }
0x1aad   : > { %5271 = vrot.lane.b32.xlu1 %v5270_v51, %s6626_s28 }
0x1aae   : > { %5266 = vrot.lane.b32.xlu0 %v5265_v11, %s6626_s28  ;;  %s6632_s28 = sld [smem:[#allocation21_spill]] }
0x1b1f   : > { %v5272_v29 = vpop.permute.xlu1 %5271 }
0x1b20   : > { %v5274_v33 = vunpack.i.h.bf16 %v5272_v29  ;;  %v5273_v42 = vunpack.i.l.bf16 %v5272_v29  ;;  %v5267_v35 = vpop.permute.xlu0 %5266  ;;  %v5331_v29 = vld [vmem:[%s6628_s23 + $0x8] ss:$16 sps:$4 sm:$0xff]  }
0x1b21   : > { %v5269_v23 = vunpack.i.h.bf16 %v5267_v35  ;;  %v5268_v54 = vunpack.i.l.bf16 %v5267_v35  ;;  %v5340_v35 = vld [vmem:[#allocation2 + $0x40] sm:$0xff]  }
0x1b22   : > { %v3563_v57 = vsel %vm1893_vm7, %v3559_v43, %v5273_v42  ;;  %v3564_v53 = vsel %vm1893_vm7, %v3560_v44, %v5274_v33  ;;  %v5334_v33 = vld [vmem:[%s6628_s23 + $0x20] ss:$16 sps:$4 sm:$0xff]   ;;  %v5337_v42 = vld [vmem:[%s6628_s23 + $0x28] ss:$16 sps:$4 sm:$0xff]  }
0x1b23   : > { %v3566_v24 = vpack.c.bf16 %v3564_v53, %v3563_v57  ;;  %v3561_v52 = vsel %vm1893_vm7, %v3557_v46, %v5268_v54  ;;  %v3562_v58 = vsel %vm1893_vm7, %v3558_v55, %v5269_v23  ;;  %3804 = vmatpush1.bf16.msra.mxu0 %v5334_v33  ;;  %v5341_v43 = vld [vmem:[#allocation2 + $0xc0] sm:$0xff]   ;;  %v5365_v33 = vld [vmem:[#allocation2 + $0xf0] sm:$0xff]  }
0x1b24   : > { %v3565_v45 = vpack.c.bf16 %v3562_v58, %v3561_v52  ;;  %4866 = vmatprep.subr.bf16.mxu0 %v5340_v35  ;;  %v5367_v35 = vld [vmem:[#allocation2 + $0xb0] sm:$0xff]  }
0x1b26   : > { %5087 = vmatprep.mubr.msk.bf16.mxu1 %vm1054_vm1, %v3565_v45 }
0x1b27   : > { %5088 = vmatmul.mubr.msk.bf16.vlgmr.msra.gmra.mrb[56].mxu1 %vm1054_vm1, %v3566_v24 }
0x1b28   : > { %3886 = vmatprep.mubr.bf16.mxu1 %v5678_v16  ;;  %3855 = vmatpush1.bf16.msra.mxu1 %v5331_v29  ;;  %v5362_v29 = vld [vmem:[#allocation2 + $0x28] sm:$0xff]  }
0x1b29   : > { %3856 = vmatprep.subr.bf16.mxu1 %v5339_v49  ;;  %v5364_v49 = vld [vmem:[#allocation2 + $0x70] sm:$0xff]  }
0x1b2c   : > { %3857 = vmatpush1.bf16.msra.mxu1 %v5337_v42  ;;  %v5366_v42 = vld [vmem:[#allocation2 + $0x30] sm:$0xff]  }
0x1b2d   : > { %4894 = vmatprep.subr.bf16.mxu1 %v5341_v43  ;;  %v5368_v43 = vld [vmem:[#allocation2 + $0x78] sm:$0xff]  }
0x1bfa   : > { %v5089_v40 = vpop.f32.mrb[56].mxu1 }
0x1bfb   : > { %v3630_v56 = vpop.f32.mrb[57].mxu1  ;;  %v3639_v37 = vadd.f32 %v5089_v40, %v4666_v36 }
0x1bfc   : > { %v3631_v47 = vadd.f32 %v4666_v36, %v3630_v56  ;;  %v5090_v38 = vpop.f32.mrb[58].mxu1  ;;  %v4671_v56 = vld [vmem:[%s6629_s18] ss:$0 sm:$0xff]  ;;  %s936_s18 = sand.u32 1, %s5620_s16  }
0x1bfd   : > { %v3633_v41 = vpop.f32.mrb[59].mxu1  ;;  %v3647_v61 = vadd.f32 %v3639_v37, %v6240_v8  ;;  %v3642_v22 = vadd.f32 %v5090_v38, %v4666_v36  ;;  %s4449_s2 = scalar_lea.sflag [#allocation4], %s936_s18 }
0x1bfe   : > { %v3645_v59 = vadd.f32 %v3631_v47, %v6233_v63  ;;  %v3634_v60 = vadd.f32 %v4666_v36, %v3633_v41 }
0x1bff   : > { %v3648_v3 = vadd.f32 %v3642_v22, %v6242_v9  ;;  %v3657_v5 = vsel %vm1054_vm1, %v3647_v61, 0.0 }
0x1c00   : > { %v3646_v62 = vadd.f32 %v3634_v60, %v6235_v0  ;;  %v3651_v1 = vsel %vm1054_vm1, %v3645_v59, 0.0  ;;  %v4672_v60 = vld [vmem:[%s6630_s26] ss:$0 sm:$0xff]  ;;  %s4723_s26 = sshll.u32 %s5863_s0, 4  ;;  %s5681_s0 = smov [#allocation5]  }
0x1c01   : > { %3652 = vadd.xlane.f32.xlu0 %v3651_v1  ;;  %v3660_v4 = vsel %vm1993_vm8, %v3648_v3, 0.0 }
0x1c02   : > { %v3654_v2 = vsel %vm1054_vm1, %v3646_v62, 0.0 }
0x1c03   : > { %3655 = vadd.xlane.f32.xlu1 %v3654_v2 }
0x1c05   : > { %3658 = vadd.xlane.f32.xlu0 %v3657_v5 }
0x1c09   : > { %3661 = vadd.xlane.f32.xlu0 %v3660_v4  ;;  %v5342_v4 = vld [vmem:[#allocation2] sm:$0xff]  }
0x1c8e   : > { %v3653_v63 = vpop.xlane.xlu0 %3652 }
0x1c8f   : > { %v3663_v6 = vmul.f32 0.03125, %v3653_v63  ;;  %v5343_v63 = vld [vmem:[#allocation2 + $0x80] sm:$0xff]  }
0x1c90   : > { %v3656_v8 = vpop.xlane.xlu1 %3655 }
0x1c91   : > { %v3667_v7 = vsub.f32 %v3645_v59, %v3663_v6  ;;  %v3664_v51 = vmul.f32 0.03125, %v3656_v8  ;;  %v5344_v6 = vld [vmem:[#allocation2 + $0x48] sm:$0xff]  }
0x1c92   : > { %v3659_v0 = vpop.xlane.xlu0 %3658  ;;  %v5345_v8 = vld [vmem:[#allocation2 + $0xc8] sm:$0xff]  }
0x1c93   : > { %v3668_v10 = vsub.f32 %v3646_v62, %v3664_v51  ;;  %v3665_v11 = vmul.f32 0.03125, %v3659_v0  ;;  %v3671_v12 = vmul.f32 %v3667_v7, %v3667_v7 }
0x1c95   : > { %v3669_v13 = vsub.f32 %v3647_v61, %v3665_v11  ;;  %v3675_v9 = vsel %vm1054_vm1, %v3671_v12, 0.0  ;;  %v3672_v14 = vmul.f32 %v3668_v10, %v3668_v10  ;;  %v5347_v11 = vld [vmem:[#allocation2 + $0x88] sm:$0xff]   ;;  %v5348_v12 = vld [vmem:[#allocation2 + $0x50] sm:$0xff]  }
0x1c96   : > { %3676 = vadd.xlane.f32.xlu1 %v3675_v9  ;;  %v3662_v15 = vpop.xlane.xlu0 %3661 }
0x1c97   : > { %v3666_v39 = vmul.f32 0.03125, %v3662_v15  ;;  %v3678_v17 = vsel %vm1054_vm1, %v3672_v14, 0.0  ;;  %v3673_v18 = vmul.f32 %v3669_v13, %v3669_v13  ;;  %v5350_v15 = vld [vmem:[#allocation2 + $0x10] sm:$0xff]  }
0x1c98   : > { %3679 = vadd.xlane.f32.xlu0 %v3678_v17  ;;  %v5353_v17 = vld [vmem:[#allocation2 + $0xd8] sm:$0xff]  }
0x1c99   : > { %v3670_v19 = vsub.f32 %v3648_v3, %v3666_v39  ;;  %v3681_v27 = vsel %vm1054_vm1, %v3673_v18, 0.0  ;;  %v5351_v39 = vld [vmem:[#allocation2 + $0x90] sm:$0xff]   ;;  %v5354_v18 = vld [vmem:[#allocation2 + $0x18] sm:$0xff]  }
0x1c9a   : > { %3682 = vadd.xlane.f32.xlu1 %v3681_v27  ;;  %v5356_v27 = vld [vmem:[#allocation2 + $0x60] sm:$0xff]  }
0x1c9b   : > { %v3674_v31 = vmul.f32 %v3670_v19, %v3670_v19 }
0x1c9d   : > { %v3684_v25 = vsel %vm1993_vm8, %v3674_v31, 0.0  ;;  %v5357_v31 = vld [vmem:[#allocation2 + $0xe0] sm:$0xff]  }
0x1c9e   : > { %3685 = vadd.xlane.f32.xlu0 %v3684_v25  ;;  %v5358_v25 = vld [vmem:[#allocation2 + $0x20] sm:$0xff]  }
0x1d23   : > { %v3677_v44 = vpop.xlane.xlu1 %3676 }
0x1d24   : > { %v3687_v23 = vmul.f32 0.03125, %v3677_v44  ;;  %v5369_v44 = vld [vmem:[#allocation2 + $0xf8] sm:$0xff]  }
0x1d25   : > { %v3680_v54 = vpop.xlane.xlu0 %3679 }
0x1d26   : > { %v3691_v46 = vadd.f32 1e-05, %v3687_v23  ;;  %v3688_v55 = vmul.f32 0.03125, %v3680_v54  ;;  %v5370_v23 = vld [vmem:[#allocation2 + $0x38] sm:$0xff]  }
0x1d27   : > { %v3683_v57 = vpop.xlane.xlu1 %3682  ;;  %v5371_v54 = vld [vmem:[#allocation2 + $0xb8] sm:$0xff]  }
0x1d28   : > { %5518 = vrsqrt.f32 %v3691_v46  ;;  %v3692_v53 = vadd.f32 1e-05, %v3688_v55  ;;  %v3689_v24 = vmul.f32 0.03125, %v3683_v57  ;;  %v3733_v46 = vld [vmem:[%s6631_s10] sm:$0xf]  ;;  %s937_s10 = scalar_lea.vmem [#allocation5], %s936_s18 }
0x1d29   : > { %v3738_v55 = vrot.slane %v3733_v46, %v2072_v21  ;;  %v3746_v57 = vrot.slane %v3733_v46, %v2080_v26 }
0x1d2a   : > { %5520 = vrsqrt.f32 %v3692_v53  ;;  %v3693_v52 = vadd.f32 1e-05, %v3689_v24  ;;  %v3742_v53 = vrot.slane %v3733_v46, %v2076_v50  ;;  %v3750_v24 = vrot.slane %v3733_v46, %v2084_v28 }
0x1d2b   : > { %v3686_v58 = vpop.xlane.xlu0 %3685 }
0x1d2c   : > { %5522 = vrsqrt.f32 %v3693_v52  ;;  %v3690_v45 = vmul.f32 0.03125, %v3686_v58 }
0x1d2e   : > { %v3694_v36 = vadd.f32 1e-05, %v3690_v45 }
0x1d30   : > { %5524 = vrsqrt.f32 %v3694_v36 }
0x1d32   : > { %v5519_v40 = vpop.eup %5518 }
0x1d33   : > { %v3699_v37 = vmul.f32 %v5519_v40, %v3667_v7 }
0x1d34   : > { %v5521_v47 = vpop.eup %5520 }
0x1d35   : > { %v3709_v38 = vmul.f32 %v4671_v56, %v3699_v37  ;;  %v3700_v41 = vmul.f32 %v5521_v47, %v3668_v10  ;;  %v5346_v10 = vld [vmem:[#allocation2 + $0x8] sm:$0xff]  }
0x1d36   : > { %v5523_v59 = vpop.eup %5522 }
0x1d37   : > { %v3710_v61 = vmul.f32 %v4671_v56, %v3700_v41  ;;  %v3701_v22 = vmul.f32 %v5523_v59, %v3669_v13  ;;  %v6459_v62 = vadd.f32 %v4672_v60, %v3709_v38  ;;  %v5349_v13 = vld [vmem:[#allocation2 + $0xd0] sm:$0xff]  }
0x1d39   : > { %v6461_v1 = vadd.f32 %v4672_v60, %v3710_v61  ;;  %v3711_v7 = vmul.f32 %v4671_v56, %v3701_v22 }
0x1d3a   : > { %v5525_v2 = vpop.eup %5524 }
0x1d3b   : > { %v3702_v3 = vmul.f32 %v5525_v2, %v3670_v19  ;;  %v3723_v5 = vpack.c.bf16 %v6461_v1, %v6459_v62  ;;  %v6471_v9 = vadd.f32 %v4672_v60, %v3711_v7  ;;  %v5355_v19 = vld [vmem:[#allocation2 + $0x98] sm:$0xff]  }
0x1d3d   : > { %4681 = vmatmul.mubr.msk.bf16.vlgmr.msra.gmra.mrb[56].mxu0 %vm1054_vm1, %v3723_v5  ;;  %4683 = vmatmul.mubr.msk.bf16.vlgmr.msra.gmra.mrb[60].mxu1 %vm1054_vm1, %v3723_v5  ;;  %v3712_v51 = vmul.f32 %v4671_v56, %v3702_v3 }
0x1d3e   : > { %3843 = vmatprep.mubr.bf16.mxu0 %v5678_v16  ;;  %3896 = vmatprep.mubr.bf16.mxu1 %v5678_v16  ;;  %v5352_v16 = vld [vmem:[#allocation2 + $0x58] sm:$0xff]  }
0x1d3f   : > { %v6469_v0 = vadd.f32 %v4672_v60, %v3712_v51  ;;  %4867 = vmatpush3.bf16.msra.mxu0 %v5342_v4  ;;  %4895 = vmatpush3.bf16.msra.mxu1 %v5343_v63 }
0x1d40   : > { %4868 = vmatprep.subr.bf16.mxu0 %v5344_v6  ;;  %4896 = vmatprep.subr.bf16.mxu1 %v5345_v8 }
0x1d41   : > { %v3724_v14 = vpack.c.bf16 %v6469_v0, %v6471_v9 }
0x1d43   : > { %4869 = vmatpush3.bf16.msra.mxu0 %v5346_v10  ;;  %4897 = vmatpush3.bf16.msra.mxu1 %v5347_v11 }
0x1d44   : > { %4870 = vmatprep.subr.bf16.mxu0 %v5348_v12  ;;  %4898 = vmatprep.subr.bf16.mxu1 %v5349_v13 }
0x1d45   : > { %4682 = vmatmul.mubr.msk.bf16.gmra.mrb[60].mxu0 %vm1054_vm1, %v3724_v14  ;;  %4684 = vmatmul.mubr.msk.bf16.gmra.mrb[64].mxu1 %vm1054_vm1, %v3724_v14 }
0x1d47   : > { %4871 = vmatpush3.bf16.msra.mxu0 %v5350_v15  ;;  %4899 = vmatpush3.bf16.msra.mxu1 %v5351_v39 }
0x1d48   : > { %4872 = vmatprep.subr.bf16.mxu0 %v5352_v16  ;;  %4900 = vmatprep.subr.bf16.mxu1 %v5353_v17 }
0x1d4b   : > { %4873 = vmatpush3.bf16.msra.mxu0 %v5354_v18  ;;  %4901 = vmatpush3.bf16.msra.mxu1 %v5355_v19 }
0x1d4c   : > { %4874 = vmatprep.subr.bf16.mxu0 %v5356_v27  ;;  %4902 = vmatprep.subr.bf16.mxu1 %v5357_v31 }
0x1d4f   : > { %4875 = vmatpush3.bf16.msra.mxu0 %v5358_v25  ;;  %4903 = vmatpush3.bf16.msra.mxu1 %v5359_v32 }
0x1d50   : > { %4876 = vmatprep.subr.bf16.mxu0 %v5360_v34  ;;  %4904 = vmatprep.subr.bf16.mxu1 %v5361_v48 }
0x1d53   : > { %4877 = vmatpush3.bf16.msra.mxu0 %v5362_v29  ;;  %4905 = vmatpush3.bf16.msra.mxu1 %v5363_v30 }
0x1d54   : > { %4878 = vmatprep.subr.bf16.mxu0 %v5364_v49  ;;  %4906 = vmatprep.subr.bf16.mxu1 %v5365_v33 }
0x1d57   : > { %4879 = vmatpush3.bf16.msra.mxu0 %v5366_v42  ;;  %4907 = vmatpush3.bf16.msra.mxu1 %v5367_v35 }
0x1d58   : > { %4880 = vmatprep.subr.bf16.mxu0 %v5368_v43  ;;  %4908 = vmatprep.subr.bf16.mxu1 %v5369_v44 }
0x1d5b   : > { %4881 = vmatpush3.bf16.msra.mxu0 %v5370_v23  ;;  %4909 = vmatpush3.bf16.msra.mxu1 %v5371_v54 }
0x1e10   : > { %v3835_v52 = vpop.f32.mrb[56].mxu0  ;;  %v3888_v58 = vpop.f32.mrb[60].mxu1 }
0x1e11   : > { %v3836_v45 = vadd.f32 %v3835_v52, %v3738_v55  ;;  %v3889_v36 = vadd.f32 %v3888_v58, %v3746_v57  ;;  %v3837_v40 = vpop.f32.mrb[57].mxu0  ;;  %v3890_v56 = vpop.f32.mrb[61].mxu1 }
0x1e12   : > { %v3838_v37 = vadd.f32 %v3837_v40, %v3742_v53  ;;  %v3891_v47 = vadd.f32 %v3890_v56, %v3750_v24  ;;  %v3839_v38 = vpop.f32.mrb[58].mxu0  ;;  %v3892_v41 = vpop.f32.mrb[62].mxu1 }
0x1e13   : > { %v3840_v21 = vadd.f32 %v3839_v38, %v3738_v55  ;;  %v3893_v59 = vadd.f32 %v3892_v41, %v3746_v57  ;;  %v3841_v60 = vpop.f32.mrb[59].mxu0  ;;  %v3894_v26 = vpop.f32.mrb[63].mxu1  ;;  %v3907_v50 = vmax.f32 %v3836_v45, 0.0  ;;  %v3909_v2 = vmax.f32 %v3889_v36, 0.0 }
0x1e14   : > { %v3842_v61 = vadd.f32 %v3841_v60, %v3742_v53  ;;  %v3895_v22 = vadd.f32 %v3894_v26, %v3750_v24  ;;  %v3908_v3 = vmax.f32 %v3838_v37, 0.0  ;;  %v3910_v5 = vmax.f32 %v3891_v47, 0.0 }
0x1e15   : > { %v3911_v20 = vmax.f32 %v3840_v21, 0.0  ;;  %v3913_v28 = vmax.f32 %v3893_v59, 0.0 }
0x1e16   : > { %v3912_v4 = vmax.f32 %v3842_v61, 0.0  ;;  %v3914_v63 = vmax.f32 %v3895_v22, 0.0 }
0x1e17   : > { %v3923_v6 = vpack.c.bf16 %v3911_v20, %v3907_v50  ;;  %v3925_v8 = vpack.c.bf16 %v3913_v28, %v3909_v2 }
0x1e18   : > { %v3924_v7 = vpack.c.bf16 %v3912_v4, %v3908_v3  ;;  %v3926_v51 = vpack.c.bf16 %v3914_v63, %v3910_v5  ;;  %v3845_v10 = vpop.f32.mrb[60].mxu0  ;;  %v3898_v11 = vpop.f32.mrb[64].mxu1 }
0x1e19   : > { %v3846_v12 = vadd.f32 %v3845_v10, %v3738_v55  ;;  %v3899_v13 = vadd.f32 %v3898_v11, %v3746_v57  ;;  %v3847_v14 = vpop.f32.mrb[61].mxu0  ;;  %v3900_v15 = vpop.f32.mrb[65].mxu1 }
0x1e1a   : > { %v3848_v39 = vadd.f32 %v3847_v14, %v3742_v53  ;;  %v3901_v16 = vadd.f32 %v3900_v15, %v3750_v24  ;;  %v3849_v17 = vpop.f32.mrb[62].mxu0  ;;  %v3902_v18 = vpop.f32.mrb[66].mxu1  ;;  %4226 = vmatprep.mubr.bf16.mxu0 %v3924_v7  ;;  %4275 = vmatprep.mubr.bf16.mxu1 %v3926_v51 }
0x1e1b   : > { %v3850_v19 = vadd.f32 %v3849_v17, %v3738_v55  ;;  %v3903_v27 = vadd.f32 %v3902_v18, %v3746_v57  ;;  %v3851_v31 = vpop.f32.mrb[63].mxu0  ;;  %v3904_v25 = vpop.f32.mrb[67].mxu1  ;;  %4227 = vmatmul.mubr.bf16.vlgmr.msra.gmra.mrb[64].mxu0 %v3923_v6  ;;  %4276 = vmatmul.mubr.bf16.vlgmr.msra.gmra.mrb[68].mxu1 %v3925_v8  ;;  %v3915_v48 = vmax.f32 %v3846_v12, 0.0  ;;  %v3917_v29 = vmax.f32 %v3899_v13, 0.0 }
0x1e1c   : > { %v3852_v32 = vadd.f32 %v3851_v31, %v3742_v53  ;;  %v3905_v34 = vadd.f32 %v3904_v25, %v3750_v24  ;;  %v3916_v33 = vmax.f32 %v3848_v39, 0.0  ;;  %v3918_v42 = vmax.f32 %v3901_v16, 0.0  ;;  %v4685_v53 = vld [vmem:[%s6632_s28] ss:$0 sm:$0xff]  ;;  %s4461_s28 = sshll.u32 %s937_s10, 4  ;;  %s6514_s28 = int_to_ptr.vmem [resolvable:$true] %s4461_s28 }
0x1e1d   : > { %v3919_v30 = vmax.f32 %v3850_v19, 0.0  ;;  %v3921_v49 = vmax.f32 %v3903_v27, 0.0  ;;  %s5562_s3 = scalar_lea.vmem %s6514_s28, 16 }
0x1e1e   : > { %v3920_v35 = vmax.f32 %v3852_v32, 0.0  ;;  %v3922_v43 = vmax.f32 %v3905_v34, 0.0  ;;  %p5563_p6 = scmp.ne.s32.totalorder %s6514_s28, %s5562_s3 }
0x1e1f   : > { %v3927_v44 = vpack.c.bf16 %v3919_v30, %v3915_v48  ;;  %v3929_v23 = vpack.c.bf16 %v3921_v49, %v3917_v29 }
0x1e20   : > { %v3928_v54 = vpack.c.bf16 %v3920_v35, %v3916_v33  ;;  %v3930_v46 = vpack.c.bf16 %v3922_v43, %v3918_v42  ;;  %p5564_p10 = pnand %p5563_p6, %p6635_p9 }
0x1e22   : > { %4234 = vmatprep.mubr.bf16.mxu0 %v3928_v54  ;;  %4283 = vmatprep.mubr.bf16.mxu1 %v3930_v46  ;;  %v5679_v54 = vmov 0.0   ;;  %v5373_v46 = vld [vmem:[%s5830_s6 + $0x8] sm:$0xff]   ;;  %p5565_p12 = pneg %p5564_p10 }
0x1e23   : > { %4235 = vmatmul.mubr.bf16.gmra.mrb[68].mxu0 %v3927_v44  ;;  %4284 = vmatmul.mubr.bf16.gmra.mrb[72].mxu1 %v3929_v23  ;;  %v5372_v23 = vld [vmem:[%s5830_s6] sm:$0xff]  }
0x1e24   : > { %5091 = vmatprep.subr.bf16.mxu0 %v5679_v54  ;;  %5095 = vmatprep.mubr.msk.bf16.mxu0 %vm5680_vm9, %v5679_v54 }
0x1e25   : > { %5092 = vmatpush3.bf16.msra.mxu0 %v5372_v23 }
0x1e26   : > { %5093 = vmatprep.subr.bf16.mxu0 %v5679_v54 }
0x1e29   : > { %5094 = vmatpush3.bf16.msra.mxu0 %v5373_v46 }
0x1eee   : > { %v4882_v55 = vpop.f32.mrb[64].mxu0  ;;  %v4910_v57 = vpop.f32.mrb[68].mxu1 }
0x1eef   : > { %v4883_v24 = vpop.f32.mrb[65].mxu0  ;;  %v4911_v52 = vpop.f32.mrb[69].mxu1 }
0x1ef0   : > { %v4884_v58 = vadd.f32 %v4883_v24, %v4882_v55  ;;  %v4912_v45 = vadd.f32 %v4911_v52, %v4910_v57  ;;  %v4885_v36 = vpop.f32.mrb[66].mxu0  ;;  %v4913_v40 = vpop.f32.mrb[70].mxu1 }
0x1ef1   : > { %v4886_v56 = vpop.f32.mrb[67].mxu0  ;;  %v4914_v37 = vpop.f32.mrb[71].mxu1 }
0x1ef2   : > { %v4229_v47 = vadd.f32 %v4884_v58, %v4685_v53  ;;  %v4887_v38 = vadd.f32 %v4886_v56, %v4885_v36  ;;  %v4915_v41 = vadd.f32 %v4914_v37, %v4913_v40 }
0x1ef4   : > { %v4278_v21 = vadd.f32 %v4912_v45, %v4229_v47  ;;  %v4232_v59 = vadd.f32 %v4887_v38, %v4685_v53 }
0x1ef6   : > { %v4281_v60 = vadd.f32 %v4915_v41, %v4232_v59  ;;  %v4888_v26 = vpop.f32.mrb[68].mxu0  ;;  %v4916_v61 = vpop.f32.mrb[72].mxu1  ;;  %v4292_v22 = vadd.f32 %v4278_v21, %v6459_v62  ;;  %v4718_v59 = vld [vmem:[%s6633_s1] ss:$0 sm:$0xff]  ;;  %s6512_s1 = scalar_lea.hbm %s5840_s12, %s4723_s26 }
0x1ef7   : > { %v4889_v50 = vpop.f32.mrb[69].mxu0  ;;  %v4917_v2 = vpop.f32.mrb[73].mxu1 }
0x1ef8   : > { %v4890_v20 = vadd.f32 %v4889_v50, %v4888_v26  ;;  %v4918_v28 = vadd.f32 %v4917_v2, %v4916_v61  ;;  %v4891_v3 = vpop.f32.mrb[70].mxu0  ;;  %v4919_v5 = vpop.f32.mrb[74].mxu1  ;;  %v4298_v4 = vsel %vm1054_vm1, %v4292_v22, 0.0  ;;  %v4293_v63 = vadd.f32 %v4281_v60, %v6461_v1 }
0x1ef9   : > { %v4920_v6 = vpop.f32.mrb[75].mxu1  ;;  %4299 = vadd.xlane.f32.xlu1 %v4298_v4  ;;  %v4892_v8 = vpop.f32.mrb[71].mxu0 }
0x1efa   : > { %v4237_v7 = vadd.f32 %v4890_v20, %v4685_v53  ;;  %v4921_v51 = vadd.f32 %v4920_v6, %v4919_v5  ;;  %v4893_v10 = vadd.f32 %v4892_v8, %v4891_v3  ;;  %v4301_v11 = vsel %vm1054_vm1, %v4293_v63, 0.0 }
0x1efb   : > { %4302 = vadd.xlane.f32.xlu0 %v4301_v11 }
0x1efc   : > { %v4286_v62 = vadd.f32 %v4918_v28, %v4237_v7  ;;  %v4240_v12 = vadd.f32 %v4893_v10, %v4685_v53 }
0x1efe   : > { %v4289_v13 = vadd.f32 %v4921_v51, %v4240_v12  ;;  %v4294_v14 = vadd.f32 %v4286_v62, %v6471_v9 }
0x1f00   : > { %v4304_v15 = vsel %vm1054_vm1, %v4294_v14, 0.0  ;;  %v4295_v39 = vadd.f32 %v4289_v13, %v6469_v0 }
0x1f01   : > { %4305 = vadd.xlane.f32.xlu1 %v4304_v15 }
0x1f02   : > { %v4307_v1 = vsel %vm1993_vm8, %v4295_v39, 0.0 }
0x1f03   : > { %4308 = vadd.xlane.f32.xlu0 %v4307_v1 }
0x1f86   : > { %v4300_v16 = vpop.xlane.xlu1 %4299 }
0x1f87   : > { %v4310_v17 = vmul.f32 0.03125, %v4300_v16 }
0x1f88   : > { %v4303_v18 = vpop.xlane.xlu0 %4302 }
0x1f89   : > { %v4314_v19 = vsub.f32 %v4292_v22, %v4310_v17  ;;  %v4311_v27 = vmul.f32 0.03125, %v4303_v18  ;;  %v4719_v22 = vld [vmem:[%s5825_s20] ss:$0 sm:$0xff] }
0x1f8b   : > { %v4315_v31 = vsub.f32 %v4293_v63, %v4311_v27  ;;  %v4318_v25 = vmul.f32 %v4314_v19, %v4314_v19  ;;  %v4390_v27 = vld [vmem:[%s6634_s4] sm:$0x1]  ;;  %s5566_s4 = sshll.u32 %s5681_s0, 4  ;;  %s5567_s4 = int_to_ptr.vmem [resolvable:$false] %s5566_s4 }
0x1f8c   : > { %s5568_s5 = scalar_lea.vmem %s5567_s4, 32  ;;  %p5569_p2 = scmp.lt.s32.totalorder %s6514_s28, %s5567_s4 }
0x1f8d   : > { %v4322_v32 = vsel %vm1054_vm1, %v4318_v25, 0.0  ;;  %v4319_v34 = vmul.f32 %v4315_v31, %v4315_v31  ;;  %p5570_p3 = scmp.lt.s32.totalorder %s5568_s5, %s5562_s3 }
0x1f8e   : > { %4323 = vadd.xlane.f32.xlu1 %v4322_v32  ;;  %v4306_v9 = vpop.xlane.xlu1 %4305 }
0x1f8f   : > { %v4312_v48 = vmul.f32 0.03125, %v4306_v9  ;;  %v4325_v0 = vsel %vm1054_vm1, %v4319_v34, 0.0  ;;  %p5571_p4 = por %p5570_p3, %p5569_p2 }
0x1f90   : > { %4326 = vadd.xlane.f32.xlu0 %v4325_v0  ;;  %v4309_v29 = vpop.xlane.xlu0 %4308 }
0x1f91   : > { %v4316_v30 = vsub.f32 %v4294_v14, %v4312_v48  ;;  %v4313_v49 = vmul.f32 0.03125, %v4309_v29  ;;  %p5572_p7 = pnand %p5571_p4, %p5565_p12 }
0x1f93   : > { %v4317_v33 = vsub.f32 %v4295_v39, %v4313_v49  ;;  %v4320_v42 = vmul.f32 %v4316_v30, %v4316_v30 }
0x1f95   : > { %v4328_v35 = vsel %vm1054_vm1, %v4320_v42, 0.0  ;;  %v4321_v43 = vmul.f32 %v4317_v33, %v4317_v33 }
0x1f96   : > { %4329 = vadd.xlane.f32.xlu1 %v4328_v35 }
0x1f97   : > { %v4331_v44 = vsel %vm1993_vm8, %v4321_v43, 0.0 }
0x1f98   : > { %4332 = vadd.xlane.f32.xlu0 %v4331_v44 }
0x201b   : > { %v4324_v55 = vpop.xlane.xlu1 %4323 }
0x201c   : > { %v4334_v57 = vmul.f32 0.03125, %v4324_v55 }
0x201d   : > { %v4327_v53 = vpop.xlane.xlu0 %4326 }
0x201e   : > { %v4338_v24 = vadd.f32 1e-05, %v4334_v57  ;;  %v4335_v52 = vmul.f32 0.03125, %v4327_v53 }
0x2020   : > { %5526 = vrsqrt.f32 %v4338_v24  ;;  %v4339_v58 = vadd.f32 1e-05, %v4335_v52 }
0x2022   : > { %5528 = vrsqrt.f32 %v4339_v58 }
0x2023   : > { %v4330_v45 = vpop.xlane.xlu1 %4329 }
0x2024   : > { %v4336_v36 = vmul.f32 0.03125, %v4330_v45 }
0x2025   : > { %v4333_v40 = vpop.xlane.xlu0 %4332 }
0x2026   : > { %v4340_v56 = vadd.f32 1e-05, %v4336_v36  ;;  %v4337_v37 = vmul.f32 0.03125, %v4333_v40 }
0x2028   : > { %5530 = vrsqrt.f32 %v4340_v56  ;;  %v4341_v47 = vadd.f32 1e-05, %v4337_v37 }
0x202a   : > { %v5527_v38 = vpop.eup %5526  ;;  %5532 = vrsqrt.f32 %v4341_v47 }
0x202b   : > { %v4346_v41 = vmul.f32 %v5527_v38, %v4314_v19 }
0x202c   : > { %v5529_v21 = vpop.eup %5528 }
0x202d   : > { %v4347_v60 = vmul.f32 %v5529_v21, %v4315_v31  ;;  %v4356_v26 = vmul.f32 %v4718_v59, %v4346_v41 }
0x202f   : > { %v4357_v61 = vmul.f32 %v4718_v59, %v4347_v60  ;;  %v4366_v20 = vadd.f32 %v4719_v22, %v4356_v26 }
0x2031   : > { %v4367_v50 = vadd.f32 %v4719_v22, %v4357_v61  ;;  %v4370_v6 = vsel %vm1054_vm1, %v4366_v20, 0.0 }
0x2032   : > { %v5531_v2 = vpop.eup %5530 }
0x2033   : > { %v4348_v28 = vmul.f32 %v5531_v2, %v4316_v30  ;;  %v4371_v5 = vsel %vm1054_vm1, %v4367_v50, 0.0 }
0x2034   : > { %v5533_v3 = vpop.eup %5532  ;;  %v4372_v51 = vadd.f32 %v4371_v5, %v4370_v6 }
0x2035   : > { %v4358_v4 = vmul.f32 %v4718_v59, %v4348_v28  ;;  %v4349_v63 = vmul.f32 %v5533_v3, %v4317_v33 }
0x2037   : > { %v4368_v8 = vadd.f32 %v4719_v22, %v4358_v4  ;;  %v4359_v7 = vmul.f32 %v4718_v59, %v4349_v63 }
0x2039   : > { %v4373_v10 = vsel %vm1054_vm1, %v4368_v8, 0.0  ;;  %v4369_v11 = vadd.f32 %v4719_v22, %v4359_v7 }
0x203a   : > { %v4374_v62 = vadd.f32 %v4373_v10, %v4372_v51 }
0x203b   : > { %v4375_v12 = vsel %vm1993_vm8, %v4369_v11, 0.0 }
0x203c   : > { %v4376_v13 = vadd.f32 %v4375_v12, %v4374_v62 }
0x203e   : > { %v4377_v14 = vrot.slane %v4376_v13, 4 }
0x2040   : > { %v4378_v15 = vadd.f32 %v4377_v14, %v4376_v13 }
0x2042   : > { %v4379_v39 = vrot.slane %v4378_v15, 2 }
0x2044   : > { %v4380_v1 = vadd.f32 %v4379_v39, %v4378_v15 }
0x2046   : > { %v4381_v16 = vrot.slane %v4380_v1, 1 }
0x2048   : > { %v4382_v17 = vadd.f32 %v4381_v16, %v4380_v1 }
0x204a   : > { %v4384_v18 = vmul.f32 0.037037037, %v4382_v17 }
0x204c   : > { %v4385_v19 = vpack.c.bf16 %v4384_v18, %v4384_v18 }
0x204e   : > { %5096 = vmatmul.mubr.msk.bf16.vlgmr.msra.gmra.mrb[72].mxu0 %vm1054_vm1, %v4385_v19 }
0x2121   : > { %v4440_v31 = vpop.f32.mrb[72].mxu0 }
0x2122   : > { %v4441_v25 = vadd.f32 %v4440_v31, %v4390_v27  ;;  %v5097_v32 = vpop.f32.mrb[73].mxu0 }
0x2123   : > { %v4443_v34 = vpop.f32.mrb[74].mxu0 }
0x2124   : > { %v5098_v9 = vpop.f32.mrb[75].mxu0  ;;  %4447 = vst.msk [vmem:[%s937_s10] sm:$0x1] %vm4446_vm10, %v4441_v25 }
0x2125   : > { %5575 = shalt.err (!%p5572_p7)
}
0x2126   : > { %s5576_s18 = scalar_lea.hbm %s6512_s1, 16  ;;  %s5580_s26 = scalar_lea.hbm %s5840_s12, 32 }
0x2127   : > { %p5577_p8 = scmp.ne.s32.totalorder %s6512_s1, %s5576_s18  ;;  %p5581_p1 = scmp.lt.u32.totalorder %s6512_s1, %s5840_s12 }
0x2128   : > { %p5582_p0 = scmp.lt.u32.totalorder %s5580_s26, %s5576_s18  ;;  %p5584_p6 = scmp.lt.u32.totalorder %s5576_s18, %s6512_s1 }
0x2129   : > { %p5578_p11 = pnand %p5577_p8, %p6635_p9 }
0x212a   : > { %p5583_p5 = por %p5582_p0, %p5581_p1 }
0x212b   : > { %p5579_p13 = pneg %p5578_p11 }
0x212c   : > { %p5585_p10 = por %p5584_p6, %p5583_p5 }
0x212e   : > { %p5586_p12 = pnand %p5585_p10, %p5579_p13 }
0x2130   : > { %5589 = shalt.err (!%p5586_p12)
}
0x2131   : > { %5119 = dma.vmem_to_hbm [thread:$0]  (%p6635_p9), %s6514_s28, 16, %s6512_s1, %s4449_s2  }
0x2132 PF: > { %s6636_s5 = sld [smem:[#allocation27_spill]]  ;;  %p5131_p2 = scmp.ge.s32.totalorder %s5628_s22, 2 }
0x2133   : > { %s4473_s3 = sand.u32 1, %s5616_s15  }
0x2134   : > { %s4474_s4 = scalar_lea.sflag [#allocation4], %s4473_s3 }
0x2138   : > { %p6637_p3 = scmp.ne.s32.totalorder %s6636_s5, 0 }
0x213a   : > { %p5126_p4 = pnand %p5131_p2, %p6637_p3 }
0x213c   : > { %5611 = dma.done.wait (!%p5126_p4), %s4474_s4, 16  }
0x213d   : > { %5613 = vsyncadd (!%p5126_p4), %s4474_s4, 4294967280  ;;  %s6638_s22 = sld [smem:[#allocation25_spill]]  ;;  %s6639_s10 = sld [smem:[#allocation24_spill]] }
0x213e   : > { %s6640_s18 = sld [smem:[#allocation26_spill]]  ;;  %s6641_s15 = smov %s5620_s16 }
0x2143   : > { %p72_p7 = scmp.ge.s32.totalorder %s6638_s22, 4   ;;  %s6642_s16 = smov %s6639_s10 }
0x2145   :  { %74 = sbr.rel (!%p72_p7) target bundleno = 59 (0x3b), region = 210 }
0x214c   :  { %4478 = vsyncpa [#allocation3], 1 }
0x214d   :  { %4480 = vsyncpa [#allocation3 + $0x1], 1 }
0x214e   :  { %4481 = vsyncpa [#allocation4], 1 }
0x214f   :  { %4483 = vsyncpa [#allocation4 + $0x1], 1 }

</bundles_post_ra>
